<compile_context>
chip_gen: v7x
topology: tpu7x:2x2x1
jax: 0.10.0
libtpu: 0.0.40
codegen_flags: <defaults>
</compile_context>

<pallas_src>
import functools

import jax
import jax.numpy as jnp
from jax.experimental import pallas as pl
from jax.experimental.pallas import tpu as pltpu

_COL = 8  # interior column offset inside the 8-aligned padded row pitch


def _basicblock_kernel(x_ref, w1_ref, b1_ref, w2_ref, b2_ref, out_ref,
                       patches_ref, y1pad_ref, *, TH, W, Cp):
    """One (batch, row-tile) grid step.

    x_ref       : (TH+4, Wpad, Cp) f32   padded input rows for this tile
                  (2 halo rows top/bottom, interior columns at [_COL, _COL+W))
    w1/w2_ref   : (9*Cp, Cp)  bf16       conv weights (bn scale folded), im2col layout
    b1/b2_ref   : (1, Cp)     f32        bn shifts
    out_ref     : (TH*W, Cp)  f32        lane-dense output slab for this tile
    patches_ref : VMEM ((TH+2)*W, 9*Cp) bf16   im2col buffer (reused by both convs)
    y1pad_ref   : VMEM (TH+2, Wpad, Cp) bf16   column-zero-bordered intermediate
    """
    h = pl.program_id(1)
    taps = [(kh, kw) for kh in range(3) for kw in range(3)]
    M1 = (TH + 2) * W          # conv1 output rows (incl. 1 halo row top + bottom)
    M2 = TH * W                # conv2 / block output rows

    # ---------- conv1: im2col written directly in bf16, one deep-K matmul ----------
    for t, (kh, kw) in enumerate(taps):
        patch = x_ref[kh:kh + TH + 2, _COL - 1 + kw:_COL - 1 + kw + W, :]
        patches_ref[:, t * Cp:(t + 1) * Cp] = patch.astype(jnp.bfloat16).reshape(M1, Cp)

    acc1 = jnp.dot(patches_ref[...], w1_ref[...], preferred_element_type=jnp.float32)
    y1 = jnp.maximum(acc1 + b1_ref[...], 0.0)          # bn1 scale already folded into w1

    # ---- stage y1 (bf16) with zero column halos; zero row halos at image edges ----
    zcol = jnp.zeros((TH + 2, 1, Cp), jnp.bfloat16)
    y1pad_ref[:, _COL - 1:_COL, :] = zcol
    y1pad_ref[:, _COL + W:_COL + W + 1, :] = zcol
    y1pad_ref[:, _COL:_COL + W, :] = y1.astype(jnp.bfloat16).reshape(TH + 2, W, Cp)

    zrow = jnp.zeros((1, W + 2, Cp), jnp.bfloat16)

    @pl.when(h == 0)                        # global y1 row -1 is conv2's zero padding
    def _():
        y1pad_ref[0:1, _COL - 1:_COL + W + 1, :] = zrow

    @pl.when(h == pl.num_programs(1) - 1)   # global y1 row H is conv2's zero padding
    def _():
        y1pad_ref[TH + 1:TH + 2, _COL - 1:_COL + W + 1, :] = zrow

    # ---------- conv2: rebuild im2col from the bf16 staging scratch, matmul ----------
    for t, (kh, kw) in enumerate(taps):
        patch = y1pad_ref[kh:kh + TH, _COL - 1 + kw:_COL - 1 + kw + W, :]
        patches_ref[0:M2, t * Cp:(t + 1) * Cp] = patch.reshape(M2, Cp)

    acc2 = jnp.dot(patches_ref[0:M2, :], w2_ref[...], preferred_element_type=jnp.float32)

    # Residual read from the f32 input tile right before its single use: it is not
    # held live across the matmuls and stays exact f32 despite the bf16 scratches.
    residual = x_ref[2:TH + 2, _COL:_COL + W, :].reshape(M2, Cp)
    out_ref[...] = jnp.maximum(acc2 + b2_ref[...] + residual, 0.0).astype(out_ref.dtype)


def _choose_tile_h(H, W, max_rows=16):
    for th in range(min(H, max_rows), 0, -1):
        if H % th == 0 and (th * W) % 8 == 0:
            return th
    return H


def tt_basicblock_forward(x_nchw, w1, bn1_scale, bn1_shift, w2, bn2_scale, bn2_shift,
                          *, tile_h=None):
    """x_nchw: (N, C, H, W).  w1/w2: (Cout, Cin, 3, 3) PyTorch layout (Cout == Cin == C)."""
    N, C, H, W = x_nchw.shape
    Cp = ((C + 127) // 128) * 128            # lane-dense channel count
    K = 9 * Cp                               # im2col contraction depth
    TH = _choose_tile_h(H, W) if tile_h is None else tile_h
    assert H % TH == 0 and ((TH * W) % 8 == 0 or TH == H)
    nH = H // TH
    Wpad = ((_COL + W + 1 + 7) // 8) * 8     # 8-aligned row pitch, interior at [_COL, _COL+W)

    # --- layout plumbing (one extra HBM pass): NCHW->NHWC, pad, row-tile windows ---
    x_nhwc = jnp.transpose(x_nchw, (0, 2, 3, 1)).astype(jnp.float32)
    x_pad = jnp.pad(x_nhwc, ((0, 0), (2, 2), (_COL, Wpad - _COL - W), (0, Cp - C)))
    # overlapping (TH+4)-row windows: each grid step gets its conv1+conv2 halo rows
    x_tiles = jnp.stack([x_pad[:, h * TH:h * TH + TH + 4] for h in range(nH)], axis=1)

    def prep_w(w, scale):
        # (Cout,Cin,3,3) -> (3,3,Cin,Cout); fold bn scale into Cout; pad to Cp;
        # flatten to im2col layout (9*Cp, Cp); bf16 (MXU-native, f32 accumulation).
        wk = jnp.transpose(w, (2, 3, 1, 0)).astype(jnp.float32) * scale.reshape(1, 1, 1, C)
        wk = jnp.pad(wk, ((0, 0), (0, 0), (0, Cp - C), (0, Cp - C)))
        return wk.reshape(K, Cp).astype(jnp.bfloat16)

    def prep_b(shift):
        return jnp.pad(shift.astype(jnp.float32), (0, Cp - C)).reshape(1, Cp)

    w1_k, w2_k = prep_w(w1, bn1_scale), prep_w(w2, bn2_scale)
    b1_k, b2_k = prep_b(bn1_shift), prep_b(bn2_shift)

    # VMEM budget: double-buffered pipelined operands + single-buffered scratch.
    footprint = (2 * ((TH + 4) * Wpad * Cp * 4        # input tile (x2 buffers)
                      + TH * W * Cp * 4               # output tile (x2 buffers)
                      + 2 * K * Cp * 2)               # two weight slabs (x2 buffers)
                 + (TH + 2) * W * K * 2               # bf16 im2col scratch
                 + (TH + 2) * Wpad * Cp * 2)          # bf16 y1 staging scratch
    vmem_limit = int(min(64 << 20, max(32 << 20, 2 * footprint + (8 << 20))))

    kernel = functools.partial(_basicblock_kernel, TH=TH, W=W, Cp=Cp)

    out_flat = pl.pallas_call(
        kernel,
        out_shape=jax.ShapeDtypeStruct((N, H * W, Cp), jnp.float32),
        grid_spec=pltpu.PrefetchScalarGridSpec(
            num_scalar_prefetch=0,
            grid=(N, nH),
            in_specs=[
                pl.BlockSpec((None, None, TH + 4, Wpad, Cp), lambda b, h: (b, h, 0, 0, 0)),
                pl.BlockSpec((K, Cp), lambda b, h: (0, 0)),
                pl.BlockSpec((1, Cp), lambda b, h: (0, 0)),
                pl.BlockSpec((K, Cp), lambda b, h: (0, 0)),
                pl.BlockSpec((1, Cp), lambda b, h: (0, 0)),
            ],
            out_specs=pl.BlockSpec((None, TH * W, Cp), lambda b, h: (b, h, 0)),
            scratch_shapes=[
                pltpu.VMEM(((TH + 2) * W, K), jnp.bfloat16),   # im2col buffer (bf16)
                pltpu.VMEM((TH + 2, Wpad, Cp), jnp.bfloat16),  # y1 staging (bf16)
            ],
        ),
        compiler_params=pltpu.CompilerParams(
            dimension_semantics=("parallel", "parallel"),
            vmem_limit_bytes=vmem_limit,
        ),
    )(x_tiles, w1_k, b1_k, w2_k, b2_k)

    out_nhwc = out_flat.reshape(N, H, W, Cp)[:, :, :, :C]
    return jnp.transpose(out_nhwc, (0, 3, 1, 2)).astype(x_nchw.dtype)


# ----------------------------- reference (plain JAX, f32) -----------------------------
def _ref_forward(x_nchw, w1, s1, b1, w2, s2, b2):
    def conv(x, w):
        return jax.lax.conv_general_dilated(
            x, w, window_strides=(1, 1), padding=((1, 1), (1, 1)),
            dimension_numbers=("NCHW", "OIHW", "NCHW"))

    def bn(x, s, b):
        return x * s[None, :, None, None] + b[None, :, None, None]

    out = jax.nn.relu(bn(conv(x_nchw, w1), s1, b1))
    out = bn(conv(out, w2), s2, b2) + x_nchw
    return jax.nn.relu(out)


if __name__ == "__main__":
    N, C, H, W = 2, 4, 16, 16   # TtBasicBlock residual add requires in_ch == out_ch
    key = jax.random.PRNGKey(0)
    k_x, k_w1, k_w2, k_g1, k_b1, k_m1, k_v1, k_g2, k_b2, k_m2, k_v2 = jax.random.split(key, 11)

    x = jax.random.normal(k_x, (N, C, H, W), dtype=jnp.float32)
    w1 = jax.random.normal(k_w1, (C, C, 3, 3), dtype=jnp.float32) * 0.1
    w2 = jax.random.normal(k_w2, (C, C, 3, 3), dtype=jnp.float32) * 0.1

    eps = 1e-5
    gamma1 = jax.random.normal(k_g1, (C,), jnp.float32) * 0.1 + 1.0
    beta1 = jax.random.normal(k_b1, (C,), jnp.float32) * 0.1
    mean1 = jax.random.normal(k_m1, (C,), jnp.float32) * 0.1
    var1 = jax.nn.softplus(jax.random.normal(k_v1, (C,), jnp.float32)) + 0.5
    gamma2 = jax.random.normal(k_g2, (C,), jnp.float32) * 0.1 + 1.0
    beta2 = jax.random.normal(k_b2, (C,), jnp.float32) * 0.1
    mean2 = jax.random.normal(k_m2, (C,), jnp.float32) * 0.1
    var2 = jax.nn.softplus(jax.random.normal(k_v2, (C,), jnp.float32)) + 0.5

    # fold inference batchnorm into per-channel scale/shift
    bn1_scale = gamma1 / jnp.sqrt(var1 + eps)
    bn1_shift = beta1 - mean1 * bn1_scale
    bn2_scale = gamma2 / jnp.sqrt(var2 + eps)
    bn2_shift = beta2 - mean2 * bn2_scale

    # tile_h=8 -> 2 row tiles per image: exercises the halo-recompute + boundary path.
    out = tt_basicblock_forward(x, w1, bn1_scale, bn1_shift, w2, bn2_scale, bn2_shift,
                                tile_h=8)
    out = jax.block_until_ready(out)

    ref = _ref_forward(x, w1, bn1_scale, bn1_shift, w2, bn2_scale, bn2_shift)
    assert out.shape == (N, C, H, W)
    # bf16 MXU operands (f32 accumulation): tolerance loosened vs. the f32 reference.
    assert jnp.allclose(out, ref, atol=3e-2, rtol=3e-2), "mismatch vs reference"
    print("KERNEL_OK")
</pallas_src>

<mosaic_0001>
module attributes {stable_mosaic.version = 11 : i64} {
  func.func @_basicblock_kernel(%arg0: i32, %arg1: i32, %arg2: memref<1x1x12x32x128xf32, #tpu.memory_space<vmem>>, %arg3: memref<1152x128xbf16, #tpu.memory_space<vmem>>, %arg4: memref<1x128xf32, #tpu.memory_space<vmem>>, %arg5: memref<1152x128xbf16, #tpu.memory_space<vmem>>, %arg6: memref<1x128xf32, #tpu.memory_space<vmem>>, %arg7: memref<1x128x128xf32, #tpu.memory_space<vmem>>, %arg8: memref<160x1152xbf16, #tpu.memory_space<vmem>>, %arg9: memref<10x32x128xbf16, #tpu.memory_space<vmem>>) attributes {dimension_semantics = [#tpu.dimension_semantics<parallel>, #tpu.dimension_semantics<parallel>], iteration_bounds = array<i64: 2, 2>, scalar_prefetch = 0 : i64, scratch_operands = 2 : i64, tpu.core_type = #tpu.core_type<tc>, window_params = [{transform_indices = @transform_0, window_bounds = array<i64: 1, 1, 12, 32, 128>}, {pipeline_mode = #tpu.pipeline_mode<synchronous>, transform_indices = @transform_1, window_bounds = array<i64: 1152, 128>}, {pipeline_mode = #tpu.pipeline_mode<synchronous>, transform_indices = @transform_2, window_bounds = array<i64: 1, 128>}, {pipeline_mode = #tpu.pipeline_mode<synchronous>, transform_indices = @transform_3, window_bounds = array<i64: 1152, 128>}, {pipeline_mode = #tpu.pipeline_mode<synchronous>, transform_indices = @transform_4, window_bounds = array<i64: 1, 128>}, {transform_indices = @transform_5, window_bounds = array<i64: 1, 128, 128>}]} {
    %c0 = arith.constant 0 : index
    %c0_0 = arith.constant 0 : index
    %c0_1 = arith.constant 0 : index
    %c7 = arith.constant 7 : index
    %c0_2 = arith.constant 0 : index
    %0 = vector.load %arg2[%c0, %c0_0, %c0_1, %c7, %c0_2] : memref<1x1x12x32x128xf32, #tpu.memory_space<vmem>>, vector<1x1x10x16x128xf32>
    %1 = vector.shape_cast %0 : vector<1x1x10x16x128xf32> to vector<10x16x128xf32>
    %2 = arith.truncf %1 : vector<10x16x128xf32> to vector<10x16x128xbf16>
    %3 = vector.shape_cast %2 : vector<10x16x128xbf16> to vector<160x128xbf16>
    %c0_3 = arith.constant 0 : index
    %c0_4 = arith.constant 0 : index
    %4 = vector.load %arg8[%c0_3, %c0_4] : memref<160x1152xbf16, #tpu.memory_space<vmem>>, vector<160x128xbf16>
    tpu.vector_store %arg8[%c0_3, %c0_4], %3 {strides = array<i32>} : memref<160x1152xbf16, #tpu.memory_space<vmem>>, vector<160x128xbf16>,
    %c0_5 = arith.constant 0 : index
    %c0_6 = arith.constant 0 : index
    %c0_7 = arith.constant 0 : index
    %c8 = arith.constant 8 : index
    %c0_8 = arith.constant 0 : index
    %5 = vector.load %arg2[%c0_5, %c0_6, %c0_7, %c8, %c0_8] : memref<1x1x12x32x128xf32, #tpu.memory_space<vmem>>, vector<1x1x10x16x128xf32>
    %6 = vector.shape_cast %5 : vector<1x1x10x16x128xf32> to vector<10x16x128xf32>
    %7 = arith.truncf %6 : vector<10x16x128xf32> to vector<10x16x128xbf16>
    %8 = vector.shape_cast %7 : vector<10x16x128xbf16> to vector<160x128xbf16>
    %c0_9 = arith.constant 0 : index
    %c128 = arith.constant 128 : index
    %9 = vector.load %arg8[%c0_9, %c128] : memref<160x1152xbf16, #tpu.memory_space<vmem>>, vector<160x128xbf16>
    tpu.vector_store %arg8[%c0_9, %c128], %8 {strides = array<i32>} : memref<160x1152xbf16, #tpu.memory_space<vmem>>, vector<160x128xbf16>,
    %c0_10 = arith.constant 0 : index
    %c0_11 = arith.constant 0 : index
    %c0_12 = arith.constant 0 : index
    %c9 = arith.constant 9 : index
    %c0_13 = arith.constant 0 : index
    %10 = vector.load %arg2[%c0_10, %c0_11, %c0_12, %c9, %c0_13] : memref<1x1x12x32x128xf32, #tpu.memory_space<vmem>>, vector<1x1x10x16x128xf32>
    %11 = vector.shape_cast %10 : vector<1x1x10x16x128xf32> to vector<10x16x128xf32>
    %12 = arith.truncf %11 : vector<10x16x128xf32> to vector<10x16x128xbf16>
    %13 = vector.shape_cast %12 : vector<10x16x128xbf16> to vector<160x128xbf16>
    %c0_14 = arith.constant 0 : index
    %c256 = arith.constant 256 : index
    %14 = vector.load %arg8[%c0_14, %c256] : memref<160x1152xbf16, #tpu.memory_space<vmem>>, vector<160x128xbf16>
    tpu.vector_store %arg8[%c0_14, %c256], %13 {strides = array<i32>} : memref<160x1152xbf16, #tpu.memory_space<vmem>>, vector<160x128xbf16>,
    %c0_15 = arith.constant 0 : index
    %c0_16 = arith.constant 0 : index
    %c1 = arith.constant 1 : index
    %c7_17 = arith.constant 7 : index
    %c0_18 = arith.constant 0 : index
    %15 = vector.load %arg2[%c0_15, %c0_16, %c1, %c7_17, %c0_18] : memref<1x1x12x32x128xf32, #tpu.memory_space<vmem>>, vector<1x1x10x16x128xf32>
    %16 = vector.shape_cast %15 : vector<1x1x10x16x128xf32> to vector<10x16x128xf32>
    %17 = arith.truncf %16 : vector<10x16x128xf32> to vector<10x16x128xbf16>
    %18 = vector.shape_cast %17 : vector<10x16x128xbf16> to vector<160x128xbf16>
    %c0_19 = arith.constant 0 : index
    %c384 = arith.constant 384 : index
    %19 = vector.load %arg8[%c0_19, %c384] : memref<160x1152xbf16, #tpu.memory_space<vmem>>, vector<160x128xbf16>
    tpu.vector_store %arg8[%c0_19, %c384], %18 {strides = array<i32>} : memref<160x1152xbf16, #tpu.memory_space<vmem>>, vector<160x128xbf16>,
    %c0_20 = arith.constant 0 : index
    %c0_21 = arith.constant 0 : index
    %c1_22 = arith.constant 1 : index
    %c8_23 = arith.constant 8 : index
    %c0_24 = arith.constant 0 : index
    %20 = vector.load %arg2[%c0_20, %c0_21, %c1_22, %c8_23, %c0_24] : memref<1x1x12x32x128xf32, #tpu.memory_space<vmem>>, vector<1x1x10x16x128xf32>
    %21 = vector.shape_cast %20 : vector<1x1x10x16x128xf32> to vector<10x16x128xf32>
    %22 = arith.truncf %21 : vector<10x16x128xf32> to vector<10x16x128xbf16>
    %23 = vector.shape_cast %22 : vector<10x16x128xbf16> to vector<160x128xbf16>
    %c0_25 = arith.constant 0 : index
    %c512 = arith.constant 512 : index
    %24 = vector.load %arg8[%c0_25, %c512] : memref<160x1152xbf16, #tpu.memory_space<vmem>>, vector<160x128xbf16>
    tpu.vector_store %arg8[%c0_25, %c512], %23 {strides = array<i32>} : memref<160x1152xbf16, #tpu.memory_space<vmem>>, vector<160x128xbf16>,
    %c0_26 = arith.constant 0 : index
    %c0_27 = arith.constant 0 : index
    %c1_28 = arith.constant 1 : index
    %c9_29 = arith.constant 9 : index
    %c0_30 = arith.constant 0 : index
    %25 = vector.load %arg2[%c0_26, %c0_27, %c1_28, %c9_29, %c0_30] : memref<1x1x12x32x128xf32, #tpu.memory_space<vmem>>, vector<1x1x10x16x128xf32>
    %26 = vector.shape_cast %25 : vector<1x1x10x16x128xf32> to vector<10x16x128xf32>
    %27 = arith.truncf %26 : vector<10x16x128xf32> to vector<10x16x128xbf16>
    %28 = vector.shape_cast %27 : vector<10x16x128xbf16> to vector<160x128xbf16>
    %c0_31 = arith.constant 0 : index
    %c640 = arith.constant 640 : index
    %29 = vector.load %arg8[%c0_31, %c640] : memref<160x1152xbf16, #tpu.memory_space<vmem>>, vector<160x128xbf16>
    tpu.vector_store %arg8[%c0_31, %c640], %28 {strides = array<i32>} : memref<160x1152xbf16, #tpu.memory_space<vmem>>, vector<160x128xbf16>,
    %c0_32 = arith.constant 0 : index
    %c0_33 = arith.constant 0 : index
    %c2 = arith.constant 2 : index
    %c7_34 = arith.constant 7 : index
    %c0_35 = arith.constant 0 : index
    %30 = vector.load %arg2[%c0_32, %c0_33, %c2, %c7_34, %c0_35] : memref<1x1x12x32x128xf32, #tpu.memory_space<vmem>>, vector<1x1x10x16x128xf32>
    %31 = vector.shape_cast %30 : vector<1x1x10x16x128xf32> to vector<10x16x128xf32>
    %32 = arith.truncf %31 : vector<10x16x128xf32> to vector<10x16x128xbf16>
    %33 = vector.shape_cast %32 : vector<10x16x128xbf16> to vector<160x128xbf16>
    %c0_36 = arith.constant 0 : index
    %c768 = arith.constant 768 : index
    %34 = vector.load %arg8[%c0_36, %c768] : memref<160x1152xbf16, #tpu.memory_space<vmem>>, vector<160x128xbf16>
    tpu.vector_store %arg8[%c0_36, %c768], %33 {strides = array<i32>} : memref<160x1152xbf16, #tpu.memory_space<vmem>>, vector<160x128xbf16>,
    %c0_37 = arith.constant 0 : index
    %c0_38 = arith.constant 0 : index
    %c2_39 = arith.constant 2 : index
    %c8_40 = arith.constant 8 : index
    %c0_41 = arith.constant 0 : index
    %35 = vector.load %arg2[%c0_37, %c0_38, %c2_39, %c8_40, %c0_41] : memref<1x1x12x32x128xf32, #tpu.memory_space<vmem>>, vector<1x1x10x16x128xf32>
    %36 = vector.shape_cast %35 : vector<1x1x10x16x128xf32> to vector<10x16x128xf32>
    %37 = arith.truncf %36 : vector<10x16x128xf32> to vector<10x16x128xbf16>
    %38 = vector.shape_cast %37 : vector<10x16x128xbf16> to vector<160x128xbf16>
    %c0_42 = arith.constant 0 : index
    %c896 = arith.constant 896 : index
    %39 = vector.load %arg8[%c0_42, %c896] : memref<160x1152xbf16, #tpu.memory_space<vmem>>, vector<160x128xbf16>
    tpu.vector_store %arg8[%c0_42, %c896], %38 {strides = array<i32>} : memref<160x1152xbf16, #tpu.memory_space<vmem>>, vector<160x128xbf16>,
    %c0_43 = arith.constant 0 : index
    %c0_44 = arith.constant 0 : index
    %c2_45 = arith.constant 2 : index
    %c9_46 = arith.constant 9 : index
    %c0_47 = arith.constant 0 : index
    %40 = vector.load %arg2[%c0_43, %c0_44, %c2_45, %c9_46, %c0_47] : memref<1x1x12x32x128xf32, #tpu.memory_space<vmem>>, vector<1x1x10x16x128xf32>
    %41 = vector.shape_cast %40 : vector<1x1x10x16x128xf32> to vector<10x16x128xf32>
    %42 = arith.truncf %41 : vector<10x16x128xf32> to vector<10x16x128xbf16>
    %43 = vector.shape_cast %42 : vector<10x16x128xbf16> to vector<160x128xbf16>
    %c0_48 = arith.constant 0 : index
    %c1024 = arith.constant 1024 : index
    %44 = vector.load %arg8[%c0_48, %c1024] : memref<160x1152xbf16, #tpu.memory_space<vmem>>, vector<160x128xbf16>
    tpu.vector_store %arg8[%c0_48, %c1024], %43 {strides = array<i32>} : memref<160x1152xbf16, #tpu.memory_space<vmem>>, vector<160x128xbf16>,
    %c0_49 = arith.constant 0 : index
    %c0_50 = arith.constant 0 : index
    %45 = vector.load %arg8[%c0_49, %c0_50] : memref<160x1152xbf16, #tpu.memory_space<vmem>>, vector<160x1152xbf16>
    %c0_51 = arith.constant 0 : index
    %c0_52 = arith.constant 0 : index
    %46 = vector.load %arg3[%c0_51, %c0_52] : memref<1152x128xbf16, #tpu.memory_space<vmem>>, vector<1152x128xbf16>
    %cst = arith.constant dense<0.000000e+00> : vector<160x128xf32>
    %47 = tpu.matmul %45, %46, %cst {dimension_numbers = #tpu.dot_dimension_numbers<[1], [0], [0], [1], [0, 0, 1, 1], [], []>} : vector<160x1152xbf16>, vector<1152x128xbf16>, vector<160x128xf32> -> vector<160x128xf32>
    %c0_53 = arith.constant 0 : index
    %c0_54 = arith.constant 0 : index
    %48 = vector.load %arg4[%c0_53, %c0_54] : memref<1x128xf32, #tpu.memory_space<vmem>>, vector<1x128xf32>
    %49 = vector.broadcast %48 : vector<1x128xf32> to vector<160x128xf32>
    %50 = arith.addf %47, %49 : vector<160x128xf32>
    %cst_55 = arith.constant 0.000000e+00 : f32
    %51 = vector.broadcast %cst_55 : f32 to vector<160x128xf32>
    %52 = arith.maximumf %50, %51 : vector<160x128xf32>
    %cst_56 = arith.constant 0.000000e+00 : bf16
    %53 = vector.broadcast %cst_56 : bf16 to vector<10x1x128xbf16>
    %c0_57 = arith.constant 0 : index
    %c7_58 = arith.constant 7 : index
    %c0_59 = arith.constant 0 : index
    %54 = vector.load %arg9[%c0_57, %c7_58, %c0_59] : memref<10x32x128xbf16, #tpu.memory_space<vmem>>, vector<10x1x128xbf16>
    tpu.vector_store %arg9[%c0_57, %c7_58, %c0_59], %53 {strides = array<i32>} : memref<10x32x128xbf16, #tpu.memory_space<vmem>>, vector<10x1x128xbf16>,
    %c0_60 = arith.constant 0 : index
    %c24 = arith.constant 24 : index
    %c0_61 = arith.constant 0 : index
    %55 = vector.load %arg9[%c0_60, %c24, %c0_61] : memref<10x32x128xbf16, #tpu.memory_space<vmem>>, vector<10x1x128xbf16>
    tpu.vector_store %arg9[%c0_60, %c24, %c0_61], %53 {strides = array<i32>} : memref<10x32x128xbf16, #tpu.memory_space<vmem>>, vector<10x1x128xbf16>,
    %56 = arith.truncf %52 : vector<160x128xf32> to vector<160x128xbf16>
    %57 = vector.shape_cast %56 : vector<160x128xbf16> to vector<10x16x128xbf16>
    %c0_62 = arith.constant 0 : index
    %c8_63 = arith.constant 8 : index
    %c0_64 = arith.constant 0 : index
    %58 = vector.load %arg9[%c0_62, %c8_63, %c0_64] : memref<10x32x128xbf16, #tpu.memory_space<vmem>>, vector<10x16x128xbf16>
    tpu.vector_store %arg9[%c0_62, %c8_63, %c0_64], %57 {strides = array<i32>} : memref<10x32x128xbf16, #tpu.memory_space<vmem>>, vector<10x16x128xbf16>,
    %cst_65 = arith.constant 0.000000e+00 : bf16
    %59 = vector.broadcast %cst_65 : bf16 to vector<1x18x128xbf16>
    %c0_i32 = arith.constant 0 : i32
    %60 = arith.cmpi eq, %arg1, %c0_i32 : i32
    %61 = arith.extui %60 : i1 to i32
    %c0_i32_66 = arith.constant 0 : i32
    %62 = arith.cmpi ne, %61, %c0_i32_66 : i32
    scf.if %62 {
      %c0_129 = arith.constant 0 : index
      %c7_130 = arith.constant 7 : index
      %c0_131 = arith.constant 0 : index
      %108 = vector.load %arg9[%c0_129, %c7_130, %c0_131] : memref<10x32x128xbf16, #tpu.memory_space<vmem>>, vector<1x18x128xbf16>
      tpu.vector_store %arg9[%c0_129, %c7_130, %c0_131], %59 {strides = array<i32>} : memref<10x32x128xbf16, #tpu.memory_space<vmem>>, vector<1x18x128xbf16>,
    } else {
    }
    %c1_i32 = arith.constant 1 : i32
    %63 = arith.cmpi eq, %arg1, %c1_i32 : i32
    %64 = arith.extui %63 : i1 to i32
    %c0_i32_67 = arith.constant 0 : i32
    %65 = arith.cmpi ne, %64, %c0_i32_67 : i32
    scf.if %65 {
      %c9_129 = arith.constant 9 : index
      %c7_130 = arith.constant 7 : index
      %c0_131 = arith.constant 0 : index
      %108 = vector.load %arg9[%c9_129, %c7_130, %c0_131] : memref<10x32x128xbf16, #tpu.memory_space<vmem>>, vector<1x18x128xbf16>
      tpu.vector_store %arg9[%c9_129, %c7_130, %c0_131], %59 {strides = array<i32>} : memref<10x32x128xbf16, #tpu.memory_space<vmem>>, vector<1x18x128xbf16>,
    } else {
    }
    %c0_68 = arith.constant 0 : index
    %c7_69 = arith.constant 7 : index
    %c0_70 = arith.constant 0 : index
    %66 = vector.load %arg9[%c0_68, %c7_69, %c0_70] : memref<10x32x128xbf16, #tpu.memory_space<vmem>>, vector<8x16x128xbf16>
    %67 = vector.shape_cast %66 : vector<8x16x128xbf16> to vector<128x128xbf16>
    %c0_71 = arith.constant 0 : index
    %c0_72 = arith.constant 0 : index
    %68 = vector.load %arg8[%c0_71, %c0_72] : memref<160x1152xbf16, #tpu.memory_space<vmem>>, vector<128x128xbf16>
    tpu.vector_store %arg8[%c0_71, %c0_72], %67 {strides = array<i32>} : memref<160x1152xbf16, #tpu.memory_space<vmem>>, vector<128x128xbf16>,
    %c0_73 = arith.constant 0 : index
    %c8_74 = arith.constant 8 : index
    %c0_75 = arith.constant 0 : index
    %69 = vector.load %arg9[%c0_73, %c8_74, %c0_75] : memref<10x32x128xbf16, #tpu.memory_space<vmem>>, vector<8x16x128xbf16>
    %70 = vector.shape_cast %69 : vector<8x16x128xbf16> to vector<128x128xbf16>
    %c0_76 = arith.constant 0 : index
    %c128_77 = arith.constant 128 : index
    %71 = vector.load %arg8[%c0_76, %c128_77] : memref<160x1152xbf16, #tpu.memory_space<vmem>>, vector<128x128xbf16>
    tpu.vector_store %arg8[%c0_76, %c128_77], %70 {strides = array<i32>} : memref<160x1152xbf16, #tpu.memory_space<vmem>>, vector<128x128xbf16>,
    %c0_78 = arith.constant 0 : index
    %c9_79 = arith.constant 9 : index
    %c0_80 = arith.constant 0 : index
    %72 = vector.load %arg9[%c0_78, %c9_79, %c0_80] : memref<10x32x128xbf16, #tpu.memory_space<vmem>>, vector<8x16x128xbf16>
    %73 = vector.shape_cast %72 : vector<8x16x128xbf16> to vector<128x128xbf16>
    %c0_81 = arith.constant 0 : index
    %c256_82 = arith.constant 256 : index
    %74 = vector.load %arg8[%c0_81, %c256_82] : memref<160x1152xbf16, #tpu.memory_space<vmem>>, vector<128x128xbf16>
    tpu.vector_store %arg8[%c0_81, %c256_82], %73 {strides = array<i32>} : memref<160x1152xbf16, #tpu.memory_space<vmem>>, vector<128x128xbf16>,
    %c1_83 = arith.constant 1 : index
    %c7_84 = arith.constant 7 : index
    %c0_85 = arith.constant 0 : index
    %75 = vector.load %arg9[%c1_83, %c7_84, %c0_85] : memref<10x32x128xbf16, #tpu.memory_space<vmem>>, vector<8x16x128xbf16>
    %76 = vector.shape_cast %75 : vector<8x16x128xbf16> to vector<128x128xbf16>
    %c0_86 = arith.constant 0 : index
    %c384_87 = arith.constant 384 : index
    %77 = vector.load %arg8[%c0_86, %c384_87] : memref<160x1152xbf16, #tpu.memory_space<vmem>>, vector<128x128xbf16>
    tpu.vector_store %arg8[%c0_86, %c384_87], %76 {strides = array<i32>} : memref<160x1152xbf16, #tpu.memory_space<vmem>>, vector<128x128xbf16>,
    %c1_88 = arith.constant 1 : index
    %c8_89 = arith.constant 8 : index
    %c0_90 = arith.constant 0 : index
    %78 = vector.load %arg9[%c1_88, %c8_89, %c0_90] : memref<10x32x128xbf16, #tpu.memory_space<vmem>>, vector<8x16x128xbf16>
    %79 = vector.shape_cast %78 : vector<8x16x128xbf16> to vector<128x128xbf16>
    %c0_91 = arith.constant 0 : index
    %c512_92 = arith.constant 512 : index
    %80 = vector.load %arg8[%c0_91, %c512_92] : memref<160x1152xbf16, #tpu.memory_space<vmem>>, vector<128x128xbf16>
    tpu.vector_store %arg8[%c0_91, %c512_92], %79 {strides = array<i32>} : memref<160x1152xbf16, #tpu.memory_space<vmem>>, vector<128x128xbf16>,
    %c1_93 = arith.constant 1 : index
    %c9_94 = arith.constant 9 : index
    %c0_95 = arith.constant 0 : index
    %81 = vector.load %arg9[%c1_93, %c9_94, %c0_95] : memref<10x32x128xbf16, #tpu.memory_space<vmem>>, vector<8x16x128xbf16>
    %82 = vector.shape_cast %81 : vector<8x16x128xbf16> to vector<128x128xbf16>
    %c0_96 = arith.constant 0 : index
    %c640_97 = arith.constant 640 : index
    %83 = vector.load %arg8[%c0_96, %c640_97] : memref<160x1152xbf16, #tpu.memory_space<vmem>>, vector<128x128xbf16>
    tpu.vector_store %arg8[%c0_96, %c640_97], %82 {strides = array<i32>} : memref<160x1152xbf16, #tpu.memory_space<vmem>>, vector<128x128xbf16>,
    %c2_98 = arith.constant 2 : index
    %c7_99 = arith.constant 7 : index
    %c0_100 = arith.constant 0 : index
    %84 = vector.load %arg9[%c2_98, %c7_99, %c0_100] : memref<10x32x128xbf16, #tpu.memory_space<vmem>>, vector<8x16x128xbf16>
    %85 = vector.shape_cast %84 : vector<8x16x128xbf16> to vector<128x128xbf16>
    %c0_101 = arith.constant 0 : index
    %c768_102 = arith.constant 768 : index
    %86 = vector.load %arg8[%c0_101, %c768_102] : memref<160x1152xbf16, #tpu.memory_space<vmem>>, vector<128x128xbf16>
    tpu.vector_store %arg8[%c0_101, %c768_102], %85 {strides = array<i32>} : memref<160x1152xbf16, #tpu.memory_space<vmem>>, vector<128x128xbf16>,
    %c2_103 = arith.constant 2 : index
    %c8_104 = arith.constant 8 : index
    %c0_105 = arith.constant 0 : index
    %87 = vector.load %arg9[%c2_103, %c8_104, %c0_105] : memref<10x32x128xbf16, #tpu.memory_space<vmem>>, vector<8x16x128xbf16>
    %88 = vector.shape_cast %87 : vector<8x16x128xbf16> to vector<128x128xbf16>
    %c0_106 = arith.constant 0 : index
    %c896_107 = arith.constant 896 : index
    %89 = vector.load %arg8[%c0_106, %c896_107] : memref<160x1152xbf16, #tpu.memory_space<vmem>>, vector<128x128xbf16>
    tpu.vector_store %arg8[%c0_106, %c896_107], %88 {strides = array<i32>} : memref<160x1152xbf16, #tpu.memory_space<vmem>>, vector<128x128xbf16>,
    %c2_108 = arith.constant 2 : index
    %c9_109 = arith.constant 9 : index
    %c0_110 = arith.constant 0 : index
    %90 = vector.load %arg9[%c2_108, %c9_109, %c0_110] : memref<10x32x128xbf16, #tpu.memory_space<vmem>>, vector<8x16x128xbf16>
    %91 = vector.shape_cast %90 : vector<8x16x128xbf16> to vector<128x128xbf16>
    %c0_111 = arith.constant 0 : index
    %c1024_112 = arith.constant 1024 : index
    %92 = vector.load %arg8[%c0_111, %c1024_112] : memref<160x1152xbf16, #tpu.memory_space<vmem>>, vector<128x128xbf16>
    tpu.vector_store %arg8[%c0_111, %c1024_112], %91 {strides = array<i32>} : memref<160x1152xbf16, #tpu.memory_space<vmem>>, vector<128x128xbf16>,
    %c0_113 = arith.constant 0 : index
    %c0_114 = arith.constant 0 : index
    %93 = vector.load %arg8[%c0_113, %c0_114] : memref<160x1152xbf16, #tpu.memory_space<vmem>>, vector<128x1152xbf16>
    %c0_115 = arith.constant 0 : index
    %c0_116 = arith.constant 0 : index
    %94 = vector.load %arg5[%c0_115, %c0_116] : memref<1152x128xbf16, #tpu.memory_space<vmem>>, vector<1152x128xbf16>
    %cst_117 = arith.constant dense<0.000000e+00> : vector<128x128xf32>
    %95 = tpu.matmul %93, %94, %cst_117 {dimension_numbers = #tpu.dot_dimension_numbers<[1], [0], [0], [1], [0, 0, 1, 1], [], []>} : vector<128x1152xbf16>, vector<1152x128xbf16>, vector<128x128xf32> -> vector<128x128xf32>
    %c0_118 = arith.constant 0 : index
    %c0_119 = arith.constant 0 : index
    %c2_120 = arith.constant 2 : index
    %c8_121 = arith.constant 8 : index
    %c0_122 = arith.constant 0 : index
    %96 = vector.load %arg2[%c0_118, %c0_119, %c2_120, %c8_121, %c0_122] : memref<1x1x12x32x128xf32, #tpu.memory_space<vmem>>, vector<1x1x8x16x128xf32>
    %97 = vector.shape_cast %96 : vector<1x1x8x16x128xf32> to vector<8x16x128xf32>
    %98 = vector.shape_cast %97 : vector<8x16x128xf32> to vector<128x128xf32>
    %c0_123 = arith.constant 0 : index
    %c0_124 = arith.constant 0 : index
    %99 = vector.load %arg6[%c0_123, %c0_124] : memref<1x128xf32, #tpu.memory_space<vmem>>, vector<1x128xf32>
    %100 = vector.broadcast %99 : vector<1x128xf32> to vector<128x128xf32>
    %101 = arith.addf %95, %100 : vector<128x128xf32>
    %102 = arith.addf %101, %98 : vector<128x128xf32>
    %cst_125 = arith.constant 0.000000e+00 : f32
    %103 = vector.broadcast %cst_125 : f32 to vector<128x128xf32>
    %104 = arith.maximumf %102, %103 : vector<128x128xf32>
    %c0_126 = arith.constant 0 : index
    %c0_127 = arith.constant 0 : index
    %c0_128 = arith.constant 0 : index
    %105 = vector.load %arg7[%c0_126, %c0_127, %c0_128] : memref<1x128x128xf32, #tpu.memory_space<vmem>>, vector<1x128x128xf32>
    %106 = vector.shape_cast %105 : vector<1x128x128xf32> to vector<128x128xf32>
    %107 = vector.shape_cast %104 : vector<128x128xf32> to vector<1x128x128xf32>
    tpu.vector_store %arg7[%c0_126, %c0_127, %c0_128], %107 {strides = array<i32>} : memref<1x128x128xf32, #tpu.memory_space<vmem>>, vector<1x128x128xf32>,
    return
  }
  func.func @transform_0(%arg0: i32, %arg1: i32) -> (i32, i32, i32, i32, i32) {
    %c0_i32 = arith.constant 0 : i32
    %c0_i32_0 = arith.constant 0 : i32
    %c0_i32_1 = arith.constant 0 : i32
    %c0_i32_2 = arith.constant 0 : i32
    return %arg0, %arg1, %c0_i32, %c0_i32_0, %c0_i32_1 : i32, i32, i32, i32, i32
  }
  func.func @transform_1(%arg0: i32, %arg1: i32) -> (i32, i32) {
    %c0_i32 = arith.constant 0 : i32
    %c0_i32_0 = arith.constant 0 : i32
    %c0_i32_1 = arith.constant 0 : i32
    return %c0_i32, %c0_i32_0 : i32, i32
  }
  func.func @transform_2(%arg0: i32, %arg1: i32) -> (i32, i32) {
    %c0_i32 = arith.constant 0 : i32
    %c0_i32_0 = arith.constant 0 : i32
    %c0_i32_1 = arith.constant 0 : i32
    return %c0_i32, %c0_i32_0 : i32, i32
  }
  func.func @transform_3(%arg0: i32, %arg1: i32) -> (i32, i32) {
    %c0_i32 = arith.constant 0 : i32
    %c0_i32_0 = arith.constant 0 : i32
    %c0_i32_1 = arith.constant 0 : i32
    return %c0_i32, %c0_i32_0 : i32, i32
  }
  func.func @transform_4(%arg0: i32, %arg1: i32) -> (i32, i32) {
    %c0_i32 = arith.constant 0 : i32
    %c0_i32_0 = arith.constant 0 : i32
    %c0_i32_1 = arith.constant 0 : i32
    return %c0_i32, %c0_i32_0 : i32, i32
  }
  func.func @transform_5(%arg0: i32, %arg1: i32) -> (i32, i32, i32) {
    %c0_i32 = arith.constant 0 : i32
    %c0_i32_0 = arith.constant 0 : i32
    return %arg0, %arg1, %c0_i32 : i32, i32, i32
  }
}

</mosaic_0001>

<bundles_post_ra>
// kernel: tpu_custom_call.1
= control target key start
LH: loop header
LB: loop body
LE: loop exit
PB: predicated region body
PF: predicated region fallthrough
CT: control target
= control target key end

     0   :  { %s7048_s0 = inlined_call_operand.hbm [shape: f32[2,2,12,32,128], index: 0, kind: input, shape index: {}]   ;;  %s7049_s1 = inlined_call_operand.hbm [shape: bf16[1152,128], index: 1, kind: input, shape index: {}]   ;;  %s7050_s2 = inlined_call_operand.vmem [shape: f32[1,128], index: 2, kind: input, shape index: {}]   ;;  %s7051_s3 = inlined_call_operand.hbm [shape: bf16[1152,128], index: 3, kind: input, shape index: {}]   ;;  %s7052_s4 = inlined_call_operand.vmem [shape: f32[1,128], index: 4, kind: input, shape index: {}]   ;;  %s7053_s5 = inlined_call_operand.hbm [shape: f32[2,256,128], index: 5, kind: output, shape index: {}]  }
   0x1   :  { %7063 = sst [smem:[#allocation19_spill]] %s7049_s1 }
   0x2   :  { %7064 = sst [smem:[#allocation20_spill]] %s7051_s3 }
   0x3   :  { %10 = vsyncpa [#allocation5], 0 }
   0x4   :  { %12 = vsyncpa [#allocation5 + $0x1], 0 }
   0x5   :  { %13 = vsyncpa [#allocation8], 0 }
   0x6   :  { %14 = vsyncpa [#allocation6], 0 }
   0x7   :  { %16 = vsyncpa [#allocation6 + $0x1], 0  ;;  %s6070_s18 = smov 0   ;;  %s6072_s19 = smov 0  }
   0x8   :  { %s6074_s20 = smov 0   ;;  %s6076_s21 = smov 0  }
   0x9   :  { %s6078_s22 = smov 0   ;;  %s6080_s23 = smov 0  }
   0xa   :  { %s6082_s24 = smov 0   ;;  %s6084_s25 = smov 0  }
   0xb LB: > { %7065 = sst [smem:[#allocation14_spill]] %s6000_s18  ;;  %s4624_s26 = sadd.s32 4294967295, %s6028_s25   ;;  %s6028_s25 = sphi %s6084_s25, %s22_s25   ;;  %s6024_s24 = sphi %s6082_s24, %s7099_s24   ;;  %s6020_s23 = sphi %s6080_s23, %s7093_s23   ;;  %s6016_s22 = sphi %s6078_s22, %s7098_s22   ;;  %s6012_s21 = sphi %s6076_s21, %s7092_s21   ;;  %s6008_s20 = sphi %s6074_s20, %s7097_s20   ;;  %s6004_s19 = sphi %s6072_s19, %s7096_s19   ;;  %s6000_s18 = sphi %s6070_s18, %s7095_s18  }
   0xc   : > { %7066 = sst [smem:[#allocation15_spill]] %s6020_s23  ;;  %s4625_s27 = sadd.s32 4294967294, %s6028_s25  }
   0xd   : > { %p56_p0 = scmp.ne.s32.totalorder %s6004_s19, %s6000_s18  ;;  %p6114_p1 = scmp.eq.s32.totalorder %s4624_s26, 0 }
   0xe   : > { %p6118_p2 = scmp.eq.s32.totalorder %s4624_s26, 3  ;;  %p172_p3 = scmp.eq.s32.totalorder %s4625_s27, 3 }
   0xf   : > { %s7067_s28 = scalar_select %p6114_p1, 1, 0 }
  0x10   : > { %s7068_s29 = scalar_select %p6118_p2, 1, 0 }
  0x11   : > { %p6124_p4 = por %p6114_p1, %p56_p0  ;;  %p4626_p5 = scmp.ge.s32.totalorder %s6028_s25, 1 }
  0x12   : > { %p6129_p6 = por %p172_p3, %p56_p0  ;;  %p179_p7 = scmp.lt.s32.totalorder %s6028_s25, 5 }
  0x13   : > { %s7069_s30 = scalar_select %p6124_p4, 1, 0 }
  0x14   : > { %s7070_s6 = scalar_select %p6129_p6, 1, 0 }
  0x15   : > { %p6134_p8 = pnand %p4626_p5, %p179_p7  ;;  %s6030_s8 = smov [#allocation7]  }
  0x16   : > { %7071 = sst [smem:[#allocation16_spill]] %s7070_s6  ;;  %s191_s9 = sshll.u32 %s6030_s8, 4  ;;  %s192_s9 = int_to_ptr.vmem [resolvable:$true] %s191_s9 }
  0x17   : > { %s7072_s7 = scalar_select %p6134_p8, 1, 0 }
  0x18   : > { %p5603_p9 = pneg %p6134_p8  ;;  %s6031_s11 = smov [#allocation9]  }
  0x19   : > { %s207_s12 = sshll.u32 %s6031_s11, 4  ;;  %s7074_s1 = sld [smem:[#allocation19_spill]]  ;;  %s6146_s12 = int_to_ptr.vmem [resolvable:$true] %s207_s12 }
  0x1a   : > { %p6142_p10 = pnand %p5603_p9, %p6114_p1 }
  0x1c   : > { %p5842_p12 = pneg %p6142_p10 }
  0x1f   : > { %s5840_s15 = scalar_lea.hbm %s7074_s1, 9216 }
  0x20   : > { %p5841_p11 = scmp.ne.s32.totalorder %s7074_s1, %s5840_s15  ;;  %p5847_p3 = scmp.lt.u32.totalorder %s5840_s15, %s7074_s1 }
  0x22   : > { %p5843_p13 = pnand %p5842_p12, %p5841_p11 }
  0x24   : > { %p5844_p0 = pneg %p5843_p13 }
  0x26   : > { %p5849_p5 = pnand %p5847_p3, %p5844_p0 }
  0x28   : > { %5852 = shalt.err (!%p5849_p5)
}
  0x29   : > { %s5853_s8 = scalar_lea.vmem %s192_s9, 9216  ;;  %p5861_p1 = scmp.lt.s32.totalorder %s192_s9, %s192_s9 }
  0x2a   : > { %p5854_p7 = scmp.ne.s32.totalorder %s192_s9, %s5853_s8  ;;  %p5862_p4 = scmp.lt.s32.totalorder %s5853_s8, %s5853_s8 }
  0x2c   : > { %p5856_p9 = pnand %p5854_p7, %p5842_p12  ;;  %p5863_p8 = por %p5862_p4, %p5861_p1 }
  0x2e   : > { %p5857_p6 = pneg %p5856_p9 }
  0x30   : > { %p5864_p2 = pnand %p5863_p8, %p5857_p6 }
  0x32   : > { %5867 = shalt.err (!%p5864_p2)
}
  0x33   : > { %s6032_s11 = smov 64   ;;  %s6033_s13 = smov 4  }
  0x34   : > { %5606 = dma.hbm_to_vmem [thread:$0]  (!%p6142_p10), %s7074_s1, 9216, %s192_s9, [#allocation8], %s6032_s11, %s6032_s11, %s6033_s13  }
  0x35   : > { %s7075_s3 = sld [smem:[#allocation20_spill]] }
  0x3b   : > { %s5868_s26 = scalar_lea.hbm %s7075_s3, 9216 }
  0x3c   : > { %p5869_p11 = scmp.ne.s32.totalorder %s7075_s3, %s5868_s26  ;;  %p5875_p4 = scmp.lt.u32.totalorder %s5868_s26, %s7075_s3 }
  0x3e   : > { %p5871_p1 = pnand %p5869_p11, %p5842_p12 }
  0x40   : > { %p5872_p2 = pneg %p5871_p1 }
  0x42   : > { %p5877_p6 = pnand %p5875_p4, %p5872_p2 }
  0x44   : > { %5880 = shalt.err (!%p5877_p6)
}
  0x45   : > { %s5881_s9 = scalar_lea.vmem %s6146_s12, 9216  ;;  %p5889_p3 = scmp.lt.s32.totalorder %s6146_s12, %s6146_s12 }
  0x46   : > { %p5882_p8 = scmp.ne.s32.totalorder %s6146_s12, %s5881_s9  ;;  %p5890_p5 = scmp.lt.s32.totalorder %s5881_s9, %s5881_s9 }
  0x48   : > { %p5884_p13 = pnand %p5882_p8, %p5842_p12  ;;  %p5891_p7 = por %p5890_p5, %p5889_p3 }
  0x4a   : > { %p5885_p0 = pneg %p5884_p13 }
  0x4c   : > { %p5892_p9 = pnand %p5891_p7, %p5885_p0 }
  0x4e   : > { %5895 = shalt.err (!%p5892_p9)
}
  0x4f   : > { %5609 = dma.hbm_to_vmem [thread:$0]  (!%p6142_p10), %s7075_s3, 9216, %s6146_s12, [#allocation8], %s6032_s11, %s6032_s11, %s6033_s13  }
  0x50   : > { %s31_s14 = sadd.s32 1, %s6020_s23  ;;  %s34_s15 = sadd.s32 1, %s6024_s24 }
  0x51   : > { %p32_p12 = scmp.ge.s32.totalorder %s31_s14, 2  ;;  %s43_s10 = sadd.s32 1, %s6008_s20 }
  0x52   : > { %p50_p11 = scmp.ne.s32.totalorder %s6008_s20, %s6004_s19  ;;  %p51_p1 = scmp.eq.s32.totalorder %s6028_s25, 0 }
  0x53   : > { %s7101_s14 = smov (%p32_p12, %s31_s14), 0  ;;  %s7103_s15 = smov (!%p32_p12, %s34_s15), %s6024_s24 }
  0x54   : > { %7076 = sst [smem:[#allocation17_spill]] %s7101_s14  ;;  %s39_s16 = ssub.s32 %s6020_s23, %s7101_s14 }
  0x55   : > { %p6206_p2 = por %p51_p1, %p50_p11  ;;  %p36_p10 = scmp.ge.s32.totalorder %s7103_s15, 2 }
  0x56   : > { %p7078_p4 = scmp.ne.s32.totalorder %s7068_s29, 0  ;;  %p5620_p8 = scmp.lt.s32.totalorder %s6028_s25, 4 }
  0x57   : > { %s224_s11 = sand.u32 1, %s6008_s20   ;;  %s7105_s15 = smov (%p36_p10, %s7103_s15), 0 }
  0x58   : > { %p6212_p6 = por %p7078_p4, %p50_p11  ;;  %7080 = sst [smem:[#allocation18_spill]] %s7105_s15 }
  0x59   : > { %s5587_s13 = smul.u32 384, %s224_s11  ;;  %s38_s26 = ssub.s32 %s6024_s24, %s7105_s15 }
  0x5a   : > { %s5588_s27 = smul.u32 48, %s6020_s23  ;;  %s40_s8 = sor.u32 %s39_s16, %s38_s26 }
  0x5b   : > { %p41_p13 = scmp.eq.s32.totalorder %s40_s8, 0  ;;  %s5589_s9 = smul.u32 96, %s6024_s24 }
  0x5c   : > { %s228_s18 = scalar_lea.vmem [#allocation4], %s5587_s13  ;;  %p6226_p0 = pnand %p5620_p8, %p6206_p2 }
  0x5d   : > { %s237_s6 = sshll.u32 %s228_s18, 4  ;;  %s234_s3 = sadd.s32 %s5589_s9, %s5588_s27  ;;  %s6233_s6 = int_to_ptr.vmem [resolvable:$true] %s237_s6 }
  0x5e   : > { %s6231_s1 = scalar_select %p41_p13, %s6008_s20, %s43_s10  }
  0x5f   : > { %s4630_s14 = sshll.u32 %s234_s3, 7  ;;  %s6240_s17 = scalar_lea.sflag [#allocation5], %s224_s11 }
  0x60   : > { %s6238_s16 = scalar_lea.hbm %s7048_s0, %s4630_s14  ;;  %p5898_p5 = pneg %p6226_p0 }
  0x61   : > { %s5896_s13 = scalar_lea.hbm %s6238_s16, 6144  ;;  %s5901_s23 = scalar_lea.hbm %s7048_s0, 24576 }
  0x62   : > { %p5897_p3 = scmp.ne.s32.totalorder %s6238_s16, %s5896_s13  ;;  %p5902_p12 = scmp.lt.u32.totalorder %s6238_s16, %s7048_s0 }
  0x63   : > { %p5903_p11 = scmp.lt.u32.totalorder %s5901_s23, %s5896_s13  ;;  %p5905_p2 = scmp.lt.u32.totalorder %s5896_s13, %s6238_s16 }
  0x64   : > { %p5899_p7 = pnand %p5898_p5, %p5897_p3 }
  0x65   : > { %p5904_p1 = por %p5903_p11, %p5902_p12 }
  0x66   : > { %p5900_p9 = pneg %p5899_p7 }
  0x67   : > { %p5906_p10 = por %p5905_p2, %p5904_p1 }
  0x69   : > { %p5907_p4 = pnand %p5906_p10, %p5900_p9 }
  0x6b   : > { %5910 = shalt.err (!%p5907_p4)
}
  0x6c   : > { %s5911_s11 = scalar_lea.vmem %s6233_s6, 6144  ;;  %s6034_s26 = smov [#allocation4]  }
  0x6d   : > { %p5912_p8 = scmp.ne.s32.totalorder %s6233_s6, %s5911_s11  ;;  %s5916_s27 = sshll.u32 %s6034_s26, 4  ;;  %s5917_s27 = int_to_ptr.vmem [resolvable:$false] %s5916_s27 }
  0x6e   : > { %s5918_s8 = scalar_lea.vmem %s5917_s27, 12288  ;;  %p5919_p7 = scmp.lt.s32.totalorder %s6233_s6, %s5917_s27 }
  0x6f   : > { %p5914_p13 = pnand %p5912_p8, %p5898_p5  ;;  %p5920_p12 = scmp.lt.s32.totalorder %s5918_s8, %s5911_s11 }
  0x71   : > { %p5915_p3 = pneg %p5914_p13  ;;  %p5921_p11 = por %p5920_p12, %p5919_p7 }
  0x73   : > { %p5922_p1 = pnand %p5921_p11, %p5915_p3 }
  0x75   : > { %5925 = shalt.err (!%p5922_p1)
}
  0x76   : > { %s6035_s9 = smov 128   ;;  %s6036_s18 = smov 8  }
  0x77   : > { %5613 = dma.hbm_to_vmem [thread:$0]  (!%p6226_p0), %s6238_s16, 6144, %s6233_s6, %s6240_s17, %s6035_s9, %s6035_s9, %s6036_s18  }
  0x78   : > { %p7082_p5 = scmp.ne.s32.totalorder %s7072_s7, 0 }
  0x79   : > { %s6271_s13 = sand.u32 (!%p7082_p5), 1, %s6004_s19   ;;  %p7083_p9 = scmp.ne.s32.totalorder (!%p7082_p5), %s7069_s30, 0 }
  0x7a   : > { %249 = sbr.rel (%p7082_p5) target bundleno = 1023 (0x3ff), region = 40  ;;  %s252_s10 = scalar_lea.sflag (!%p7082_p5), [#allocation5], %s6271_s13 }
  0x7b   : > { %s5590_s3 = smul.u32 (!%p7082_p5), 384, %s6271_s13 }
  0x7d   : > { %s6275_s23 = scalar_lea.vmem (!%p7082_p5), [#allocation4], %s5590_s3 }
  0x81   : > { %5987 = dma.done.wait (%p7083_p9), %s252_s10, 6144  }
  0x82   : > { %5989 = vsyncadd (%p7083_p9), %s252_s10, 4294961152  ;;  %p7084_p0 = scmp.ne.s32.totalorder %s7067_s28, 0 }
  0x84   : > { %5991 = dma.done.wait (%p7084_p0), [#allocation8], 18432  }
  0x85   : > { %5993 = vsyncadd (%p7084_p0), [#allocation8], 4294948864  ;;  %s4634_s7 = sshll.u32 %s6271_s13, 7  ;;  %vm1912_vm0 = vcmask 1043459   ;;  %vm1913_vm1 = vsmask.f32 7950 }
  0x86   : > { %vm6287_vm2 = vmand %vm1912_vm0, %vm1913_vm1  ;;  %vm1945_vm3 = vcmask 1044484   ;;  %vm1946_vm4 = vsmask.f32 4352  ;;  %v1915_v1 = vld [vmem:[#allocation3] sm:$0x8]  ;;  %v5700_v46 = vld [vmem:[#allocation7 + $0x48] sm:$0xff]  }
  0x87   : > { %v1918_v2 = vld [vmem:[#allocation3 + $0x10] sm:$0x8]  ;;  %v1921_v3 = vld [vmem:[#allocation3 + $0x20] sm:$0x8]  ;;  %v1916_v4 = vsel %vm6287_vm2, 0, %v1915_v1  ;;  %vm6305_vm5 = vmand %vm1945_vm3, %vm1946_vm4  ;;  %s6753_s6 = scalar_lea.vmem [#allocation10], %s4634_s7 }
  0x88   : > { %v1919_v5 = vsel %vm6287_vm2, 0, %v1918_v2  ;;  %v1922_v6 = vsel %vm6287_vm2, 0, %v1921_v3  ;;  %v1924_v7 = vld [vmem:[#allocation3 + $0x30] sm:$0x8]  ;;  %v5696_v8 = vld [vmem:[#allocation7 + $0x40] sm:$0xff]   ;;  %v5701_v47 = vld [vmem:[#allocation7 + $0x8] sm:$0xff]  }
  0x89   : > { %1917 = vst [vmem:[#allocation3] sm:$0x8] %v1916_v4  ;;  %1920 = vst [vmem:[#allocation3 + $0x10] sm:$0x8] %v1919_v5  ;;  %v1925_v9 = vsel %vm6287_vm2, 0, %v1924_v7  ;;  %v5697_v12 = vld [vmem:[#allocation7] sm:$0xff]   ;;  %4925 = vmatprep.subr.bf16.mxu0 %v5696_v8 }
  0x8a   : > { %1923 = vst [vmem:[#allocation3 + $0x20] sm:$0x8] %v1922_v6  ;;  %v1927_v10 = vld [vmem:[#allocation3 + $0x40] sm:$0x8]  ;;  %v1930_v11 = vld [vmem:[#allocation3 + $0x50] sm:$0x8]  ;;  %4926 = vmatpush3.bf16.msra.mxu0 %v5697_v12 }
  0x8b   : > { %1926 = vst [vmem:[#allocation3 + $0x30] sm:$0x8] %v1925_v9  ;;  %v1928_v13 = vsel %vm6287_vm2, 0, %v1927_v10  ;;  %v1931_v14 = vsel %vm6287_vm2, 0, %v1930_v11  ;;  %v1933_v15 = vld [vmem:[#allocation3 + $0x60] sm:$0x8]  ;;  %4927 = vmatprep.subr.bf16.mxu0 %v5700_v46 }
  0x8c   : > { %v1936_v16 = vld [vmem:[#allocation3 + $0x70] sm:$0x8]  ;;  %1929 = vst [vmem:[#allocation3 + $0x40] sm:$0x8] %v1928_v13  ;;  %1932 = vst [vmem:[#allocation3 + $0x50] sm:$0x8] %v1931_v14 }
  0x8d   : > { %v1934_v18 = vsel %vm6287_vm2, 0, %v1933_v15  ;;  %v1937_v19 = vsel %vm6287_vm2, 0, %v1936_v16  ;;  %v1939_v20 = vld [vmem:[#allocation3 + $0x80] sm:$0x8]  ;;  %v1942_v21 = vld [vmem:[#allocation3 + $0x90] sm:$0x8] }
  0x8e   : > { %1935 = vst [vmem:[#allocation3 + $0x60] sm:$0x8] %v1934_v18  ;;  %1938 = vst [vmem:[#allocation3 + $0x70] sm:$0x8] %v1937_v19  ;;  %v1940_v22 = vsel %vm6287_vm2, 0, %v1939_v20  ;;  %v1943_v23 = vsel %vm6287_vm2, 0, %v1942_v21  ;;  %4928 = vmatpush3.bf16.msra.mxu0 %v5701_v47 }
  0x8f   : > { %v1948_v24 = vld [vmem:[#allocation3 + $0x8] sm:$0x10]  ;;  %v1951_v25 = vld [vmem:[#allocation3 + $0x18] sm:$0x10]  ;;  %1941 = vst [vmem:[#allocation3 + $0x80] sm:$0x8] %v1940_v22 }
  0x90   : > { %1944 = vst [vmem:[#allocation3 + $0x90] sm:$0x8] %v1943_v23  ;;  %v1949_v26 = vsel %vm6305_vm5, 0, %v1948_v24  ;;  %v1952_v27 = vsel %vm6305_vm5, 0, %v1951_v25  ;;  %v1954_v28 = vld [vmem:[#allocation3 + $0x28] sm:$0x10] }
  0x91   : > { %v1957_v29 = vld [vmem:[#allocation3 + $0x38] sm:$0x10]  ;;  %1950 = vst [vmem:[#allocation3 + $0x8] sm:$0x10] %v1949_v26  ;;  %1953 = vst [vmem:[#allocation3 + $0x18] sm:$0x10] %v1952_v27 }
  0x92   : > { %v1955_v30 = vsel %vm6305_vm5, 0, %v1954_v28  ;;  %v1958_v31 = vsel %vm6305_vm5, 0, %v1957_v29  ;;  %v1960_v32 = vld [vmem:[#allocation3 + $0x48] sm:$0x10]  ;;  %v1963_v33 = vld [vmem:[#allocation3 + $0x58] sm:$0x10] }
  0x93   : > { %1956 = vst [vmem:[#allocation3 + $0x28] sm:$0x10] %v1955_v30  ;;  %1959 = vst [vmem:[#allocation3 + $0x38] sm:$0x10] %v1958_v31  ;;  %v1961_v34 = vsel %vm6305_vm5, 0, %v1960_v32  ;;  %v1964_v35 = vsel %vm6305_vm5, 0, %v1963_v33 }
  0x94   : > { %v1966_v36 = vld [vmem:[#allocation3 + $0x68] sm:$0x10]  ;;  %v1969_v37 = vld [vmem:[#allocation3 + $0x78] sm:$0x10]  ;;  %1962 = vst [vmem:[#allocation3 + $0x48] sm:$0x10] %v1961_v34 }
  0x95   : > { %1965 = vst [vmem:[#allocation3 + $0x58] sm:$0x10] %v1964_v35  ;;  %v1967_v38 = vsel %vm6305_vm5, 0, %v1966_v36  ;;  %v1970_v39 = vsel %vm6305_vm5, 0, %v1969_v37  ;;  %v1972_v40 = vld [vmem:[#allocation3 + $0x88] sm:$0x10] }
  0x96   : > { %v1975_v41 = vld [vmem:[#allocation3 + $0x98] sm:$0x10]  ;;  %1968 = vst [vmem:[#allocation3 + $0x68] sm:$0x10] %v1967_v38  ;;  %1971 = vst [vmem:[#allocation3 + $0x78] sm:$0x10] %v1970_v39 }
  0x97   : > { %v1973_v42 = vsel %vm6305_vm5, 0, %v1972_v40  ;;  %v1976_v43 = vsel %vm6305_vm5, 0, %v1975_v41  ;;  %v5698_v44 = vld [vmem:[#allocation7 + $0xc0] sm:$0xff]   ;;  %v5702_v48 = vld [vmem:[#allocation7 + $0xc8] sm:$0xff]   ;;  %v5704_v50 = vld [vmem:[#allocation7 + $0x50] sm:$0xff]   ;;  %p4828_p2 = scmp.ne.s32.totalorder %s6012_s21, 0 }
  0x98   : > { %1974 = vst [vmem:[#allocation3 + $0x88] sm:$0x10] %v1973_v42  ;;  %1977 = vst [vmem:[#allocation3 + $0x98] sm:$0x10] %v1976_v43  ;;  %v5699_v45 = vld [vmem:[#allocation7 + $0x80] sm:$0xff]   ;;  %5001 = vmatprep.subr.bf16.mxu1 %v5698_v44  ;;  %v5703_v49 = vld [vmem:[#allocation7 + $0x88] sm:$0xff]   ;;  %4929 = vmatprep.subr.bf16.mxu0 %v5704_v50 }
  0x99   : > { %5002 = vmatpush3.bf16.msra.mxu1 %v5699_v45  ;;  %v5705_v51 = vld [vmem:[#allocation7 + $0x10] sm:$0xff]   ;;  %v5708_v54 = vld [vmem:[#allocation7 + $0x58] sm:$0xff]   ;;  %v5712_v58 = vld [vmem:[#allocation7 + $0x60] sm:$0xff]   ;;  %vm2042_vm6 = vcmask (!%p4828_p2), 1047555   ;;  %vm2047_vm7 = vcmask (!%p4828_p2), 1044480  }
  0x9a   : > { %5003 = vmatprep.subr.bf16.mxu1 %v5702_v48  ;;  %v5706_v52 = vld [vmem:[#allocation7 + $0xd0] sm:$0xff]   ;;  %4930 = vmatpush3.bf16.msra.mxu0 %v5705_v51  ;;  %v5709_v55 = vld [vmem:[#allocation7 + $0x18] sm:$0xff]   ;;  %v5713_v59 = vld [vmem:[#allocation7 + $0x20] sm:$0xff]  }
  0x9b   : > { %v5707_v53 = vld [vmem:[#allocation7 + $0x90] sm:$0xff]   ;;  %4931 = vmatprep.subr.bf16.mxu0 %v5708_v54  ;;  %v5710_v56 = vld [vmem:[#allocation7 + $0xd8] sm:$0xff]   ;;  %v5714_v60 = vld [vmem:[#allocation7 + $0xe0] sm:$0xff]  }
  0x9c   : > { %v5711_v57 = vld [vmem:[#allocation7 + $0x98] sm:$0xff]   ;;  %v5715_v61 = vld [vmem:[#allocation7 + $0xa0] sm:$0xff]   ;;  %v5716_v62 = vld [vmem:[#allocation7 + $0x68] sm:$0xff]  }
  0x9d   : > { %5004 = vmatpush3.bf16.msra.mxu1 %v5703_v49  ;;  %v5717_v63 = vld [vmem:[#allocation7 + $0x28] sm:$0xff]   ;;  %v5720_v2 = vld [vmem:[#allocation7 + $0x70] sm:$0xff]   ;;  %v5724_v6 = vld [vmem:[#allocation7 + $0x78] sm:$0xff]  }
  0x9e   : > { %5005 = vmatprep.subr.bf16.mxu1 %v5706_v52  ;;  %4932 = vmatpush3.bf16.msra.mxu0 %v5709_v55  ;;  %v5718_v0 = vld [vmem:[#allocation7 + $0xe8] sm:$0xff]   ;;  %v5721_v3 = vld [vmem:[#allocation7 + $0x30] sm:$0xff]   ;;  %v5725_v7 = vld [vmem:[#allocation7 + $0x38] sm:$0xff]  }
  0x9f   : > { %4933 = vmatprep.subr.bf16.mxu0 %v5712_v58  ;;  %v5719_v1 = vld [vmem:[#allocation7 + $0xa8] sm:$0xff]   ;;  %v5722_v4 = vld [vmem:[#allocation7 + $0xf0] sm:$0xff]   ;;  %v5726_v8 = vld [vmem:[#allocation7 + $0xf8] sm:$0xff]  }
  0xa0   : > { %v5723_v5 = vld [vmem:[#allocation7 + $0xb0] sm:$0xff]   ;;  %v332_v9 = vld [vmem:[%s6275_s23 + $0x8] sm:$0xff]  ;;  %v5727_v12 = vld [vmem:[#allocation7 + $0xb8] sm:$0xff]  }
  0xa1   : > { %5006 = vmatpush3.bf16.msra.mxu1 %v5707_v53  ;;  %v333_v10 = vld [vmem:[%s6275_s23 + $0x10] sm:$0xff]  ;;  %v292_v13 = vld [vmem:[%s6275_s23 + $0x7] sm:$0xff]  ;;  %v5734_v55 = vld [vmem:[#allocation7 + $0x158] sm:$0xff]  }
  0xa2   : > { %5007 = vmatprep.subr.bf16.mxu1 %v5710_v56  ;;  %4934 = vmatpush3.bf16.msra.mxu0 %v5713_v59  ;;  %v352_v11 = vpack.c.bf16 %v333_v10, %v332_v9  ;;  %v293_v14 = vld [vmem:[%s6275_s23 + $0xf] sm:$0xff]  ;;  %v5728_v16 = vld [vmem:[#allocation7 + $0x140] sm:$0xff]   ;;  %v5735_v59 = vld [vmem:[#allocation7 + $0x118] sm:$0xff]  }
  0xa3   : > { %4935 = vmatprep.subr.bf16.mxu0 %v5716_v62  ;;  %v312_v15 = vpack.c.bf16 %v293_v14, %v292_v13  ;;  %v4635_v17 = vld [vmem:[%s6275_s23 + $0x27] sm:$0xff]  ;;  %v4636_v18 = vld [vmem:[%s6275_s23 + $0x2f] sm:$0xff]  ;;  %vm2043_vm8 = vmand (!%p4828_p2), %vm2042_vm6, %vm1913_vm1 }
  0xa4   : > { %1359 = vmatprep.mubr.bf16.mxu0 %v352_v11  ;;  %v433_v19 = vpack.c.bf16 %v4636_v18, %v4635_v17  ;;  %v5729_v20 = vld [vmem:[#allocation7 + $0x100] sm:$0xff]   ;;  %v372_v21 = vld [vmem:[%s6275_s23 + $0x9] sm:$0xff]  ;;  %v373_v22 = vld [vmem:[%s6275_s23 + $0x11] sm:$0xff] }
  0xa5   : > { %5008 = vmatpush3.bf16.msra.mxu1 %v5711_v57  ;;  %v334_v23 = vld [vmem:[%s6275_s23 + $0x28] sm:$0xff]  ;;  %v335_v24 = vld [vmem:[%s6275_s23 + $0x30] sm:$0xff]  ;;  %v392_v25 = vpack.c.bf16 %v373_v22, %v372_v21  ;;  %v5739_v11 = vld [vmem:[#allocation7 + $0x120] sm:$0xff]  }
  0xa6   : > { %5009 = vmatprep.subr.bf16.mxu1 %v5714_v60  ;;  %4936 = vmatpush3.bf16.msra.mxu0 %v5717_v63  ;;  %v6347_v26 = vpack.c.bf16 %v335_v24, %v334_v23  ;;  %v4637_v27 = vld [vmem:[%s6275_s23 + $0x47] sm:$0xff]  ;;  %v4638_v28 = vld [vmem:[%s6275_s23 + $0x4f] sm:$0xff]  ;;  %vm2048_vm9 = vmand (!%p4828_p2), %vm2047_vm7, %vm1946_vm4 }
  0xa7   : > { %4937 = vmatprep.subr.bf16.mxu0 %v5720_v2  ;;  %1472 = vmatprep.mubr.bf16.mxu1 %v433_v19  ;;  %v374_v29 = vld [vmem:[%s6275_s23 + $0x29] sm:$0xff]  ;;  %v6352_v30 = vpack.c.bf16 %v4638_v28, %v4637_v27  ;;  %v375_v31 = vld [vmem:[%s6275_s23 + $0x31] sm:$0xff]  ;;  %v5736_v2 = vld [vmem:[#allocation7 + $0x1c0] sm:$0xff]  }
  0xa8   : > { %v6356_v32 = vpack.c.bf16 %v375_v31, %v374_v29  ;;  %v5730_v33 = vld [vmem:[#allocation7 + $0x148] sm:$0xff]   ;;  %v337_v36 = vld [vmem:[%s6275_s23 + $0x50] sm:$0xff] }
  0xa9   : > { %5010 = vmatpush3.bf16.msra.mxu1 %v5715_v61  ;;  %v5731_v34 = vld [vmem:[#allocation7 + $0x108] sm:$0xff]   ;;  %v377_v42 = vld [vmem:[%s6275_s23 + $0x51] sm:$0xff] }
  0xaa   : > { %5011 = vmatprep.subr.bf16.mxu1 %v5718_v0  ;;  %4938 = vmatpush3.bf16.msra.mxu0 %v5721_v3  ;;  %v336_v35 = vld [vmem:[%s6275_s23 + $0x48] sm:$0xff]  ;;  %v5732_v44 = vld [vmem:[#allocation7 + $0x150] sm:$0xff]   ;;  %v5737_v3 = vld [vmem:[#allocation7 + $0x180] sm:$0xff]  }
  0xab   : > { %4939 = vmatprep.subr.bf16.mxu0 %v5724_v6  ;;  %v6361_v37 = vpack.c.bf16 %v337_v36, %v336_v35  ;;  %v4639_v38 = vld [vmem:[%s6275_s23 + $0x67] sm:$0xff]  ;;  %v4640_v39 = vld [vmem:[%s6275_s23 + $0x6f] sm:$0xff] }
  0xac   : > { %v376_v40 = vld [vmem:[%s6275_s23 + $0x49] sm:$0xff]  ;;  %v6366_v41 = vpack.c.bf16 %v4640_v39, %v4639_v38  ;;  %v379_v53 = vld [vmem:[%s6275_s23 + $0x71] sm:$0xff] }
  0xad   : > { %5012 = vmatpush3.bf16.msra.mxu1 %v5719_v1  ;;  %v6369_v43 = vpack.c.bf16 %v377_v42, %v376_v40  ;;  %v5733_v45 = vld [vmem:[#allocation7 + $0x110] sm:$0xff]   ;;  %v338_v46 = vld [vmem:[%s6275_s23 + $0x68] sm:$0xff] }
  0xae   : > { %5013 = vmatprep.subr.bf16.mxu1 %v5722_v4  ;;  %4940 = vmatpush3.bf16.msra.mxu0 %v5725_v7  ;;  %v339_v47 = vld [vmem:[%s6275_s23 + $0x70] sm:$0xff]  ;;  %v4641_v49 = vld [vmem:[%s6275_s23 + $0x87] sm:$0xff] }
  0xaf   : > { %5077 = vmatprep.subr.bf16.mxu0 %v5728_v16  ;;  %v6374_v48 = vpack.c.bf16 %v339_v47, %v338_v46  ;;  %v4642_v50 = vld [vmem:[%s6275_s23 + $0x8f] sm:$0xff]  ;;  %v4643_v60 = vld [vmem:[%s6275_s23 + $0xa7] sm:$0xff]  ;;  %v5748_v47 = vld [vmem:[#allocation7 + $0x1d8] sm:$0xff]  }
  0xb0   : > { %v378_v51 = vld [vmem:[%s6275_s23 + $0x69] sm:$0xff]  ;;  %v6379_v52 = vpack.c.bf16 %v4642_v50, %v4641_v49  ;;  %v381_v0 = vld [vmem:[%s6275_s23 + $0x91] sm:$0xff]  ;;  %v5738_v7 = vld [vmem:[#allocation7 + $0x160] sm:$0xff]  }
  0xb1   : > { %5014 = vmatpush3.bf16.msra.mxu1 %v5723_v5  ;;  %1360 = vmatmul.mubr.bf16.vlgmr.msra.gmra.mrb[0].mxu0 %v312_v15  ;;  %v6383_v54 = vpack.c.bf16 %v379_v53, %v378_v51  ;;  %v340_v56 = vld [vmem:[%s6275_s23 + $0x88] sm:$0xff]  ;;  %v341_v57 = vld [vmem:[%s6275_s23 + $0x90] sm:$0xff]  ;;  %v5749_v53 = vld [vmem:[#allocation7 + $0x198] sm:$0xff]  }
  0xb2   : > { %5015 = vmatprep.subr.bf16.mxu1 %v5726_v8  ;;  %5078 = vmatpush3.bf16.msra.mxu0 %v5729_v20  ;;  %v6388_v58 = vpack.c.bf16 %v341_v57, %v340_v56  ;;  %v4644_v61 = vld [vmem:[%s6275_s23 + $0xaf] sm:$0xff]  ;;  %v4645_v8 = vld [vmem:[%s6275_s23 + $0xc7] sm:$0xff] }
  0xb3   : > { %1367 = vmatprep.mubr.bf16.mxu0 %v6347_v26  ;;  %5079 = vmatprep.subr.bf16.mxu0 %v5730_v33  ;;  %v380_v62 = vld [vmem:[%s6275_s23 + $0x89] sm:$0xff]  ;;  %v6393_v63 = vpack.c.bf16 %v4644_v61, %v4643_v60  ;;  %v383_v13 = vld [vmem:[%s6275_s23 + $0xb1] sm:$0xff] }
  0xb4   : > { %v6397_v1 = vpack.c.bf16 %v381_v0, %v380_v62  ;;  %v342_v4 = vld [vmem:[%s6275_s23 + $0xa8] sm:$0xff]  ;;  %v343_v5 = vld [vmem:[%s6275_s23 + $0xb0] sm:$0xff]  ;;  %v5750_v62 = vld [vmem:[#allocation7 + $0x1e0] sm:$0xff]  }
  0xb5   : > { %5016 = vmatpush3.bf16.msra.mxu1 %v5727_v12  ;;  %v6402_v6 = vpack.c.bf16 %v343_v5, %v342_v4  ;;  %v4646_v9 = vld [vmem:[%s6275_s23 + $0xcf] sm:$0xff]  ;;  %v4647_v20 = vld [vmem:[%s6275_s23 + $0xe7] sm:$0xff] }
  0xb6   : > { %5080 = vmatpush3.bf16.msra.mxu0 %v5731_v34  ;;  %5153 = vmatprep.subr.bf16.mxu1 %v5736_v2  ;;  %v6407_v10 = vpack.c.bf16 %v4646_v9, %v4645_v8  ;;  %v382_v12 = vld [vmem:[%s6275_s23 + $0xa9] sm:$0xff]  ;;  %v385_v24 = vld [vmem:[%s6275_s23 + $0xd1] sm:$0xff]  ;;  %v5751_v0 = vld [vmem:[#allocation7 + $0x1a0] sm:$0xff]  }
  0xb7   : > { %5081 = vmatprep.subr.bf16.mxu0 %v5732_v44  ;;  %v6412_v14 = vpack.c.bf16 %v383_v13, %v382_v12  ;;  %v5740_v15 = vld [vmem:[#allocation7 + $0x1c8] sm:$0xff]   ;;  %v345_v17 = vld [vmem:[%s6275_s23 + $0xd0] sm:$0xff]  ;;  %v5752_v2 = vld [vmem:[#allocation7 + $0x178] sm:$0xff]  }
  0xb8   : > { %1473 = vmatmul.mubr.bf16.vlgmr.msra.gmra.mrb[0].mxu1 %v392_v25  ;;  %v344_v16 = vld [vmem:[%s6275_s23 + $0xc8] sm:$0xff]  ;;  %v347_v31 = vld [vmem:[%s6275_s23 + $0xf0] sm:$0xff]  ;;  %v5754_v8 = vld [vmem:[#allocation7 + $0x138] sm:$0xff]  }
  0xb9   : > { %1480 = vmatprep.mubr.bf16.mxu1 %v6352_v30  ;;  %1368 = vmatmul.mubr.bf16.gmra.mrb[4].mxu0 %v433_v19  ;;  %v6416_v18 = vpack.c.bf16 %v345_v17, %v344_v16  ;;  %v5741_v19 = vld [vmem:[#allocation7 + $0x188] sm:$0xff]   ;;  %v5744_v34 = vld [vmem:[#allocation7 + $0x1d0] sm:$0xff]  }
  0xba   : > { %1375 = vmatprep.mubr.bf16.mxu0 %v6361_v37  ;;  %5082 = vmatpush3.bf16.msra.mxu0 %v5733_v45  ;;  %v4648_v21 = vld [vmem:[%s6275_s23 + $0xef] sm:$0xff]  ;;  %v4649_v35 = vld [vmem:[%s6275_s23 + $0x107] sm:$0xff] }
  0xbb   : > { %5083 = vmatprep.subr.bf16.mxu0 %v5734_v55  ;;  %5154 = vmatpush3.bf16.msra.mxu1 %v5737_v3  ;;  %v384_v22 = vld [vmem:[%s6275_s23 + $0xc9] sm:$0xff]  ;;  %v6423_v23 = vpack.c.bf16 %v4648_v21, %v4647_v20  ;;  %v387_v42 = vld [vmem:[%s6275_s23 + $0xf1] sm:$0xff] }
  0xbc   : > { %5155 = vmatprep.subr.bf16.mxu1 %v5740_v15  ;;  %v6426_v25 = vpack.c.bf16 %v385_v24, %v384_v22  ;;  %v5742_v27 = vld [vmem:[#allocation7 + $0x168] sm:$0xff]   ;;  %v5745_v39 = vld [vmem:[#allocation7 + $0x190] sm:$0xff]   ;;  %v5758_v21 = vld [vmem:[#allocation7 + $0x1f8] sm:$0xff]  }
  0xbd   : > { %v5743_v28 = vld [vmem:[#allocation7 + $0x128] sm:$0xff]   ;;  %v5746_v45 = vld [vmem:[#allocation7 + $0x170] sm:$0xff]   ;;  %v5759_v22 = vld [vmem:[#allocation7 + $0x1b8] sm:$0xff]  }
  0xbe   : > { %5084 = vmatpush3.bf16.msra.mxu0 %v5735_v59  ;;  %v346_v29 = vld [vmem:[%s6275_s23 + $0xe8] sm:$0xff]  ;;  %v5747_v46 = vld [vmem:[#allocation7 + $0x130] sm:$0xff]   ;;  %v5760_v24 = vld [vmem:[#allocation7 + $0x200] sm:$0xff]  }
  0xbf   : > { %5085 = vmatprep.subr.bf16.mxu0 %v5738_v7  ;;  %5156 = vmatpush3.bf16.msra.mxu1 %v5741_v19  ;;  %v6431_v33 = vpack.c.bf16 %v347_v31, %v346_v29  ;;  %v4650_v36 = vld [vmem:[%s6275_s23 + $0x10f] sm:$0xff]  ;;  %v4651_v55 = vld [vmem:[%s6275_s23 + $0x127] sm:$0xff] }
  0xc0   : > { %1481 = vmatmul.mubr.bf16.gmra.mrb[4].mxu1 %v6356_v32  ;;  %5157 = vmatprep.subr.bf16.mxu1 %v5744_v34  ;;  %v6436_v38 = vpack.c.bf16 %v4650_v36, %v4649_v35  ;;  %v386_v40 = vld [vmem:[%s6275_s23 + $0xe9] sm:$0xff]  ;;  %v389_v60 = vld [vmem:[%s6275_s23 + $0x111] sm:$0xff] }
  0xc1   : > { %1488 = vmatprep.mubr.bf16.mxu1 %v6366_v41  ;;  %1376 = vmatmul.mubr.bf16.gmra.mrb[8].mxu0 %v6352_v30  ;;  %v6441_v44 = vpack.c.bf16 %v387_v42, %v386_v40  ;;  %v348_v49 = vld [vmem:[%s6275_s23 + $0x108] sm:$0xff]  ;;  %v349_v50 = vld [vmem:[%s6275_s23 + $0x110] sm:$0xff] }
  0xc2   : > { %1383 = vmatprep.mubr.bf16.mxu0 %v6374_v48  ;;  %5086 = vmatpush3.bf16.msra.mxu0 %v5739_v11  ;;  %v6446_v51 = vpack.c.bf16 %v349_v50, %v348_v49  ;;  %v4652_v56 = vld [vmem:[%s6275_s23 + $0x12f] sm:$0xff]  ;;  %v4653_v11 = vld [vmem:[%s6275_s23 + $0x147] sm:$0xff] }
  0xc3   : > { %5087 = vmatprep.subr.bf16.mxu0 %v5742_v27  ;;  %5158 = vmatpush3.bf16.msra.mxu1 %v5745_v39  ;;  %v388_v57 = vld [vmem:[%s6275_s23 + $0x109] sm:$0xff]  ;;  %v6453_v59 = vpack.c.bf16 %v4652_v56, %v4651_v55  ;;  %v391_v16 = vld [vmem:[%s6275_s23 + $0x131] sm:$0xff] }
  0xc4   : > { %5159 = vmatprep.subr.bf16.mxu1 %v5748_v47  ;;  %v6456_v61 = vpack.c.bf16 %v389_v60, %v388_v57  ;;  %v5753_v3 = vld [vmem:[#allocation7 + $0x1e8] sm:$0xff]   ;;  %v351_v5 = vld [vmem:[%s6275_s23 + $0x130] sm:$0xff] }
  0xc5   : > { %v350_v4 = vld [vmem:[%s6275_s23 + $0x128] sm:$0xff]  ;;  %v5756_v19 = vld [vmem:[#allocation7 + $0x1f0] sm:$0xff]  }
  0xc6   : > { %5088 = vmatpush3.bf16.msra.mxu0 %v5743_v28  ;;  %v6462_v7 = vpack.c.bf16 %v351_v5, %v350_v4  ;;  %v5755_v9 = vld [vmem:[#allocation7 + $0x1a8] sm:$0xff]   ;;  %v5757_v20 = vld [vmem:[#allocation7 + $0x1b0] sm:$0xff]  }
  0xc7   : > { %5089 = vmatprep.subr.bf16.mxu0 %v5746_v45  ;;  %5160 = vmatpush3.bf16.msra.mxu1 %v5749_v53  ;;  %v4654_v12 = vld [vmem:[%s6275_s23 + $0x14f] sm:$0xff]  ;;  %v6495_v40 = vld [vmem:[%s6275_s23 + $0x167] sm:$0xff] }
  0xc8   : > { %1489 = vmatmul.mubr.bf16.gmra.mrb[8].mxu1 %v6369_v43  ;;  %5161 = vmatprep.subr.bf16.mxu1 %v5750_v62  ;;  %v390_v13 = vld [vmem:[%s6275_s23 + $0x129] sm:$0xff]  ;;  %v6469_v15 = vpack.c.bf16 %v4654_v12, %v4653_v11  ;;  %v4694_v34 = vld [vmem:[%s6275_s23 + $0x151] sm:$0xff] }
  0xc9   : > { %1496 = vmatprep.mubr.bf16.mxu1 %v6379_v52  ;;  %1384 = vmatmul.mubr.bf16.gmra.mrb[12].mxu0 %v6366_v41  ;;  %v6472_v17 = vpack.c.bf16 %v391_v16, %v390_v13  ;;  %v4731_v27 = vld [vmem:[%s6275_s23 + $0x148] sm:$0xff]  ;;  %v4732_v28 = vld [vmem:[%s6275_s23 + $0x150] sm:$0xff] }
  0xca   : > { %1391 = vmatprep.mubr.bf16.mxu0 %v6388_v58  ;;  %5090 = vmatpush3.bf16.msra.mxu0 %v5747_v46  ;;  %v6482_v29 = vpack.c.bf16 %v4732_v28, %v4731_v27  ;;  %v4693_v31 = vld [vmem:[%s6275_s23 + $0x149] sm:$0xff]  ;;  %v6509_v49 = vld [vmem:[%s6275_s23 + $0x51] sm:$0xff] }
  0xcb   : > { %5162 = vmatpush3.bf16.msra.mxu1 %v5751_v0  ;;  %5091 = vmatprep.subr.bf16.mxu0 %v5752_v2  ;;  %v6487_v35 = vld [vmem:[%s6275_s23 + $0x168] sm:$0xff]  ;;  %v6489_v36 = vpack.c.bf16 %v4694_v34, %v4693_v31  ;;  %v6492_v39 = vld [vmem:[%s6275_s23 + $0x170] sm:$0xff] }
  0xcc   : > { %5163 = vmatprep.subr.bf16.mxu1 %v5753_v3  ;;  %v6498_v42 = vld [vmem:[%s6275_s23 + $0x16f] sm:$0xff]  ;;  %v603_v45 = vpack.c.bf16 %v6492_v39, %v6487_v35 }
  0xcd   : > { %v563_v46 = vpack.c.bf16 %v6498_v42, %v6495_v40  ;;  %v6506_v47 = vld [vmem:[%s6275_s23 + $0x49] sm:$0xff]  ;;  %v6518_v55 = vld [vmem:[%s6275_s23 + $0x71] sm:$0xff] }
  0xce   : > { %5092 = vmatpush3.bf16.msra.mxu0 %v5754_v8  ;;  %v6512_v50 = vld [vmem:[%s6275_s23 + $0x69] sm:$0xff]  ;;  %v634_v53 = vpack.c.bf16 %v6509_v49, %v6506_v47  ;;  %v6524_v57 = vld [vmem:[%s6275_s23 + $0x91] sm:$0xff] }
  0xcf   : > { %5164 = vmatpush3.bf16.msra.mxu1 %v5755_v9  ;;  %5519 = vmatprep.subr.bf16.mxu0 %v5760_v24  ;;  %v6521_v56 = vld [vmem:[%s6275_s23 + $0x89] sm:$0xff]  ;;  %v635_v60 = vpack.c.bf16 %v6518_v55, %v6512_v50  ;;  %v6534_v2 = vld [vmem:[%s6275_s23 + $0x171] sm:$0xff] }
  0xd0   : > { %1497 = vmatmul.mubr.bf16.gmra.mrb[12].mxu1 %v6383_v54  ;;  %5165 = vmatprep.subr.bf16.mxu1 %v5756_v19  ;;  %v636_v62 = vpack.c.bf16 %v6524_v57, %v6521_v56  ;;  %v6531_v0 = vld [vmem:[%s6275_s23 + $0x169] sm:$0xff]  ;;  %v5763_v8 = vld [vmem:[#allocation7 + $0x218] sm:$0xff]  }
  0xd1   : > { %1504 = vmatprep.mubr.bf16.mxu1 %v6393_v63  ;;  %1392 = vmatmul.mubr.bf16.gmra.mrb[16].mxu0 %v6379_v52  ;;  %v643_v3 = vpack.c.bf16 %v6534_v2, %v6531_v0  ;;  %v5761_v4 = vld [vmem:[#allocation7 + $0x208] sm:$0xff]   ;;  %v5762_v5 = vld [vmem:[#allocation7 + $0x210] sm:$0xff]  }
  0xd2   : > { %1399 = vmatprep.mubr.bf16.mxu0 %v6402_v6 }
  0xd3   : > { %5166 = vmatpush3.bf16.msra.mxu1 %v5757_v20 }
  0xd4   : > { %5167 = vmatprep.subr.bf16.mxu1 %v5758_v21 }
  0xd7   : > { %5168 = vmatpush3.bf16.msra.mxu1 %v5759_v22 }
  0xd8   : > { %1505 = vmatmul.mubr.bf16.gmra.mrb[16].mxu1 %v6397_v1 }
  0xd9   : > { %1512 = vmatprep.mubr.bf16.mxu1 %v6407_v10  ;;  %1400 = vmatmul.mubr.bf16.gmra.mrb[20].mxu0 %v6393_v63 }
  0xda   : > { %1407 = vmatprep.mubr.bf16.mxu0 %v6416_v18 }
  0xe0   : > { %1513 = vmatmul.mubr.bf16.gmra.mrb[20].mxu1 %v6412_v14 }
  0xe1   : > { %1520 = vmatprep.mubr.bf16.mxu1 %v6423_v23  ;;  %1408 = vmatmul.mubr.bf16.gmra.mrb[24].mxu0 %v6407_v10 }
  0xe2   : > { %1415 = vmatprep.mubr.bf16.mxu0 %v6431_v33 }
  0xe8   : > { %1521 = vmatmul.mubr.bf16.gmra.mrb[24].mxu1 %v6426_v25 }
  0xe9   : > { %1528 = vmatprep.mubr.bf16.mxu1 %v6436_v38  ;;  %1416 = vmatmul.mubr.bf16.gmra.mrb[28].mxu0 %v6423_v23 }
  0xea   : > { %1423 = vmatprep.mubr.bf16.mxu0 %v6446_v51 }
  0xf0   : > { %1529 = vmatmul.mubr.bf16.gmra.mrb[28].mxu1 %v6441_v44 }
  0xf1   : > { %1536 = vmatprep.mubr.bf16.mxu1 %v6453_v59  ;;  %1424 = vmatmul.mubr.bf16.gmra.mrb[32].mxu0 %v6436_v38 }
  0xf2   : > { %1431 = vmatprep.mubr.bf16.mxu0 %v6462_v7 }
  0xf8   : > { %1537 = vmatmul.mubr.bf16.gmra.mrb[32].mxu1 %v6456_v61 }
  0xf9   : > { %1544 = vmatprep.mubr.bf16.mxu1 %v6469_v15  ;;  %1432 = vmatmul.mubr.bf16.gmra.mrb[36].mxu0 %v6453_v59 }
  0xfa   : > { %1585 = vmatprep.mubr.bf16.mxu0 %v6356_v32  ;;  %v5764_v32 = vld [vmem:[#allocation7 + $0x220] sm:$0xff]  }
 0x100   : > { %1545 = vmatmul.mubr.bf16.gmra.mrb[36].mxu1 %v6472_v17 }
 0x101   : > { %1698 = vmatprep.mubr.bf16.mxu1 %v6361_v37  ;;  %1586 = vmatmul.mubr.bf16.vlgmr.msra.gmra.mrb[40].mxu0 %v6347_v26  ;;  %v5765_v26 = vld [vmem:[#allocation7 + $0x228] sm:$0xff]  }
 0x102   : > { %5520 = vmatpush3.bf16.msra.mxu0 %v5760_v24  ;;  %1593 = vmatprep.mubr.bf16.mxu0 %v6369_v43  ;;  %v6609_v43 = vld [vmem:[%s7050_s2] ss:$0 sm:$0xff] }
 0x103   : > { %5521 = vmatprep.subr.bf16.mxu0 %v5761_v4 }
 0x106   : > { %5522 = vmatpush3.bf16.msra.mxu0 %v5761_v4 }
 0x107   : > { %5523 = vmatprep.subr.bf16.mxu0 %v5762_v5 }
 0x108   : > { %1699 = vmatmul.mubr.bf16.vlgmr.msra.gmra.mrb[40].mxu1 %v6352_v30  ;;  %v5766_v30 = vld [vmem:[#allocation7 + $0x230] sm:$0xff]  }
 0x109   : > { %1706 = vmatprep.mubr.bf16.mxu1 %v6374_v48  ;;  %1594 = vmatmul.mubr.bf16.gmra.mrb[44].mxu0 %v6361_v37  ;;  %v5767_v37 = vld [vmem:[#allocation7 + $0x238] sm:$0xff]  }
 0x10a   : > { %1601 = vmatprep.mubr.bf16.mxu0 %v6383_v54  ;;  %5524 = vmatpush3.bf16.msra.mxu0 %v5762_v5 }
 0x10b   : > { %5525 = vmatprep.subr.bf16.mxu0 %v5763_v8 }
 0x10e   : > { %5526 = vmatpush3.bf16.msra.mxu0 %v5763_v8 }
 0x10f   : > { %5527 = vmatprep.subr.bf16.mxu0 %v5764_v32 }
 0x110   : > { %1707 = vmatmul.mubr.bf16.gmra.mrb[44].mxu1 %v6366_v41 }
 0x111   : > { %1714 = vmatprep.mubr.bf16.mxu1 %v6388_v58  ;;  %1602 = vmatmul.mubr.bf16.gmra.mrb[48].mxu0 %v6374_v48 }
 0x112   : > { %1609 = vmatprep.mubr.bf16.mxu0 %v6397_v1  ;;  %5528 = vmatpush3.bf16.msra.mxu0 %v5764_v32 }
 0x113   : > { %5529 = vmatprep.subr.bf16.mxu0 %v5765_v26 }
 0x116   : > { %5530 = vmatpush3.bf16.msra.mxu0 %v5765_v26 }
 0x117   : > { %5531 = vmatprep.subr.bf16.mxu0 %v5766_v30 }
 0x118   : > { %1715 = vmatmul.mubr.bf16.gmra.mrb[48].mxu1 %v6379_v52 }
 0x119   : > { %1722 = vmatprep.mubr.bf16.mxu1 %v6402_v6  ;;  %1610 = vmatmul.mubr.bf16.gmra.mrb[52].mxu0 %v6388_v58 }
 0x11a   : > { %1617 = vmatprep.mubr.bf16.mxu0 %v6412_v14  ;;  %5532 = vmatpush3.bf16.msra.mxu0 %v5766_v30 }
 0x11b   : > { %5533 = vmatprep.subr.bf16.mxu0 %v5767_v37 }
 0x11e   : > { %5534 = vmatpush3.bf16.msra.mxu0 %v5767_v37 }
 0x120   : > { %1723 = vmatmul.mubr.bf16.gmra.mrb[52].mxu1 %v6393_v63 }
 0x121   : > { %1730 = vmatprep.mubr.bf16.mxu1 %v6416_v18  ;;  %1618 = vmatmul.mubr.bf16.gmra.mrb[56].mxu0 %v6402_v6 }
 0x122   : > { %1625 = vmatprep.mubr.bf16.mxu0 %v6426_v25 }
 0x128   : > { %1731 = vmatmul.mubr.bf16.gmra.mrb[56].mxu1 %v6407_v10 }
 0x129   : > { %1738 = vmatprep.mubr.bf16.mxu1 %v6431_v33  ;;  %1626 = vmatmul.mubr.bf16.gmra.mrb[60].mxu0 %v6416_v18 }
 0x12a   : > { %1633 = vmatprep.mubr.bf16.mxu0 %v6441_v44 }
 0x130   : > { %1739 = vmatmul.mubr.bf16.gmra.mrb[60].mxu1 %v6423_v23 }
 0x131   : > { %1746 = vmatprep.mubr.bf16.mxu1 %v6446_v51  ;;  %1634 = vmatmul.mubr.bf16.gmra.mrb[64].mxu0 %v6431_v33 }
 0x132   : > { %1641 = vmatprep.mubr.bf16.mxu0 %v6456_v61 }
 0x138   : > { %1747 = vmatmul.mubr.bf16.gmra.mrb[64].mxu1 %v6436_v38 }
 0x139   : > { %1754 = vmatprep.mubr.bf16.mxu1 %v6462_v7  ;;  %1642 = vmatmul.mubr.bf16.gmra.mrb[68].mxu0 %v6446_v51 }
 0x13a   : > { %1649 = vmatprep.mubr.bf16.mxu0 %v6472_v17 }
 0x140   : > { %1755 = vmatmul.mubr.bf16.gmra.mrb[68].mxu1 %v6453_v59 }
 0x141   : > { %1762 = vmatprep.mubr.bf16.mxu1 %v6482_v29  ;;  %1650 = vmatmul.mubr.bf16.gmra.mrb[72].mxu0 %v6462_v7 }
 0x142   : > { %1657 = vmatprep.mubr.bf16.mxu0 %v6489_v36 }
 0x148   : > { %1763 = vmatmul.mubr.bf16.gmra.mrb[72].mxu1 %v6469_v15 }
 0x149   : > { %1770 = vmatprep.mubr.bf16.mxu1 %v603_v45  ;;  %1658 = vmatmul.mubr.bf16.gmra.mrb[76].mxu0 %v6482_v29 }
 0x14a   : > { %5535 = vmatprep.mubr.bf16.mxu0 %v634_v53 }
 0x150   : > { %1771 = vmatmul.mubr.bf16.gmra.mrb[76].mxu1 %v563_v46 }
 0x151   : > { %5536 = vmatmul.mubr.bf16.vlgmr.msra.gmra.mrb[80].mxu0 %v635_v60 }
 0x152   : > { %5539 = vmatprep.mubr.bf16.mxu0 %v636_v62 }
 0x159   : > { %5540 = vmatmul.mubr.bf16.gmra.mrb[84].mxu0 %v6412_v14 }
 0x15a   : > { %5543 = vmatprep.mubr.bf16.mxu0 %v6426_v25 }
 0x161   : > { %5544 = vmatmul.mubr.bf16.gmra.mrb[88].mxu0 %v6441_v44 }
 0x162   : > { %5547 = vmatprep.mubr.bf16.mxu0 %v6456_v61 }
 0x169   : > { %5548 = vmatmul.mubr.bf16.gmra.mrb[92].mxu0 %v6472_v17 }
 0x16a   : > { %5551 = vmatprep.mubr.bf16.mxu0 %v6489_v36 }
 0x171   : > { %5552 = vmatmul.mubr.bf16.gmra.mrb[96].mxu0 %v643_v3 }
 0x184   : > { %v4941_v41 = vpop.f32.mrb[0].mxu0 }
 0x185   : > { %v4942_v48 = vpop.f32.mrb[1].mxu0 }
 0x186   : > { %v4943_v52 = vadd.f32 %v4942_v48, %v4941_v41  ;;  %v4944_v54 = vpop.f32.mrb[2].mxu0 }
 0x187   : > { %v4945_v58 = vpop.f32.mrb[3].mxu0 }
 0x188   : > { %v1362_v63 = vadd.f32 %v4943_v52, %v6609_v43  ;;  %v4946_v6 = vadd.f32 %v4945_v58, %v4944_v54 }
 0x18a   : > { %v1365_v14 = vadd.f32 %v4946_v6, %v6609_v43 }
 0x18b   : > { %v5017_v1 = vpop.f32.mrb[0].mxu1 }
 0x18c   : > { %v5018_v10 = vpop.f32.mrb[1].mxu1  ;;  %v4947_v44 = vpop.f32.mrb[4].mxu0 }
 0x18d   : > { %v5019_v18 = vadd.f32 %v5018_v10, %v5017_v1  ;;  %v5020_v23 = vpop.f32.mrb[2].mxu1  ;;  %v4948_v51 = vpop.f32.mrb[5].mxu0 }
 0x18e   : > { %v5021_v25 = vpop.f32.mrb[3].mxu1  ;;  %v4949_v61 = vadd.f32 %v4948_v51, %v4947_v44  ;;  %v4950_v7 = vpop.f32.mrb[6].mxu0 }
 0x18f   : > { %v6613_v33 = vadd.f32 %v5019_v18, %v1362_v63  ;;  %v5022_v38 = vadd.f32 %v5021_v25, %v5020_v23  ;;  %v4951_v9 = vpop.f32.mrb[7].mxu0 }
 0x190   : > { %v1370_v11 = vadd.f32 %v4949_v61, %v6609_v43  ;;  %v4952_v13 = vadd.f32 %v4951_v9, %v4950_v7 }
 0x191   : > { %v6615_v59 = vadd.f32 %v5022_v38, %v1365_v14 }
 0x192   : > { %v1373_v16 = vadd.f32 %v4952_v13, %v6609_v43 }
 0x193   : > { %v5023_v12 = vpop.f32.mrb[4].mxu1 }
 0x194   : > { %v5024_v15 = vpop.f32.mrb[5].mxu1  ;;  %v4953_v24 = vpop.f32.mrb[8].mxu0 }
 0x195   : > { %v5025_v17 = vadd.f32 %v5024_v15, %v5023_v12  ;;  %v5026_v19 = vpop.f32.mrb[6].mxu1  ;;  %v4954_v27 = vpop.f32.mrb[9].mxu0 }
 0x196   : > { %v5027_v20 = vpop.f32.mrb[7].mxu1  ;;  %v4955_v29 = vadd.f32 %v4954_v27, %v4953_v24  ;;  %v4956_v31 = vpop.f32.mrb[10].mxu0 }
 0x197   : > { %v6619_v21 = vadd.f32 %v5025_v17, %v1370_v11  ;;  %v5028_v22 = vadd.f32 %v5027_v20, %v5026_v19  ;;  %v4957_v34 = vpop.f32.mrb[11].mxu0 }
 0x198   : > { %v1378_v35 = vadd.f32 %v4955_v29, %v6609_v43  ;;  %v4958_v39 = vadd.f32 %v4957_v34, %v4956_v31 }
 0x199   : > { %v6621_v28 = vadd.f32 %v5028_v22, %v1373_v16 }
 0x19a   : > { %v1381_v42 = vadd.f32 %v4958_v39, %v6609_v43 }
 0x19b   : > { %v5029_v36 = vpop.f32.mrb[8].mxu1 }
 0x19c   : > { %v5030_v40 = vpop.f32.mrb[9].mxu1  ;;  %v4959_v53 = vpop.f32.mrb[12].mxu0 }
 0x19d   : > { %v5031_v45 = vadd.f32 %v5030_v40, %v5029_v36  ;;  %v5032_v46 = vpop.f32.mrb[10].mxu1  ;;  %v4960_v55 = vpop.f32.mrb[13].mxu0 }
 0x19e   : > { %v5033_v47 = vpop.f32.mrb[11].mxu1  ;;  %v4961_v57 = vadd.f32 %v4960_v55, %v4959_v53  ;;  %v4962_v60 = vpop.f32.mrb[14].mxu0 }
 0x19f   : > { %v6625_v49 = vadd.f32 %v5031_v45, %v1378_v35  ;;  %v5034_v50 = vadd.f32 %v5033_v47, %v5032_v46  ;;  %v4963_v62 = vpop.f32.mrb[15].mxu0 }
 0x1a0   : > { %v1386_v0 = vadd.f32 %v4961_v57, %v6609_v43  ;;  %v4964_v3 = vadd.f32 %v4963_v62, %v4962_v60 }
 0x1a1   : > { %v6627_v56 = vadd.f32 %v5034_v50, %v1381_v42 }
 0x1a2   : > { %v1389_v5 = vadd.f32 %v4964_v3, %v6609_v43 }
 0x1a3   : > { %v5035_v2 = vpop.f32.mrb[12].mxu1 }
 0x1a4   : > { %v5036_v4 = vpop.f32.mrb[13].mxu1  ;;  %v4965_v41 = vpop.f32.mrb[16].mxu0 }
 0x1a5   : > { %v5037_v8 = vadd.f32 %v5036_v4, %v5035_v2  ;;  %v5038_v32 = vpop.f32.mrb[14].mxu1  ;;  %v4966_v48 = vpop.f32.mrb[17].mxu0 }
 0x1a6   : > { %v5039_v26 = vpop.f32.mrb[15].mxu1  ;;  %v4967_v54 = vadd.f32 %v4966_v48, %v4965_v41  ;;  %v4968_v58 = vpop.f32.mrb[18].mxu0 }
 0x1a7   : > { %v6631_v30 = vadd.f32 %v5037_v8, %v1386_v0  ;;  %v5040_v37 = vadd.f32 %v5039_v26, %v5038_v32  ;;  %v4969_v63 = vpop.f32.mrb[19].mxu0 }
 0x1a8   : > { %v1394_v1 = vadd.f32 %v4967_v54, %v6609_v43  ;;  %v4970_v10 = vadd.f32 %v4969_v63, %v4968_v58 }
 0x1a9   : > { %v6633_v52 = vadd.f32 %v5040_v37, %v1389_v5 }
 0x1aa   : > { %v1397_v18 = vadd.f32 %v4970_v10, %v6609_v43 }
 0x1ab   : > { %v5041_v6 = vpop.f32.mrb[16].mxu1 }
 0x1ac   : > { %v5042_v14 = vpop.f32.mrb[17].mxu1  ;;  %v4971_v61 = vpop.f32.mrb[20].mxu0 }
 0x1ad   : > { %v5043_v23 = vadd.f32 %v5042_v14, %v5041_v6  ;;  %v5044_v25 = vpop.f32.mrb[18].mxu1  ;;  %v4972_v7 = vpop.f32.mrb[21].mxu0 }
 0x1ae   : > { %v5045_v38 = vpop.f32.mrb[19].mxu1  ;;  %v4973_v11 = vadd.f32 %v4972_v7, %v4971_v61  ;;  %v4974_v12 = vpop.f32.mrb[22].mxu0 }
 0x1af   : > { %v6637_v44 = vadd.f32 %v5043_v23, %v1394_v1  ;;  %v5046_v51 = vadd.f32 %v5045_v38, %v5044_v25  ;;  %v4975_v13 = vpop.f32.mrb[23].mxu0 }
 0x1b0   : > { %v1402_v15 = vadd.f32 %v4973_v11, %v6609_v43  ;;  %v4976_v17 = vadd.f32 %v4975_v13, %v4974_v12 }
 0x1b1   : > { %v6639_v9 = vadd.f32 %v5046_v51, %v1397_v18 }
 0x1b2   : > { %v1405_v20 = vadd.f32 %v4976_v17, %v6609_v43 }
 0x1b3   : > { %v5047_v16 = vpop.f32.mrb[20].mxu1 }
 0x1b4   : > { %v5048_v19 = vpop.f32.mrb[21].mxu1  ;;  %v4977_v34 = vpop.f32.mrb[24].mxu0 }
 0x1b5   : > { %v5049_v22 = vadd.f32 %v5048_v19, %v5047_v16  ;;  %v5050_v24 = vpop.f32.mrb[22].mxu1  ;;  %v4978_v35 = vpop.f32.mrb[25].mxu0 }
 0x1b6   : > { %v5051_v27 = vpop.f32.mrb[23].mxu1  ;;  %v4979_v39 = vadd.f32 %v4978_v35, %v4977_v34  ;;  %v4980_v40 = vpop.f32.mrb[26].mxu0 }
 0x1b7   : > { %v6643_v29 = vadd.f32 %v5049_v22, %v1402_v15  ;;  %v5052_v31 = vadd.f32 %v5051_v27, %v5050_v24  ;;  %v4981_v42 = vpop.f32.mrb[27].mxu0 }
 0x1b8   : > { %v1410_v45 = vadd.f32 %v4979_v39, %v6609_v43  ;;  %v4982_v47 = vadd.f32 %v4981_v42, %v4980_v40 }
 0x1b9   : > { %v6645_v36 = vadd.f32 %v5052_v31, %v1405_v20 }
 0x1ba   : > { %v1413_v53 = vadd.f32 %v4982_v47, %v6609_v43 }
 0x1bb   : > { %v5053_v46 = vpop.f32.mrb[24].mxu1 }
 0x1bc   : > { %v5054_v50 = vpop.f32.mrb[25].mxu1  ;;  %v4983_v2 = vpop.f32.mrb[28].mxu0 }
 0x1bd   : > { %v5055_v55 = vadd.f32 %v5054_v50, %v5053_v46  ;;  %v5056_v57 = vpop.f32.mrb[26].mxu1  ;;  %v4984_v3 = vpop.f32.mrb[29].mxu0 }
 0x1be   : > { %v5057_v60 = vpop.f32.mrb[27].mxu1  ;;  %v4985_v5 = vadd.f32 %v4984_v3, %v4983_v2  ;;  %v4986_v8 = vpop.f32.mrb[30].mxu0 }
 0x1bf   : > { %v6649_v62 = vadd.f32 %v5055_v55, %v1410_v45  ;;  %v5058_v0 = vadd.f32 %v5057_v60, %v5056_v57  ;;  %v4987_v32 = vpop.f32.mrb[31].mxu0 }
 0x1c0   : > { %v1418_v26 = vadd.f32 %v4985_v5, %v6609_v43  ;;  %v4988_v41 = vadd.f32 %v4987_v32, %v4986_v8 }
 0x1c1   : > { %v6651_v4 = vadd.f32 %v5058_v0, %v1413_v53 }
 0x1c2   : > { %v1421_v54 = vadd.f32 %v4988_v41, %v6609_v43 }
 0x1c3   : > { %v5059_v37 = vpop.f32.mrb[28].mxu1 }
 0x1c4   : > { %v5060_v48 = vpop.f32.mrb[29].mxu1  ;;  %v4989_v14 = vpop.f32.mrb[32].mxu0 }
 0x1c5   : > { %v5061_v58 = vadd.f32 %v5060_v48, %v5059_v37  ;;  %v5062_v63 = vpop.f32.mrb[30].mxu1  ;;  %v4990_v18 = vpop.f32.mrb[33].mxu0 }
 0x1c6   : > { %v5063_v1 = vpop.f32.mrb[31].mxu1  ;;  %v4991_v25 = vadd.f32 %v4990_v18, %v4989_v14  ;;  %v4992_v38 = vpop.f32.mrb[34].mxu0 }
 0x1c7   : > { %v6655_v6 = vadd.f32 %v5061_v58, %v1418_v26  ;;  %v5064_v10 = vadd.f32 %v5063_v1, %v5062_v63  ;;  %v4993_v51 = vpop.f32.mrb[35].mxu0 }
 0x1c8   : > { %v1426_v61 = vadd.f32 %v4991_v25, %v6609_v43  ;;  %v4994_v11 = vadd.f32 %v4993_v51, %v4992_v38 }
 0x1c9   : > { %v6657_v23 = vadd.f32 %v5064_v10, %v1421_v54 }
 0x1ca   : > { %v1429_v13 = vadd.f32 %v4994_v11, %v6609_v43 }
 0x1cb   : > { %v5065_v7 = vpop.f32.mrb[32].mxu1 }
 0x1cc   : > { %v5066_v12 = vpop.f32.mrb[33].mxu1  ;;  %v4995_v22 = vpop.f32.mrb[36].mxu0 }
 0x1cd   : > { %v5067_v15 = vadd.f32 %v5066_v12, %v5065_v7  ;;  %v5068_v16 = vpop.f32.mrb[34].mxu1  ;;  %v4996_v24 = vpop.f32.mrb[37].mxu0 }
 0x1ce   : > { %v5069_v17 = vpop.f32.mrb[35].mxu1  ;;  %v4997_v31 = vadd.f32 %v4996_v24, %v4995_v22  ;;  %v4998_v34 = vpop.f32.mrb[38].mxu0 }
 0x1cf   : > { %v6661_v19 = vadd.f32 %v5067_v15, %v1426_v61  ;;  %v5070_v20 = vadd.f32 %v5069_v17, %v5068_v16  ;;  %v4999_v35 = vpop.f32.mrb[39].mxu0 }
 0x1d0   : > { %v1434_v39 = vadd.f32 %v4997_v31, %v6609_v43  ;;  %v5000_v42 = vadd.f32 %v4999_v35, %v4998_v34 }
 0x1d1   : > { %v6663_v27 = vadd.f32 %v5070_v20, %v1429_v13 }
 0x1d2   : > { %v1437_v46 = vadd.f32 %v5000_v42, %v6609_v43 }
 0x1d3   : > { %v5071_v40 = vpop.f32.mrb[36].mxu1 }
 0x1d4   : > { %v5072_v45 = vpop.f32.mrb[37].mxu1  ;;  %v5093_v60 = vpop.f32.mrb[40].mxu0 }
 0x1d5   : > { %v5073_v47 = vadd.f32 %v5072_v45, %v5071_v40  ;;  %v5074_v50 = vpop.f32.mrb[38].mxu1  ;;  %v5094_v0 = vpop.f32.mrb[41].mxu0 }
 0x1d6   : > { %v5075_v53 = vpop.f32.mrb[39].mxu1  ;;  %v5095_v3 = vadd.f32 %v5094_v0, %v5093_v60  ;;  %v5096_v5 = vpop.f32.mrb[42].mxu0 }
 0x1d7   : > { %v6667_v55 = vadd.f32 %v5073_v47, %v1434_v39  ;;  %v5076_v57 = vadd.f32 %v5075_v53, %v5074_v50  ;;  %v5097_v8 = vpop.f32.mrb[43].mxu0 }
 0x1d8   : > { %v1588_v32 = vadd.f32 %v5095_v3, %v6613_v33  ;;  %v5098_v37 = vadd.f32 %v5097_v8, %v5096_v5 }
 0x1d9   : > { %v6669_v2 = vadd.f32 %v5076_v57, %v1437_v46 }
 0x1da   : > { %v1591_v43 = vadd.f32 %v5098_v37, %v6615_v59 }
 0x1db   : > { %v5169_v26 = vpop.f32.mrb[40].mxu1 }
 0x1dc   : > { %v5170_v41 = vpop.f32.mrb[41].mxu1  ;;  %v5099_v1 = vpop.f32.mrb[44].mxu0 }
 0x1dd   : > { %v5171_v48 = vadd.f32 %v5170_v41, %v5169_v26  ;;  %v5172_v54 = vpop.f32.mrb[42].mxu1  ;;  %v5100_v14 = vpop.f32.mrb[45].mxu0 }
 0x1de   : > { %v5173_v58 = vpop.f32.mrb[43].mxu1  ;;  %v5101_v18 = vadd.f32 %v5100_v14, %v5099_v1  ;;  %v5102_v25 = vpop.f32.mrb[46].mxu0 }
 0x1df   : > { %v5174_v63 = vadd.f32 %v5173_v58, %v5172_v54  ;;  %v6673_v10 = vadd.f32 %v5171_v48, %v1588_v32  ;;  %v5103_v51 = vpop.f32.mrb[47].mxu0 }
 0x1e0   : > { %v1596_v33 = vadd.f32 %v5101_v18, %v6619_v21  ;;  %v5104_v7 = vadd.f32 %v5103_v51, %v5102_v25 }
 0x1e1   : > { %v6675_v38 = vadd.f32 %v5174_v63, %v1591_v43 }
 0x1e2   : > { %v1599_v59 = vadd.f32 %v5104_v7, %v6621_v28 }
 0x1e3   : > { %v5175_v61 = vpop.f32.mrb[44].mxu1 }
 0x1e4   : > { %v5176_v11 = vpop.f32.mrb[45].mxu1  ;;  %v5105_v17 = vpop.f32.mrb[48].mxu0 }
 0x1e5   : > { %v5177_v12 = vadd.f32 %v5176_v11, %v5175_v61  ;;  %v5178_v13 = vpop.f32.mrb[46].mxu1  ;;  %v5106_v22 = vpop.f32.mrb[49].mxu0 }
 0x1e6   : > { %v5179_v15 = vpop.f32.mrb[47].mxu1  ;;  %v5107_v24 = vadd.f32 %v5106_v22, %v5105_v17  ;;  %v5108_v31 = vpop.f32.mrb[50].mxu0 }
 0x1e7   : > { %v5180_v16 = vadd.f32 %v5179_v15, %v5178_v13  ;;  %v6679_v20 = vadd.f32 %v5177_v12, %v1596_v33  ;;  %v5109_v35 = vpop.f32.mrb[51].mxu0 }
 0x1e8   : > { %v1604_v21 = vadd.f32 %v5107_v24, %v6625_v49  ;;  %v5110_v40 = vadd.f32 %v5109_v35, %v5108_v31 }
 0x1e9   : > { %v6681_v34 = vadd.f32 %v5180_v16, %v1599_v59 }
 0x1ea   : > { %v1607_v28 = vadd.f32 %v5110_v40, %v6627_v56 }
 0x1eb   : > { %v5181_v39 = vpop.f32.mrb[48].mxu1 }
 0x1ec   : > { %v5182_v42 = vpop.f32.mrb[49].mxu1  ;;  %v5111_v53 = vpop.f32.mrb[52].mxu0 }
 0x1ed   : > { %v5183_v45 = vadd.f32 %v5182_v42, %v5181_v39  ;;  %v5184_v46 = vpop.f32.mrb[50].mxu1  ;;  %v5112_v60 = vpop.f32.mrb[53].mxu0 }
 0x1ee   : > { %v5185_v47 = vpop.f32.mrb[51].mxu1  ;;  %v5113_v0 = vadd.f32 %v5112_v60, %v5111_v53  ;;  %v5114_v3 = vpop.f32.mrb[54].mxu0 }
 0x1ef   : > { %v5186_v50 = vadd.f32 %v5185_v47, %v5184_v46  ;;  %v6685_v57 = vadd.f32 %v5183_v45, %v1604_v21  ;;  %v5115_v8 = vpop.f32.mrb[55].mxu0 }
 0x1f0   : > { %v1612_v49 = vadd.f32 %v5113_v0, %v6631_v30  ;;  %v5116_v26 = vadd.f32 %v5115_v8, %v5114_v3 }
 0x1f1   : > { %v6687_v5 = vadd.f32 %v5186_v50, %v1607_v28 }
 0x1f2   : > { %v1615_v56 = vadd.f32 %v5116_v26, %v6633_v52 }
 0x1f3   : > { %v5187_v32 = vpop.f32.mrb[52].mxu1 }
 0x1f4   : > { %v5188_v37 = vpop.f32.mrb[53].mxu1  ;;  %v5117_v58 = vpop.f32.mrb[56].mxu0 }
 0x1f5   : > { %v5189_v41 = vadd.f32 %v5188_v37, %v5187_v32  ;;  %v5190_v43 = vpop.f32.mrb[54].mxu1  ;;  %v5118_v1 = vpop.f32.mrb[57].mxu0 }
 0x1f6   : > { %v5191_v48 = vpop.f32.mrb[55].mxu1  ;;  %v5119_v14 = vadd.f32 %v5118_v1, %v5117_v58  ;;  %v5120_v18 = vpop.f32.mrb[58].mxu0 }
 0x1f7   : > { %v5192_v54 = vadd.f32 %v5191_v48, %v5190_v43  ;;  %v6691_v63 = vadd.f32 %v5189_v41, %v1612_v49  ;;  %v5121_v51 = vpop.f32.mrb[59].mxu0 }
 0x1f8   : > { %v1620_v30 = vadd.f32 %v5119_v14, %v6637_v44  ;;  %v5122_v61 = vadd.f32 %v5121_v51, %v5120_v18 }
 0x1f9   : > { %v6693_v25 = vadd.f32 %v5192_v54, %v1615_v56 }
 0x1fa   : > { %v1623_v52 = vadd.f32 %v5122_v61, %v6639_v9 }
 0x1fb   : > { %v5193_v33 = vpop.f32.mrb[56].mxu1 }
 0x1fc   : > { %v5194_v7 = vpop.f32.mrb[57].mxu1  ;;  %v5123_v15 = vpop.f32.mrb[60].mxu0 }
 0x1fd   : > { %v5195_v11 = vadd.f32 %v5194_v7, %v5193_v33  ;;  %v5196_v59 = vpop.f32.mrb[58].mxu1  ;;  %v5124_v17 = vpop.f32.mrb[61].mxu0 }
 0x1fe   : > { %v5197_v12 = vpop.f32.mrb[59].mxu1  ;;  %v5125_v22 = vadd.f32 %v5124_v17, %v5123_v15  ;;  %v5126_v24 = vpop.f32.mrb[62].mxu0 }
 0x1ff   : > { %v5198_v13 = vadd.f32 %v5197_v12, %v5196_v59  ;;  %v6697_v16 = vadd.f32 %v5195_v11, %v1620_v30  ;;  %v5127_v35 = vpop.f32.mrb[63].mxu0 }
 0x200   : > { %v1628_v44 = vadd.f32 %v5125_v22, %v6643_v29  ;;  %v5128_v39 = vadd.f32 %v5127_v35, %v5126_v24 }
 0x201   : > { %v6699_v31 = vadd.f32 %v5198_v13, %v1623_v52 }
 0x202   : > { %v1631_v9 = vadd.f32 %v5128_v39, %v6645_v36 }
 0x203   : > { %v5199_v21 = vpop.f32.mrb[60].mxu1 }
 0x204   : > { %v5200_v40 = vpop.f32.mrb[61].mxu1  ;;  %v5129_v47 = vpop.f32.mrb[64].mxu0 }
 0x205   : > { %v5201_v42 = vadd.f32 %v5200_v40, %v5199_v21  ;;  %v5202_v28 = vpop.f32.mrb[62].mxu1  ;;  %v5130_v53 = vpop.f32.mrb[65].mxu0 }
 0x206   : > { %v5203_v45 = vpop.f32.mrb[63].mxu1  ;;  %v5131_v60 = vadd.f32 %v5130_v53, %v5129_v47  ;;  %v5132_v0 = vpop.f32.mrb[66].mxu0 }
 0x207   : > { %v5204_v46 = vadd.f32 %v5203_v45, %v5202_v28  ;;  %v6703_v50 = vadd.f32 %v5201_v42, %v1628_v44  ;;  %v5133_v8 = vpop.f32.mrb[67].mxu0 }
 0x208   : > { %v1636_v29 = vadd.f32 %v5131_v60, %v6649_v62  ;;  %v5134_v32 = vadd.f32 %v5133_v8, %v5132_v0 }
 0x209   : > { %v6705_v3 = vadd.f32 %v5204_v46, %v1631_v9 }
 0x20a   : > { %v1639_v36 = vadd.f32 %v5134_v32, %v6651_v4 }
 0x20b   : > { %v5205_v49 = vpop.f32.mrb[64].mxu1 }
 0x20c   : > { %v5206_v26 = vpop.f32.mrb[65].mxu1  ;;  %v5135_v48 = vpop.f32.mrb[68].mxu0 }
 0x20d   : > { %v5207_v37 = vadd.f32 %v5206_v26, %v5205_v49  ;;  %v5208_v56 = vpop.f32.mrb[66].mxu1  ;;  %v5136_v58 = vpop.f32.mrb[69].mxu0 }
 0x20e   : > { %v5209_v41 = vpop.f32.mrb[67].mxu1  ;;  %v5137_v1 = vadd.f32 %v5136_v58, %v5135_v48  ;;  %v5138_v14 = vpop.f32.mrb[70].mxu0 }
 0x20f   : > { %v5210_v43 = vadd.f32 %v5209_v41, %v5208_v56  ;;  %v6709_v54 = vadd.f32 %v5207_v37, %v1636_v29  ;;  %v5139_v51 = vpop.f32.mrb[71].mxu0 }
 0x210   : > { %v1644_v62 = vadd.f32 %v5137_v1, %v6655_v6  ;;  %v5140_v33 = vadd.f32 %v5139_v51, %v5138_v14 }
 0x211   : > { %v6711_v18 = vadd.f32 %v5210_v43, %v1639_v36 }
 0x212   : > { %v1647_v4 = vadd.f32 %v5140_v33, %v6657_v23 }
 0x213   : > { %v5211_v30 = vpop.f32.mrb[68].mxu1 }
 0x214   : > { %v5212_v61 = vpop.f32.mrb[69].mxu1  ;;  %v5141_v12 = vpop.f32.mrb[72].mxu0 }
 0x215   : > { %v5213_v7 = vadd.f32 %v5212_v61, %v5211_v30  ;;  %v5214_v52 = vpop.f32.mrb[70].mxu1  ;;  %v5142_v15 = vpop.f32.mrb[73].mxu0 }
 0x216   : > { %v5215_v11 = vpop.f32.mrb[71].mxu1  ;;  %v5143_v17 = vadd.f32 %v5142_v15, %v5141_v12  ;;  %v5144_v22 = vpop.f32.mrb[74].mxu0 }
 0x217   : > { %v5216_v59 = vadd.f32 %v5215_v11, %v5214_v52  ;;  %v6715_v13 = vadd.f32 %v5213_v7, %v1644_v62  ;;  %v5145_v35 = vpop.f32.mrb[75].mxu0 }
 0x218   : > { %v1652_v6 = vadd.f32 %v5143_v17, %v6661_v19  ;;  %v5146_v21 = vadd.f32 %v5145_v35, %v5144_v22 }
 0x219   : > { %v6717_v24 = vadd.f32 %v5216_v59, %v1647_v4 }
 0x21a   : > { %v1655_v23 = vadd.f32 %v5146_v21, %v6663_v27 }
 0x21b   : > { %v5217_v44 = vpop.f32.mrb[72].mxu1 }
 0x21c   : > { %v5218_v39 = vpop.f32.mrb[73].mxu1  ;;  %v5147_v45 = vpop.f32.mrb[76].mxu0 }
 0x21d   : > { %v5219_v40 = vadd.f32 %v5218_v39, %v5217_v44  ;;  %v5220_v9 = vpop.f32.mrb[74].mxu1  ;;  %v5148_v47 = vpop.f32.mrb[77].mxu0 }
 0x21e   : > { %v5221_v42 = vpop.f32.mrb[75].mxu1  ;;  %v5149_v53 = vadd.f32 %v5148_v47, %v5147_v45  ;;  %v5150_v60 = vpop.f32.mrb[78].mxu0 }
 0x21f   : > { %v5222_v28 = vadd.f32 %v5221_v42, %v5220_v9  ;;  %v6721_v46 = vadd.f32 %v5219_v40, %v1652_v6  ;;  %v5151_v8 = vpop.f32.mrb[79].mxu0 }
 0x220   : > { %v1660_v19 = vadd.f32 %v5149_v53, %v6667_v55  ;;  %v5152_v49 = vadd.f32 %v5151_v8, %v5150_v60 }
 0x221   : > { %v6723_v0 = vadd.f32 %v5222_v28, %v1655_v23 }
 0x222   : > { %v1663_v27 = vadd.f32 %v5152_v49, %v6669_v2 }
 0x223   : > { %v5223_v29 = vpop.f32.mrb[76].mxu1 }
 0x224   : > { %v5224_v32 = vpop.f32.mrb[77].mxu1  ;;  %v5537_v41 = vpop.f32.mrb[80].mxu0 }
 0x225   : > { %v5225_v26 = vadd.f32 %v5224_v32, %v5223_v29  ;;  %v5226_v36 = vpop.f32.mrb[78].mxu1  ;;  %v1822_v48 = vadd.f32 %v5537_v41, %v6679_v20  ;;  %v1813_v58 = vpop.f32.mrb[81].mxu0 }
 0x226   : > { %v5227_v37 = vpop.f32.mrb[79].mxu1  ;;  %v1814_v1 = vadd.f32 %v1813_v58, %v6673_v10  ;;  %v5538_v14 = vpop.f32.mrb[82].mxu0 }
 0x227   : > { %v5228_v56 = vadd.f32 %v5227_v37, %v5226_v36  ;;  %v6727_v43 = vadd.f32 %v5225_v26, %v1660_v19  ;;  %v1825_v55 = vadd.f32 %v5538_v14, %v6681_v34  ;;  %v1816_v62 = vpop.f32.mrb[83].mxu0  ;;  %v1894_v30 = vmax.f32 %v1822_v48, 0.0 }
 0x228   : > { %v1817_v2 = vadd.f32 %v1816_v62, %v6675_v38  ;;  %v1892_v61 = vmax.f32 %v1814_v1, 0.0 }
 0x229   : > { %v6731_v51 = vadd.f32 %v5228_v56, %v1663_v27  ;;  %v1895_v33 = vmax.f32 %v1825_v55, 0.0 }
 0x22a   : > { %v1893_v4 = vmax.f32 %v1817_v2, 0.0 }
 0x22b   : > { %v1979_v7 = vpack.c.bf16 %v1895_v33, %v1894_v30 }
 0x22c   : > { %v1978_v52 = vpack.c.bf16 %v1893_v4, %v1892_v61  ;;  %v5541_v11 = vpop.f32.mrb[84].mxu0 }
 0x22d   : > { %v1999_v59 = vrot.slane %v1979_v7, 4  ;;  %v1838_v20 = vadd.f32 %v5541_v11, %v6691_v63  ;;  %v1829_v12 = vpop.f32.mrb[85].mxu0 }
 0x22e   : > { %v1998_v10 = vrot.slane %v1978_v52, 4  ;;  %v1830_v15 = vadd.f32 %v1829_v12, %v6685_v57  ;;  %v5542_v17 = vpop.f32.mrb[86].mxu0 }
 0x22f   : > { %2020 = vst [vmem:[#allocation3 + $0x18] ss:$-4 sps:$4 sm:$0xff] %v1999_v59   ;;  %v1841_v34 = vadd.f32 %v5542_v17, %v6693_v25  ;;  %v1832_v22 = vpop.f32.mrb[87].mxu0  ;;  %v1898_v35 = vmax.f32 %v1838_v20, 0.0 }
 0x230   : > { %2018 = vst [vmem:[#allocation3 + $0x8] ss:$-4 sps:$4 sm:$0xff] %v1998_v10   ;;  %v1833_v38 = vadd.f32 %v1832_v22, %v6687_v5  ;;  %v1896_v44 = vmax.f32 %v1830_v15, 0.0 }
 0x231   : > { %v1899_v6 = vmax.f32 %v1841_v34, 0.0 }
 0x232   : > { %v1897_v21 = vmax.f32 %v1833_v38, 0.0 }
 0x233   : > { %v1981_v39 = vpack.c.bf16 %v1899_v6, %v1898_v35 }
 0x234   : > { %v1980_v23 = vpack.c.bf16 %v1897_v21, %v1896_v44  ;;  %v5545_v40 = vpop.f32.mrb[88].mxu0 }
 0x235   : > { %v2001_v63 = vrot.slane %v1981_v39, 4  ;;  %v1854_v9 = vadd.f32 %v5545_v40, %v6703_v50  ;;  %v1845_v42 = vpop.f32.mrb[89].mxu0 }
 0x236   : > { %v2000_v57 = vrot.slane %v1980_v23, 4  ;;  %v1846_v28 = vadd.f32 %v1845_v42, %v6697_v16  ;;  %v5546_v45 = vpop.f32.mrb[90].mxu0 }
 0x237   : > { %2024 = vst [vmem:[#allocation3 + $0x38] ss:$-4 sps:$4 sm:$0xff] %v2001_v63   ;;  %v1857_v25 = vadd.f32 %v5546_v45, %v6705_v3  ;;  %v1848_v47 = vpop.f32.mrb[91].mxu0  ;;  %v1902_v53 = vmax.f32 %v1854_v9, 0.0 }
 0x238   : > { %2022 = vst [vmem:[#allocation3 + $0x28] ss:$-4 sps:$4 sm:$0xff] %v2000_v57   ;;  %v1849_v5 = vadd.f32 %v1848_v47, %v6699_v31  ;;  %v1900_v8 = vmax.f32 %v1846_v28, 0.0 }
 0x239   : > { %v1903_v60 = vmax.f32 %v1857_v25, 0.0 }
 0x23a   : > { %v1901_v19 = vmax.f32 %v1849_v5, 0.0 }
 0x23b   : > { %v1983_v29 = vpack.c.bf16 %v1903_v60, %v1902_v53 }
 0x23c   : > { %v1982_v49 = vpack.c.bf16 %v1901_v19, %v1900_v8  ;;  %v5549_v32 = vpop.f32.mrb[92].mxu0 }
 0x23d   : > { %v2003_v50 = vrot.slane %v1983_v29, 4  ;;  %v1870_v27 = vadd.f32 %v5549_v32, %v6715_v13  ;;  %v1861_v26 = vpop.f32.mrb[93].mxu0 }
 0x23e   : > { %v2002_v16 = vrot.slane %v1982_v49, 4  ;;  %v1862_v36 = vadd.f32 %v1861_v26, %v6709_v54  ;;  %v5550_v37 = vpop.f32.mrb[94].mxu0 }
 0x23f   : > { %2028 = vst [vmem:[#allocation3 + $0x58] ss:$-4 sps:$4 sm:$0xff] %v2003_v50   ;;  %v1873_v3 = vadd.f32 %v5550_v37, %v6717_v24  ;;  %v1864_v56 = vpop.f32.mrb[95].mxu0  ;;  %v1906_v41 = vmax.f32 %v1870_v27, 0.0 }
 0x240   : > { %2026 = vst [vmem:[#allocation3 + $0x48] ss:$-4 sps:$4 sm:$0xff] %v2002_v16   ;;  %v1865_v31 = vadd.f32 %v1864_v56, %v6711_v18  ;;  %v1904_v58 = vmax.f32 %v1862_v36, 0.0 }
 0x241   : > { %v1907_v48 = vmax.f32 %v1873_v3, 0.0 }
 0x242   : > { %v1905_v1 = vmax.f32 %v1865_v31, 0.0 }
 0x243   : > { %v1985_v14 = vpack.c.bf16 %v1907_v48, %v1906_v41 }
 0x244   : > { %v1984_v55 = vpack.c.bf16 %v1905_v1, %v1904_v58  ;;  %v5553_v62 = vpop.f32.mrb[96].mxu0 }
 0x245   : > { %v2005_v13 = vrot.slane %v1985_v14, 4  ;;  %v1886_v2 = vadd.f32 %v5553_v62, %v6727_v43  ;;  %v1877_v30 = vpop.f32.mrb[97].mxu0 }
 0x246   : > { %v2004_v54 = vrot.slane %v1984_v55, 4  ;;  %v1878_v33 = vadd.f32 %v1877_v30, %v6721_v46  ;;  %v5554_v61 = vpop.f32.mrb[98].mxu0  ;;  %v2044_v46 = vld [vmem:[#allocation3] sm:$0xf8] (!%p4828_p2) }
 0x247   : > { %2032 = vst [vmem:[#allocation3 + $0x78] ss:$-4 sps:$4 sm:$0xff] %v2005_v13   ;;  %v1889_v24 = vadd.f32 %v5554_v61, %v6731_v51  ;;  %v1880_v18 = vpop.f32.mrb[99].mxu0  ;;  %v1910_v7 = vmax.f32 %v1886_v2, 0.0  ;;  %v2045_v51 = vsel (!%p4828_p2), %vm2043_vm8, 0, %v2044_v46 }
 0x248   : > { %2030 = vst [vmem:[#allocation3 + $0x68] ss:$-4 sps:$4 sm:$0xff] %v2004_v54   ;;  %v1881_v4 = vadd.f32 %v1880_v18, %v6723_v0  ;;  %v1908_v11 = vmax.f32 %v1878_v33, 0.0  ;;  %v2049_v0 = vld [vmem:[#allocation3 + $0x8] sm:$0x1f] (!%p4828_p2) }
 0x249   : > { %v1911_v52 = vmax.f32 %v1889_v24, 0.0  ;;  %2046 = vst [vmem:[#allocation3] sm:$0xf8] (!%p4828_p2), %v2045_v51  ;;  %v2050_v15 = vsel (!%p4828_p2), %vm2048_vm9, 0, %v2049_v0 }
 0x24a   : > { %v1909_v59 = vmax.f32 %v1881_v4, 0.0  ;;  %2041 = sbr.rel (%p4828_p2) target bundleno = 593 (0x251), region = 56  ;;  %2051 = vst [vmem:[#allocation3 + $0x8] sm:$0x1f] (!%p4828_p2), %v2050_v15 }
 0x24b   : > { %v1987_v20 = vpack.c.bf16 %v1911_v52, %v1910_v7 }
 0x24c   : > { %v1986_v12 = vpack.c.bf16 %v1909_v59, %v1908_v11 }
 0x24d   : > { %v2007_v43 = vrot.slane %v1987_v20, 4 }
 0x24e   : > { %v2006_v10 = vrot.slane %v1986_v12, 4 }
 0x24f   : > { %2036 = vst [vmem:[#allocation3 + $0x98] ss:$-4 sps:$4 sm:$0xff] %v2007_v43  }
 0x250   : > { %2034 = vst [vmem:[#allocation3 + $0x88] ss:$-4 sps:$4 sm:$0xff] %v2006_v10  }
 0x251 PF: > { %p4829_p10 = scmp.ne.s32.totalorder %s6012_s21, 1 }
 0x252   : > { %vm2057_vm10 = vcmask (!%p4829_p10), 1047555   ;;  %vm2062_vm11 = vcmask (!%p4829_p10), 1044480  }
 0x253   : > { %2055 = sbr.rel (%p4829_p10) target bundleno = 602 (0x25a), region = 60  ;;  %vm2058_vm12 = vmand (!%p4829_p10), %vm2057_vm10, %vm1913_vm1 }
 0x254   : > { %vm2063_vm13 = vmand (!%p4829_p10), %vm2062_vm11, %vm1946_vm4 }
 0x256   : > { %v2059_v17 = vld [vmem:[#allocation3 + $0x90] sm:$0xf8] (!%p4829_p10)  ;;  %v2064_v34 = vld [vmem:[#allocation3 + $0x98] sm:$0x1f] (!%p4829_p10) }
 0x257   : > { %v2060_v22 = vsel (!%p4829_p10), %vm2058_vm12, 0, %v2059_v17  ;;  %v2065_v38 = vsel (!%p4829_p10), %vm2063_vm13, 0, %v2064_v34 }
 0x258   : > { %2061 = vst [vmem:[#allocation3 + $0x90] sm:$0xf8] (!%p4829_p10), %v2060_v22  ;;  %2066 = vst [vmem:[#allocation3 + $0x98] sm:$0x1f] (!%p4829_p10), %v2065_v38 }
 0x25a PF: > { %v5768_v35 = vld [vmem:[#allocation9 + $0x40] sm:$0xff]   ;;  %v5772_v39 = vld [vmem:[#allocation9 + $0x48] sm:$0xff]   ;;  %v5776_v9 = vld [vmem:[#allocation9 + $0x50] sm:$0xff]   ;;  %vm2267_vm14 = vcmask 1043456   ;;  %vm2324_vm15 = vsmask.f32 3328 }
 0x25b   : > { %v5769_v6 = vld [vmem:[#allocation9] sm:$0xff]   ;;  %5247 = vmatprep.subr.bf16.mxu1 %v5768_v35  ;;  %v5773_v23 = vld [vmem:[#allocation9 + $0x8] sm:$0xff]   ;;  %v5777_v42 = vld [vmem:[#allocation9 + $0x10] sm:$0xff]   ;;  %s4920_s17 = sshll.u32 %s6012_s21, 4  ;;  %s4921_s14 = sshll.u32 %s6016_s22, 5 }
 0x25c   : > { %v5770_v44 = vld [vmem:[#allocation9 + $0xc0] sm:$0xff]   ;;  %5248 = vmatpush3.bf16.msra.mxu1 %v5769_v6  ;;  %v5774_v40 = vld [vmem:[#allocation9 + $0xc8] sm:$0xff]   ;;  %v5778_v57 = vld [vmem:[#allocation9 + $0xd0] sm:$0xff]   ;;  %s4512_s15 = sadd.s32 %s4921_s14, %s4920_s17  ;;  %s4515_s22 = sshll.u32 %s6753_s6, 4  ;;  %s6991_s22 = int_to_ptr.vmem [resolvable:$true] %s4515_s22 }
 0x25d   : > { %v5771_v21 = vld [vmem:[#allocation9 + $0x80] sm:$0xff]   ;;  %5311 = vmatprep.subr.bf16.mxu0 %v5770_v44  ;;  %5249 = vmatprep.subr.bf16.mxu1 %v5772_v39  ;;  %v5775_v63 = vld [vmem:[#allocation9 + $0x88] sm:$0xff]   ;;  %v5779_v28 = vld [vmem:[#allocation9 + $0x90] sm:$0xff]   ;;  %s4922_s21 = sshll.u32 %s4512_s15, 7  ;;  %s4500_s8 = scalar_lea.sflag [#allocation6], %s6271_s13 }
 0x25e   : > { %5312 = vmatpush3.bf16.msra.mxu0 %v5771_v21  ;;  %v5780_v45 = vld [vmem:[#allocation9 + $0x58] sm:$0xff]   ;;  %v5784_v53 = vld [vmem:[#allocation9 + $0x60] sm:$0xff]   ;;  %v5788_v29 = vld [vmem:[#allocation9 + $0x68] sm:$0xff]   ;;  %s6989_s27 = scalar_lea.hbm %s7053_s5, %s4922_s21  ;;  %s5926_s9 = scalar_lea.vmem %s6991_s22, 2048 }
 0x25f   : > { %5313 = vmatprep.subr.bf16.mxu0 %v5774_v40  ;;  %v5781_v25 = vld [vmem:[#allocation9 + $0x18] sm:$0xff]   ;;  %v5785_v60 = vld [vmem:[#allocation9 + $0x20] sm:$0xff]   ;;  %v5789_v49 = vld [vmem:[#allocation9 + $0x28] sm:$0xff]   ;;  %p5927_p4 = scmp.ne.s32.totalorder %s6991_s22, %s5926_s9  ;;  %s6037_s18 = smov [#allocation10]  }
 0x260   : > { %5250 = vmatpush3.bf16.msra.mxu1 %v5773_v23  ;;  %v5782_v47 = vld [vmem:[#allocation9 + $0xd8] sm:$0xff]   ;;  %v5786_v8 = vld [vmem:[#allocation9 + $0xe0] sm:$0xff]   ;;  %v5790_v32 = vld [vmem:[#allocation9 + $0xe8] sm:$0xff]   ;;  %s5930_s3 = sshll.u32 %s6037_s18, 4  ;;  %s5931_s3 = int_to_ptr.vmem [resolvable:$false] %s5930_s3 }
 0x261   : > { %5251 = vmatprep.subr.bf16.mxu1 %v5776_v9  ;;  %v5783_v5 = vld [vmem:[#allocation9 + $0x98] sm:$0xff]   ;;  %v5787_v19 = vld [vmem:[#allocation9 + $0xa0] sm:$0xff]   ;;  %v5791_v50 = vld [vmem:[#allocation9 + $0xa8] sm:$0xff]   ;;  %p5928_p8 = pnand %p5927_p4, %p6212_p6  ;;  %s5932_s10 = scalar_lea.vmem %s5931_s3, 4096 }
 0x262   : > { %5314 = vmatpush3.bf16.msra.mxu0 %v5775_v63  ;;  %v5792_v27 = vld [vmem:[#allocation9 + $0x70] sm:$0xff]   ;;  %v5796_v37 = vld [vmem:[#allocation9 + $0x78] sm:$0xff]   ;;  %v2235_v31 = vld [vmem:[#allocation3] sm:$0xf0]  ;;  %p5933_p3 = scmp.lt.s32.totalorder %s6991_s22, %s5931_s3  ;;  %p5934_p7 = scmp.lt.s32.totalorder %s5932_s10, %s5926_s9 }
 0x263   : > { %5315 = vmatprep.subr.bf16.mxu0 %v5778_v57  ;;  %v5793_v26 = vld [vmem:[#allocation9 + $0x30] sm:$0xff]   ;;  %v5797_v3 = vld [vmem:[#allocation9 + $0x38] sm:$0xff]   ;;  %v2236_v41 = vld [vmem:[#allocation3 + $0x8] sm:$0xf]  ;;  %v2268_v48 = vrot.slane %v2235_v31, 4  ;;  %p5929_p13 = pneg %p5928_p8 }
 0x264   : > { %5252 = vmatpush3.bf16.msra.mxu1 %v5777_v42  ;;  %v5794_v16 = vld [vmem:[#allocation9 + $0xf0] sm:$0xff]   ;;  %v5798_v56 = vld [vmem:[#allocation9 + $0xf8] sm:$0xff]   ;;  %v2269_v58 = vrot.slane %v2236_v41, 4  ;;  %v5800_v14 = vld [vmem:[#allocation9 + $0x140] sm:$0xff]   ;;  %p5935_p12 = por %p5934_p7, %p5933_p3 }
 0x265   : > { %5253 = vmatprep.subr.bf16.mxu1 %v5780_v45  ;;  %v5795_v36 = vld [vmem:[#allocation9 + $0xb0] sm:$0xff]   ;;  %v5799_v1 = vld [vmem:[#allocation9 + $0xb8] sm:$0xff]   ;;  %v2067_v55 = vld [vmem:[#allocation3] sm:$0xf8] }
 0x266   : > { %5316 = vmatpush3.bf16.msra.mxu0 %v5779_v28  ;;  %v2068_v62 = vld [vmem:[#allocation3 + $0x8] sm:$0xf]  ;;  %v2270_v13 = vsel %vm2267_vm14, %v2268_v48, %v2269_v58  ;;  %v2084_v2 = vshrl.u32 %v2067_v55, 16  ;;  %v2087_v30 = vshll.u32 %v2067_v55, 16  ;;  %v2478_v61 = vld [vmem:[#allocation3 + $0x10] sm:$0xf8]  ;;  %p5936_p11 = pnand %p5935_p12, %p5929_p13 }
 0x267   : > { %5317 = vmatprep.subr.bf16.mxu0 %v5782_v47  ;;  %v2092_v54 = vshrl.u32 %v2068_v62, 16  ;;  %3998 = vmatprep.mubr.bf16.mxu1 %v2270_v13  ;;  %v2095_v33 = vshll.u32 %v2068_v62, 16  ;;  %v2479_v24 = vld [vmem:[#allocation3 + $0x18] sm:$0xf]  ;;  %v2495_v52 = vshrl.u32 %v2478_v61, 16  ;;  %v2498_v59 = vshll.u32 %v2478_v61, 16 }
 0x268   : > { %5254 = vmatpush3.bf16.msra.mxu1 %v5781_v25  ;;  %v2086_v18 = vrot.slane %v2084_v2, 3  ;;  %v2089_v4 = vrot.slane %v2087_v30, 4  ;;  %v2503_v20 = vshrl.u32 %v2479_v24, 16  ;;  %v2506_v12 = vshll.u32 %v2479_v24, 16  ;;  %v2308_v46 = vld [vmem:[#allocation3] sm:$0xf0] }
 0x269   : > { %5255 = vmatprep.subr.bf16.mxu1 %v5784_v53  ;;  %v2094_v7 = vrot.slane %v2092_v54, 3  ;;  %v2097_v11 = vrot.slane %v2095_v33, 4  ;;  %v2497_v10 = vrot.slane %v2495_v52, 3  ;;  %v2309_v0 = vld [vmem:[#allocation3 + $0x8] sm:$0x1f]  ;;  %v2500_v15 = vrot.slane %v2498_v59, 4 }
 0x26a   : > { %5318 = vmatpush3.bf16.msra.mxu0 %v5783_v5  ;;  %v2090_v43 = vor.u32 %v2089_v4, %v2086_v18  ;;  %v2505_v17 = vrot.slane %v2503_v20, 3  ;;  %v2508_v34 = vrot.slane %v2506_v12, 4  ;;  %v5801_v22 = vld [vmem:[#allocation9 + $0x100] sm:$0xff]   ;;  %v2237_v38 = vld [vmem:[#allocation3 + $0x10] sm:$0xf0]  ;;  %v2326_v35 = vshrl.u32 %v2308_v46, 16 }
 0x26b   : > { %5319 = vmatprep.subr.bf16.mxu0 %v5786_v8  ;;  %v2098_v51 = vor.u32 %v2097_v11, %v2094_v7  ;;  %v2329_v6 = vshll.u32 %v2308_v46, 16  ;;  %v2334_v44 = vshrl.u32 %v2309_v0, 16  ;;  %v5802_v21 = vld [vmem:[#allocation9 + $0x148] sm:$0xff]   ;;  %v2501_v23 = vor.u32 %v2500_v15, %v2497_v10  ;;  %v2238_v9 = vld [vmem:[#allocation3 + $0x18] sm:$0xf]  ;;  %v5809_v31 = vld [vmem:[#allocation9 + $0x180] sm:$0xff]  }
 0x26c   : > { %5256 = vmatpush3.bf16.msra.mxu1 %v5785_v60  ;;  %v2509_v40 = vor.u32 %v2508_v34, %v2505_v17  ;;  %v2337_v63 = vshll.u32 %v2309_v0, 16  ;;  %v2069_v42 = vld [vmem:[#allocation3 + $0x10] sm:$0xf8]  ;;  %v5803_v57 = vld [vmem:[#allocation9 + $0x108] sm:$0xff]   ;;  %v2328_v28 = vrot.slane %v2326_v35, 4  ;;  %v2271_v47 = vrot.slane %v2237_v38, 4 }
 0x26d   : > { %5257 = vmatprep.subr.bf16.mxu1 %v5788_v29  ;;  %v2099_v39 = vsel %vm1946_vm4, %v2090_v43, %v2098_v51  ;;  %v2331_v45 = vrot.slane %v2329_v6, 5  ;;  %v2336_v25 = vrot.slane %v2334_v44, 4  ;;  %v2070_v5 = vld [vmem:[#allocation3 + $0x18] sm:$0xf]  ;;  %v2272_v8 = vrot.slane %v2238_v9, 4  ;;  %v5804_v29 = vld [vmem:[#allocation9 + $0x150] sm:$0xff]  }
 0x26e   : > { %5320 = vmatpush3.bf16.msra.mxu0 %v5787_v19  ;;  %v2510_v53 = vsel %vm1946_vm4, %v2501_v23, %v2509_v40  ;;  %v2339_v60 = vrot.slane %v2337_v63, 5  ;;  %v2101_v19 = vshrl.u32 %v2069_v42, 16  ;;  %v5805_v2 = vld [vmem:[#allocation9 + $0x110] sm:$0xff]   ;;  %v2311_v24 = vld [vmem:[#allocation3 + $0x18] sm:$0x1f]  ;;  %v5812_v51 = vld [vmem:[#allocation9 + $0x1c8] sm:$0xff]  }
 0x26f   : > { %5321 = vmatprep.subr.bf16.mxu0 %v5790_v32  ;;  %4095 = vmatprep.mubr.bf16.mxu0 %v2510_v53  ;;  %v2104_v32 = vshll.u32 %v2069_v42, 16  ;;  %v2310_v61 = vld [vmem:[#allocation3 + $0x10] sm:$0xf0]  ;;  %v5806_v18 = vld [vmem:[#allocation9 + $0x158] sm:$0xff]   ;;  %v2239_v59 = vld [vmem:[#allocation3 + $0x20] sm:$0xf0] }
 0x270   : > { %5258 = vmatpush3.bf16.msra.mxu1 %v5789_v49  ;;  %v2332_v49 = vor.u32 %v2331_v45, %v2328_v28  ;;  %v2343_v11 = vshrl.u32 %v2310_v61, 16  ;;  %v2346_v12 = vshll.u32 %v2310_v61, 16  ;;  %v2351_v43 = vshrl.u32 %v2311_v24, 16  ;;  %v2240_v46 = vld [vmem:[#allocation3 + $0x28] sm:$0xf]  ;;  %v5807_v0 = vld [vmem:[#allocation9 + $0x118] sm:$0xff]  }
 0x271   : > { %5259 = vmatprep.subr.bf16.mxu1 %v5792_v27  ;;  %v2112_v27 = vshll.u32 %v2070_v5, 16  ;;  %v2106_v41 = vrot.slane %v2104_v32, 4  ;;  %v2354_v10 = vshll.u32 %v2311_v24, 16  ;;  %v2071_v38 = vld [vmem:[#allocation3 + $0x20] sm:$0xf8]  ;;  %v2275_v23 = vrot.slane %v2240_v46, 4 }
 0x272   : > { %5322 = vmatpush3.bf16.msra.mxu0 %v5791_v50  ;;  %v2109_v50 = vshrl.u32 %v2070_v5, 16  ;;  %v2345_v34 = vrot.slane %v2343_v11, 4  ;;  %v2072_v35 = vld [vmem:[#allocation3 + $0x28] sm:$0xf]  ;;  %v5810_v6 = vld [vmem:[#allocation9 + $0x160] sm:$0xff]   ;;  %v2348_v44 = vrot.slane %v2346_v12, 5 }
 0x273   : > { %5323 = vmatprep.subr.bf16.mxu0 %v5794_v16  ;;  %v2340_v16 = vor.u32 %v2339_v60, %v2336_v25  ;;  %v2114_v58 = vrot.slane %v2112_v27, 4  ;;  %v2118_v63 = vshrl.u32 %v2071_v38, 16  ;;  %v2121_v9 = vshll.u32 %v2071_v38, 16  ;;  %v2482_v5 = vld [vmem:[#allocation3 + $0x30] sm:$0xf8]  ;;  %v5811_v60 = vld [vmem:[#allocation9 + $0x120] sm:$0xff]  }
 0x274   : > { %5260 = vmatpush3.bf16.msra.mxu1 %v5793_v26  ;;  %v5808_v26 = vld [vmem:[#allocation9 + $0x1c0] sm:$0xff]   ;;  %v2111_v48 = vrot.slane %v2109_v50, 3  ;;  %v2126_v42 = vshrl.u32 %v2072_v35, 16  ;;  %v2349_v28 = vor.u32 %v2348_v44, %v2345_v34  ;;  %v2483_v53 = vld [vmem:[#allocation3 + $0x38] sm:$0xf]  ;;  %v2532_v27 = vshll.u32 %v2482_v5, 16 }
 0x275   : > { %5261 = vmatprep.subr.bf16.mxu1 %v5796_v37  ;;  %v2103_v37 = vrot.slane %v2101_v19, 3  ;;  %v2123_v19 = vrot.slane %v2121_v9, 4  ;;  %v2484_v38 = vld [vmem:[#allocation3 + $0x40] sm:$0xf8] }
 0x276   : > { %5324 = vmatpush3.bf16.msra.mxu0 %v5795_v36  ;;  %v2273_v36 = vsel %vm2267_vm14, %v2271_v47, %v2272_v8  ;;  %v2115_v54 = vor.u32 %v2114_v58, %v2111_v48  ;;  %v2129_v47 = vshll.u32 %v2072_v35, 16  ;;  %v2120_v8 = vrot.slane %v2118_v63, 3  ;;  %v2485_v35 = vld [vmem:[#allocation3 + $0x48] sm:$0xf] }
 0x277   : > { %5325 = vmatprep.subr.bf16.mxu0 %v5798_v56  ;;  %v2481_v56 = vld [vmem:[#allocation3 + $0x28] sm:$0xf]  ;;  %v2107_v30 = vor.u32 %v2106_v41, %v2103_v37  ;;  %v2534_v48 = vrot.slane %v2532_v27, 4 }
 0x278   : > { %5262 = vmatpush3.bf16.msra.mxu1 %v5797_v3  ;;  %v2480_v3 = vld [vmem:[#allocation3 + $0x20] sm:$0xf8]  ;;  %v2520_v62 = vshrl.u32 %v2481_v56, 16  ;;  %v2523_v13 = vshll.u32 %v2481_v56, 16  ;;  %v2131_v50 = vrot.slane %v2129_v47, 4  ;;  %v2557_v47 = vshll.u32 %v2485_v35, 16 }
 0x279   : > { %5375 = vmatprep.subr.bf16.mxu1 %v5800_v14  ;;  %v2341_v14 = vsel %vm2324_vm15, %v2332_v49, %v2340_v16  ;;  %v2515_v55 = vshll.u32 %v2480_v3, 16  ;;  %v2116_v20 = vsel %vm1946_vm4, %v2107_v30, %v2115_v54  ;;  %v2529_v49 = vshrl.u32 %v2482_v5, 16  ;;  %v5814_v16 = vld [vmem:[#allocation9 + $0x168] sm:$0xff]   ;;  %v2312_v56 = vld [vmem:[#allocation3 + $0x20] sm:$0xf0] }
 0x27a   : > { %5326 = vmatpush3.bf16.msra.mxu0 %v5799_v1  ;;  %v2512_v1 = vshrl.u32 %v2480_v3, 16  ;;  %v2522_v7 = vrot.slane %v2520_v62, 3  ;;  %v2525_v52 = vrot.slane %v2523_v13, 4  ;;  %v2540_v3 = vshll.u32 %v2483_v53, 16  ;;  %v5816_v62 = vld [vmem:[#allocation9 + $0x1d0] sm:$0xff]  }
 0x27b   : > { %3999 = vmatmul.mubr.bf16.vlgmr.msra.gmra.mrb[80].mxu1 %v2099_v39  ;;  %5439 = vmatprep.subr.bf16.mxu0 %v5808_v26  ;;  %v2517_v4 = vrot.slane %v2515_v55, 4  ;;  %v2356_v39 = vrot.slane %v2354_v10, 5  ;;  %v2537_v26 = vshrl.u32 %v2483_v53, 16  ;;  %v2531_v37 = vrot.slane %v2529_v49, 3  ;;  %v5815_v55 = vld [vmem:[#allocation9 + $0x128] sm:$0xff]   ;;  %v5821_v49 = vld [vmem:[#allocation9 + $0x130] sm:$0xff]  }
 0x27c   : > { %5376 = vmatpush3.bf16.msra.mxu1 %v5801_v22  ;;  %4006 = vmatprep.mubr.bf16.mxu1 %v2273_v36  ;;  %v2514_v33 = vrot.slane %v2512_v1, 3  ;;  %v2526_v17 = vor.u32 %v2525_v52, %v2522_v7  ;;  %v2274_v22 = vrot.slane %v2239_v59, 4  ;;  %v2124_v36 = vor.u32 %v2123_v19, %v2120_v8  ;;  %v2073_v7 = vld [vmem:[#allocation3 + $0x30] sm:$0xf8]  ;;  %v2074_v52 = vld [vmem:[#allocation3 + $0x38] sm:$0xf] }
 0x27d   : > { %5377 = vmatprep.subr.bf16.mxu1 %v5802_v21  ;;  %4096 = vmatmul.mubr.bf16.vlgmr.msra.gmra.mrb[100].mxu0 %v2341_v14  ;;  %v2353_v21 = vrot.slane %v2351_v43, 4  ;;  %v2539_v58 = vrot.slane %v2537_v26, 3  ;;  %v2360_v1 = vshrl.u32 %v2312_v56, 16  ;;  %v2241_v14 = vld [vmem:[#allocation3 + $0x30] sm:$0xf0]  ;;  %v2542_v13 = vrot.slane %v2540_v3, 4 }
 0x27e   : > { %5440 = vmatpush3.bf16.msra.mxu0 %v5809_v31  ;;  %v2518_v15 = vor.u32 %v2517_v4, %v2514_v33  ;;  %v2276_v25 = vsel %vm2267_vm14, %v2274_v22, %v2275_v23  ;;  %v2313_v31 = vld [vmem:[#allocation3 + $0x28] sm:$0x1f]  ;;  %v2242_v33 = vld [vmem:[#allocation3 + $0x38] sm:$0xf]  ;;  %v2535_v24 = vor.u32 %v2534_v48, %v2531_v37  ;;  %v2277_v4 = vrot.slane %v2241_v14, 4  ;;  %v5817_v43 = vld [vmem:[#allocation9 + $0x190] sm:$0xff]  }
 0x27f   : > { %5441 = vmatprep.subr.bf16.mxu0 %v5812_v51  ;;  %v2357_v45 = vor.u32 %v2356_v39, %v2353_v21  ;;  %v2368_v30 = vshrl.u32 %v2313_v31, 16  ;;  %v2371_v54 = vshll.u32 %v2313_v31, 16  ;;  %v2543_v11 = vor.u32 %v2542_v13, %v2539_v58  ;;  %v2314_v5 = vld [vmem:[#allocation3 + $0x30] sm:$0xf0]  ;;  %v2315_v53 = vld [vmem:[#allocation3 + $0x38] sm:$0x1f] }
 0x280   : > { %5378 = vmatpush3.bf16.msra.mxu1 %v5803_v57  ;;  %v2527_v40 = vsel %vm1946_vm4, %v2518_v15, %v2526_v17  ;;  %v5813_v57 = vld [vmem:[#allocation9 + $0x188] sm:$0xff]   ;;  %v2278_v10 = vrot.slane %v2242_v33, 4  ;;  %v2135_v46 = vshrl.u32 %v2073_v7, 16  ;;  %v2143_v51 = vshrl.u32 %v2074_v52, 16  ;;  %v2243_v48 = vld [vmem:[#allocation3 + $0x40] sm:$0xf0] }
 0x281   : > { %5379 = vmatprep.subr.bf16.mxu1 %v5804_v29  ;;  %4103 = vmatprep.mubr.bf16.mxu0 %v2527_v40  ;;  %v2128_v29 = vrot.slane %v2126_v42, 3  ;;  %v2358_v32 = vsel %vm2324_vm15, %v2349_v28, %v2357_v45  ;;  %v2373_v12 = vrot.slane %v2371_v54, 5  ;;  %v2544_v15 = vsel %vm1946_vm4, %v2535_v24, %v2543_v11  ;;  %v5819_v40 = vld [vmem:[#allocation9 + $0x198] sm:$0xff]   ;;  %v5820_v28 = vld [vmem:[#allocation9 + $0x170] sm:$0xff]   ;;  %v2244_v58 = vld [vmem:[#allocation3 + $0x48] sm:$0xf] }
 0x282   : > { %5442 = vmatpush3.bf16.msra.mxu0 %v5813_v57  ;;  %v2146_v22 = vshll.u32 %v2074_v52, 16  ;;  %v2279_v44 = vsel %vm2267_vm14, %v2277_v4, %v2278_v10  ;;  %v2137_v21 = vrot.slane %v2135_v46, 3  ;;  %v2145_v23 = vrot.slane %v2143_v51, 3  ;;  %v5822_v13 = vld [vmem:[#allocation9 + $0x1e0] sm:$0xff]   ;;  %v2076_v54 = vld [vmem:[#allocation3 + $0x48] sm:$0xf] }
 0x283   : > { %4007 = vmatmul.mubr.bf16.gmra.mrb[84].mxu1 %v2116_v20  ;;  %v2132_v41 = vor.u32 %v2131_v50, %v2128_v29  ;;  %5443 = vmatprep.subr.bf16.mxu0 %v5816_v62  ;;  %v2370_v20 = vrot.slane %v2368_v30, 4  ;;  %v2546_v42 = vshrl.u32 %v2484_v38, 16  ;;  %v2549_v57 = vshll.u32 %v2484_v38, 16  ;;  %v2075_v62 = vld [vmem:[#allocation3 + $0x40] sm:$0xf8] }
 0x284   : > { %5380 = vmatpush3.bf16.msra.mxu1 %v5805_v2  ;;  %4014 = vmatprep.mubr.bf16.mxu1 %v2276_v25  ;;  %v2363_v2 = vshll.u32 %v2312_v56, 16  ;;  %v2148_v9 = vrot.slane %v2146_v22, 4  ;;  %v2554_v25 = vshrl.u32 %v2485_v35, 16  ;;  %v2377_v29 = vshrl.u32 %v2314_v5, 16  ;;  %v2486_v52 = vld [vmem:[#allocation3 + $0x50] sm:$0xf8] }
 0x285   : > { %5381 = vmatprep.subr.bf16.mxu1 %v5806_v18  ;;  %4104 = vmatmul.mubr.bf16.gmra.mrb[104].mxu0 %v2358_v32  ;;  %v2133_v61 = vsel %vm1946_vm4, %v2124_v36, %v2132_v41  ;;  %v2362_v18 = vrot.slane %v2360_v1, 4  ;;  %v2374_v34 = vor.u32 %v2373_v12, %v2370_v20  ;;  %v2548_v8 = vrot.slane %v2546_v42, 3  ;;  %v2487_v20 = vld [vmem:[#allocation3 + $0x58] sm:$0xf]  ;;  %v5824_v35 = vld [vmem:[#allocation9 + $0x1e8] sm:$0xff]  }
 0x286   : > { %v2365_v59 = vrot.slane %v2363_v2, 5  ;;  %5444 = vmatpush3.bf16.msra.mxu0 %v5817_v43  ;;  %4111 = vmatprep.mubr.bf16.mxu0 %v2544_v15  ;;  %v2551_v19 = vrot.slane %v2549_v57, 4  ;;  %v2556_v32 = vrot.slane %v2554_v25, 3  ;;  %v2559_v50 = vrot.slane %v2557_v47, 4  ;;  %v5823_v15 = vld [vmem:[#allocation9 + $0x1a0] sm:$0xff]   ;;  %v5826_v57 = vld [vmem:[#allocation9 + $0x178] sm:$0xff]  }
 0x287   : > { %v2380_v27 = vshll.u32 %v2314_v5, 16  ;;  %v2385_v26 = vshrl.u32 %v2315_v53, 16  ;;  %v2379_v37 = vrot.slane %v2377_v29, 4  ;;  %v2388_v3 = vshll.u32 %v2315_v53, 16  ;;  %v2246_v29 = vld [vmem:[#allocation3 + $0x58] sm:$0xf] }
 0x288   : > { %5382 = vmatpush3.bf16.msra.mxu1 %v5807_v0  ;;  %v2138_v0 = vshll.u32 %v2073_v7, 16  ;;  %v2366_v17 = vor.u32 %v2365_v59, %v2362_v18  ;;  %v2552_v36 = vor.u32 %v2551_v19, %v2548_v8  ;;  %v2560_v56 = vor.u32 %v2559_v50, %v2556_v32  ;;  %v5827_v32 = vld [vmem:[#allocation9 + $0x138] sm:$0xff]  }
 0x289   : > { %5383 = vmatprep.subr.bf16.mxu1 %v5810_v6  ;;  %v5818_v6 = vld [vmem:[#allocation9 + $0x1d8] sm:$0xff]   ;;  %v2382_v31 = vrot.slane %v2380_v27, 5  ;;  %v2387_v41 = vrot.slane %v2385_v26, 4  ;;  %v2390_v1 = vrot.slane %v2388_v3, 5  ;;  %v2280_v14 = vrot.slane %v2243_v48, 4  ;;  %v5829_v48 = vld [vmem:[#allocation9 + $0x1b0] sm:$0xff]  }
 0x28a   : > { %v2140_v39 = vrot.slane %v2138_v0, 4  ;;  %v2375_v63 = vsel %vm2324_vm15, %v2366_v17, %v2374_v34  ;;  %5445 = vmatprep.subr.bf16.mxu0 %v5818_v6  ;;  %v2561_v2 = vsel %vm1946_vm4, %v2552_v36, %v2560_v56  ;;  %v2152_v33 = vshrl.u32 %v2075_v62, 16  ;;  %v2078_v36 = vld [vmem:[#allocation3 + $0x58] sm:$0xf] }
 0x28b   : > { %4015 = vmatmul.mubr.bf16.gmra.mrb[88].mxu1 %v2133_v61  ;;  %5446 = vmatpush3.bf16.msra.mxu0 %v5819_v40  ;;  %v2383_v30 = vor.u32 %v2382_v31, %v2379_v37  ;;  %v2155_v61 = vshll.u32 %v2075_v62, 16  ;;  %v2391_v24 = vor.u32 %v2390_v1, %v2387_v41  ;;  %v2160_v4 = vshrl.u32 %v2076_v54, 16  ;;  %v5828_v37 = vld [vmem:[#allocation9 + $0x1f0] sm:$0xff]  }
 0x28c   : > { %5384 = vmatpush3.bf16.msra.mxu1 %v5811_v60  ;;  %4022 = vmatprep.mubr.bf16.mxu1 %v2279_v44  ;;  %v2141_v45 = vor.u32 %v2140_v39, %v2137_v21  ;;  %v2149_v60 = vor.u32 %v2148_v9, %v2145_v23  ;;  %v2163_v7 = vshll.u32 %v2076_v54, 16  ;;  %v2154_v11 = vrot.slane %v2152_v33, 3  ;;  %v2316_v21 = vld [vmem:[#allocation3 + $0x40] sm:$0xf0]  ;;  %v2317_v39 = vld [vmem:[#allocation3 + $0x48] sm:$0x1f] }
 0x28d   : > { %5385 = vmatprep.subr.bf16.mxu1 %v5814_v16  ;;  %4112 = vmatmul.mubr.bf16.gmra.mrb[108].mxu0 %v2375_v63  ;;  %v2157_v59 = vrot.slane %v2155_v61, 4  ;;  %v2563_v12 = vshrl.u32 %v2486_v52, 16  ;;  %v2566_v43 = vshll.u32 %v2486_v52, 16  ;;  %v2392_v10 = vsel %vm2324_vm15, %v2383_v30, %v2391_v24  ;;  %v5825_v23 = vld [vmem:[#allocation9 + $0x1a8] sm:$0xff]   ;;  %v5831_v33 = vld [vmem:[#allocation9 + $0x1b8] sm:$0xff]  }
 0x28e   : > { %v2150_v16 = vsel %vm1946_vm4, %v2141_v45, %v2149_v60  ;;  %4119 = vmatprep.mubr.bf16.mxu0 %v2561_v2  ;;  %5447 = vmatprep.subr.bf16.mxu0 %v5822_v13  ;;  %v2162_v46 = vrot.slane %v2160_v4, 3  ;;  %v2165_v0 = vrot.slane %v2163_v7, 4  ;;  %v2571_v51 = vshrl.u32 %v2487_v20, 16  ;;  %v2245_v60 = vld [vmem:[#allocation3 + $0x50] sm:$0xf0] }
 0x28f   : > { %v2158_v17 = vor.u32 %v2157_v59, %v2154_v11  ;;  %v2565_v34 = vrot.slane %v2563_v12, 3  ;;  %v2568_v22 = vrot.slane %v2566_v43, 4  ;;  %v2574_v38 = vshll.u32 %v2487_v20, 16  ;;  %5448 = vmatpush3.bf16.msra.mxu0 %v5823_v15  ;;  %v2489_v54 = vld [vmem:[#allocation3 + $0x68] sm:$0xf]  ;;  %v6782_v59 = vld [vmem:[#allocation9 + $0x200] sm:$0xff]  }
 0x290   : > { %5386 = vmatpush3.bf16.msra.mxu1 %v5815_v55  ;;  %v2281_v55 = vrot.slane %v2244_v58, 4  ;;  %v2166_v6 = vor.u32 %v2165_v0, %v2162_v46  ;;  %v2573_v44 = vrot.slane %v2571_v51, 3  ;;  %v2394_v9 = vshrl.u32 %v2316_v21, 16  ;;  %5449 = vmatprep.subr.bf16.mxu0 %v5824_v35  ;;  %v2318_v11 = vld [vmem:[#allocation3 + $0x50] sm:$0xf0] }
 0x291   : > { %5387 = vmatprep.subr.bf16.mxu1 %v5820_v28  ;;  %v2569_v40 = vor.u32 %v2568_v22, %v2565_v34  ;;  %v2576_v63 = vrot.slane %v2574_v38, 4  ;;  %v2397_v42 = vshll.u32 %v2316_v21, 16  ;;  %v2402_v45 = vshrl.u32 %v2317_v39, 16  ;;  %v2319_v46 = vld [vmem:[#allocation3 + $0x58] sm:$0x1f] }
 0x292   : > { %v2282_v18 = vsel %vm2267_vm14, %v2280_v14, %v2281_v55  ;;  %v2167_v28 = vsel %vm1946_vm4, %v2158_v17, %v2166_v6  ;;  %v2405_v25 = vshll.u32 %v2317_v39, 16  ;;  %v2396_v5 = vrot.slane %v2394_v9, 4  ;;  %v2488_v14 = vld [vmem:[#allocation3 + $0x60] sm:$0xf8]  ;;  %v5830_v55 = vld [vmem:[#allocation9 + $0x1f8] sm:$0xff]  }
 0x293   : > { %4023 = vmatmul.mubr.bf16.gmra.mrb[92].mxu1 %v2150_v16  ;;  %v2577_v47 = vor.u32 %v2576_v63, %v2573_v44  ;;  %v2399_v53 = vrot.slane %v2397_v42, 5  ;;  %v2404_v8 = vrot.slane %v2402_v45, 4  ;;  %5450 = vmatpush3.bf16.msra.mxu0 %v5825_v23  ;;  %v2284_v26 = vrot.slane %v2246_v29, 4  ;;  %v2077_v16 = vld [vmem:[#allocation3 + $0x50] sm:$0xf8] }
 0x294   : > { %5388 = vmatpush3.bf16.msra.mxu1 %v5821_v49  ;;  %4030 = vmatprep.mubr.bf16.mxu1 %v2282_v18  ;;  %v2407_v19 = vrot.slane %v2405_v25, 5  ;;  %v2283_v49 = vrot.slane %v2245_v60, 4  ;;  %v2169_v56 = vshrl.u32 %v2077_v16, 16  ;;  %v2172_v31 = vshll.u32 %v2077_v16, 16  ;;  %v2247_v63 = vld [vmem:[#allocation3 + $0x60] sm:$0xf0] }
 0x295   : > { %4120 = vmatmul.mubr.bf16.gmra.mrb[112].mxu0 %v2392_v10  ;;  %5389 = vmatprep.subr.bf16.mxu1 %v5826_v57  ;;  %v2578_v50 = vsel %vm1946_vm4, %v2569_v40, %v2577_v47  ;;  %v2400_v27 = vor.u32 %v2399_v53, %v2396_v5  ;;  %v2177_v41 = vshrl.u32 %v2078_v36, 16  ;;  %v2180_v1 = vshll.u32 %v2078_v36, 16  ;;  %v2248_v9 = vld [vmem:[#allocation3 + $0x68] sm:$0xf]  ;;  %v2079_v45 = vld [vmem:[#allocation3 + $0x60] sm:$0xf8] }
 0x296   : > { %4127 = vmatprep.mubr.bf16.mxu0 %v2578_v50  ;;  %v2408_v3 = vor.u32 %v2407_v19, %v2404_v8  ;;  %v2285_v58 = vsel %vm2267_vm14, %v2283_v49, %v2284_v26  ;;  %5451 = vmatprep.subr.bf16.mxu0 %v5828_v37  ;;  %v2171_v13 = vrot.slane %v2169_v56, 3  ;;  %v2174_v2 = vrot.slane %v2172_v31, 4  ;;  %v2080_v25 = vld [vmem:[#allocation3 + $0x68] sm:$0xf]  ;;  %v2490_v29 = vld [vmem:[#allocation3 + $0x70] sm:$0xf8] }
 0x297   : > { %v2179_v30 = vrot.slane %v2177_v41, 3  ;;  %5452 = vmatpush3.bf16.msra.mxu0 %v5829_v48  ;;  %v2182_v61 = vrot.slane %v2180_v1, 4  ;;  %v2580_v24 = vshrl.u32 %v2488_v14, 16  ;;  %v2583_v18 = vshll.u32 %v2488_v14, 16  ;;  %v2491_v50 = vld [vmem:[#allocation3 + $0x78] sm:$0xf] }
 0x298   : > { %5390 = vmatpush3.bf16.msra.mxu1 %v5827_v32  ;;  %v2409_v62 = vsel %vm2324_vm15, %v2400_v27, %v2408_v3  ;;  %v2588_v4 = vshrl.u32 %v2489_v54, 16  ;;  %5453 = vmatprep.subr.bf16.mxu0 %v5830_v55  ;;  %v2175_v7 = vor.u32 %v2174_v2, %v2171_v13  ;;  %v2591_v52 = vshll.u32 %v2489_v54, 16  ;;  %v2320_v48 = vld [vmem:[#allocation3 + $0x60] sm:$0xf0]  ;;  %v2321_v55 = vld [vmem:[#allocation3 + $0x68] sm:$0x1f] }
 0x299   : > { %v2183_v20 = vor.u32 %v2182_v61, %v2179_v30  ;;  %v2582_v12 = vrot.slane %v2580_v24, 3  ;;  %v2585_v43 = vrot.slane %v2583_v18, 4  ;;  %v2411_v51 = vshrl.u32 %v2318_v11, 16  ;;  %5555 = vmatprep.subr.bf16.mxu1 %v6782_v59 }
 0x29a   : > { %v2590_v10 = vrot.slane %v2588_v4, 3  ;;  %v2593_v0 = vrot.slane %v2591_v52, 4  ;;  %v2414_v15 = vshll.u32 %v2318_v11, 16  ;;  %v2419_v17 = vshrl.u32 %v2319_v46, 16  ;;  %v2249_v11 = vld [vmem:[#allocation3 + $0x70] sm:$0xf0] }
 0x29b   : > { %4031 = vmatmul.mubr.bf16.gmra.mrb[96].mxu1 %v2167_v28  ;;  %5454 = vmatpush3.bf16.msra.mxu0 %v5831_v33  ;;  %v2184_v34 = vsel %vm1946_vm4, %v2175_v7, %v2183_v20  ;;  %v2586_v22 = vor.u32 %v2585_v43, %v2582_v12  ;;  %v2422_v38 = vshll.u32 %v2319_v46, 16  ;;  %v2413_v6 = vrot.slane %v2411_v51, 4  ;;  %v2250_v43 = vld [vmem:[#allocation3 + $0x78] sm:$0xf] }
 0x29c   : > { %4038 = vmatprep.mubr.bf16.mxu1 %v2285_v58  ;;  %v2594_v35 = vor.u32 %v2593_v0, %v2590_v10  ;;  %v2416_v44 = vrot.slane %v2414_v15, 5  ;;  %v2421_v21 = vrot.slane %v2419_v17, 4  ;;  %v2286_v57 = vrot.slane %v2247_v63, 4  ;;  %v2081_v0 = vld [vmem:[#allocation3 + $0x70] sm:$0xf8] }
 0x29d   : > { %4128 = vmatmul.mubr.bf16.gmra.mrb[116].mxu0 %v2409_v62  ;;  %v2424_v39 = vrot.slane %v2422_v38, 5  ;;  %v2287_v28 = vrot.slane %v2248_v9, 4  ;;  %v2186_v47 = vshrl.u32 %v2079_v45, 16  ;;  %v2189_v5 = vshll.u32 %v2079_v45, 16  ;;  %v2082_v15 = vld [vmem:[#allocation3 + $0x78] sm:$0xf] }
 0x29e   : > { %v2595_v23 = vsel %vm1946_vm4, %v2586_v22, %v2594_v35  ;;  %v2417_v40 = vor.u32 %v2416_v44, %v2413_v6  ;;  %v2194_v8 = vshrl.u32 %v2080_v25, 16  ;;  %v2197_v19 = vshll.u32 %v2080_v25, 16  ;;  %v2492_v6 = vld [vmem:[#allocation3 + $0x80] sm:$0xf8] }
 0x29f   : > { %4135 = vmatprep.mubr.bf16.mxu0 %v2595_v23  ;;  %v2425_v42 = vor.u32 %v2424_v39, %v2421_v21  ;;  %v2288_v60 = vsel %vm2267_vm14, %v2286_v57, %v2287_v28  ;;  %v2188_v49 = vrot.slane %v2186_v47, 3  ;;  %v2191_v32 = vrot.slane %v2189_v5, 4  ;;  %v2493_v39 = vld [vmem:[#allocation3 + $0x88] sm:$0xf]  ;;  %v2322_v47 = vld [vmem:[#allocation3 + $0x70] sm:$0xf0] }
 0x2a0   : > { %v2597_v27 = vshrl.u32 %v2490_v29, 16  ;;  %v2600_v26 = vshll.u32 %v2490_v29, 16  ;;  %v2196_v16 = vrot.slane %v2194_v8, 3  ;;  %v2199_v36 = vrot.slane %v2197_v19, 4  ;;  %v2323_v8 = vld [vmem:[#allocation3 + $0x78] sm:$0x1f] }
 0x2a1   : > { %v2426_v53 = vsel %vm2324_vm15, %v2417_v40, %v2425_v42  ;;  %v2605_v37 = vshrl.u32 %v2491_v50, 16  ;;  %v2608_v3 = vshll.u32 %v2491_v50, 16  ;;  %v2192_v56 = vor.u32 %v2191_v32, %v2188_v49 }
 0x2a2   : > { %v2599_v31 = vrot.slane %v2597_v27, 3  ;;  %v2602_v41 = vrot.slane %v2600_v26, 4  ;;  %v2200_v58 = vor.u32 %v2199_v36, %v2196_v16  ;;  %v2428_v62 = vshrl.u32 %v2320_v48, 16 }
 0x2a3   : > { %4039 = vmatmul.mubr.bf16.gmra.mrb[100].mxu1 %v2184_v34  ;;  %v2607_v1 = vrot.slane %v2605_v37, 3  ;;  %v2610_v14 = vrot.slane %v2608_v3, 4  ;;  %v2431_v2 = vshll.u32 %v2320_v48, 16  ;;  %v2436_v30 = vshrl.u32 %v2321_v55, 16 }
 0x2a4   : > { %4046 = vmatprep.mubr.bf16.mxu1 %v2288_v60  ;;  %v2603_v13 = vor.u32 %v2602_v41, %v2599_v31  ;;  %v2439_v54 = vshll.u32 %v2321_v55, 16  ;;  %v2201_v33 = vsel %vm1946_vm4, %v2192_v56, %v2200_v58  ;;  %v2430_v24 = vrot.slane %v2428_v62, 4  ;;  %v2718_v31 = vld [vmem:[#allocation3 + $0x10] sm:$0xf0]  ;;  %v2719_v58 = vld [vmem:[#allocation3 + $0x18] sm:$0x1f] }
 0x2a5   : > { %4136 = vmatmul.mubr.bf16.gmra.mrb[120].mxu0 %v2426_v53  ;;  %v2611_v61 = vor.u32 %v2610_v14, %v2607_v1  ;;  %v2433_v18 = vrot.slane %v2431_v2, 5  ;;  %v2438_v4 = vrot.slane %v2436_v30, 4  ;;  %v2289_v10 = vrot.slane %v2249_v11, 4  ;;  %v3056_v11 = vld [vmem:[#allocation3 + $0x28] sm:$0xf] }
 0x2a6   : > { %v2441_v7 = vrot.slane %v2439_v54, 5  ;;  %v2290_v46 = vrot.slane %v2250_v43, 4  ;;  %v2203_v17 = vshrl.u32 %v2081_v0, 16  ;;  %v2206_v34 = vshll.u32 %v2081_v0, 16  ;;  %v2888_v0 = vld [vmem:[#allocation3 + $0x28] sm:$0xf] }
 0x2a7   : > { %v2612_v52 = vsel %vm1946_vm4, %v2603_v13, %v2611_v61  ;;  %v2434_v20 = vor.u32 %v2433_v18, %v2430_v24  ;;  %v2211_v38 = vshrl.u32 %v2082_v15, 16  ;;  %v2214_v35 = vshll.u32 %v2082_v15, 16  ;;  %v2646_v13 = vld [vmem:[#allocation3 + $0x10] sm:$0xf0] }
 0x2a8   : > { %4143 = vmatprep.mubr.bf16.mxu0 %v2612_v52  ;;  %v2442_v12 = vor.u32 %v2441_v7, %v2438_v4  ;;  %v2291_v22 = vsel %vm2267_vm14, %v2289_v10, %v2290_v46  ;;  %v2205_v44 = vrot.slane %v2203_v17, 3  ;;  %v2208_v21 = vrot.slane %v2206_v34, 4  ;;  %v3055_v52 = vld [vmem:[#allocation3 + $0x20] sm:$0xf0] }
 0x2a9   : > { %v2614_v23 = vshrl.u32 %v2492_v6, 16  ;;  %v2617_v40 = vshll.u32 %v2492_v6, 16  ;;  %v2213_v63 = vrot.slane %v2211_v38, 3  ;;  %v2216_v9 = vrot.slane %v2214_v35, 4  ;;  %v2887_v46 = vld [vmem:[#allocation3 + $0x20] sm:$0xf8] }
 0x2aa   : > { %v2443_v51 = vsel %vm2324_vm15, %v2434_v20, %v2442_v12  ;;  %v2622_v42 = vshrl.u32 %v2493_v39, 16  ;;  %v2625_v57 = vshll.u32 %v2493_v39, 16  ;;  %v2209_v28 = vor.u32 %v2208_v21, %v2205_v44  ;;  %v2720_v38 = vld [vmem:[#allocation3 + $0x20] sm:$0xf0]  ;;  %v2721_v44 = vld [vmem:[#allocation3 + $0x28] sm:$0x1f] }
 0x2ab   : > { %4047 = vmatmul.mubr.bf16.gmra.mrb[104].mxu1 %v2201_v33  ;;  %v2616_v45 = vrot.slane %v2614_v23, 3  ;;  %v2619_v25 = vrot.slane %v2617_v40, 4  ;;  %v2217_v5 = vor.u32 %v2216_v9, %v2213_v63  ;;  %v2445_v19 = vshrl.u32 %v2322_v47, 16  ;;  %v2647_v33 = vld [vmem:[#allocation3 + $0x18] sm:$0xf] }
 0x2ac   : > { %4054 = vmatprep.mubr.bf16.mxu1 %v2291_v22  ;;  %v2624_v53 = vrot.slane %v2622_v42, 3  ;;  %v2627_v60 = vrot.slane %v2625_v57, 4  ;;  %v2448_v49 = vshll.u32 %v2322_v47, 16  ;;  %v2453_v32 = vshrl.u32 %v2323_v8, 16  ;;  %v2648_v23 = vld [vmem:[#allocation3 + $0x20] sm:$0xf0] }
 0x2ad   : > { %4144 = vmatmul.mubr.bf16.gmra.mrb[124].mxu0 %v2443_v51  ;;  %v2620_v29 = vor.u32 %v2619_v25, %v2616_v45  ;;  %v2456_v50 = vshll.u32 %v2323_v8, 16  ;;  %v2218_v27 = vsel %vm1946_vm4, %v2209_v28, %v2217_v5  ;;  %v2447_v16 = vrot.slane %v2445_v19, 4  ;;  %v5833_v51 = vld [vmem:[#allocation9 + $0x208] sm:$0xff]   ;;  %v3057_v19 = vld [vmem:[#allocation3 + $0x30] sm:$0xf0] }
 0x2ae   : > { %v2628_v26 = vor.u32 %v2627_v60, %v2624_v53  ;;  %v2450_v36 = vrot.slane %v2448_v49, 5  ;;  %v2455_v37 = vrot.slane %v2453_v32, 4  ;;  %v2735_v1 = vshrl.u32 %v2718_v31, 16  ;;  %v2649_v57 = vld [vmem:[#allocation3 + $0x28] sm:$0xf] }
 0x2af   : > { %v2458_v3 = vrot.slane %v2456_v50, 5  ;;  %v2738_v14 = vshll.u32 %v2718_v31, 16  ;;  %v2743_v55 = vshrl.u32 %v2719_v58, 16  ;;  %v2746_v62 = vshll.u32 %v2719_v58, 16  ;;  %v3058_v50 = vld [vmem:[#allocation3 + $0x38] sm:$0xf] }
 0x2b0   : > { %v2629_v56 = vsel %vm1946_vm4, %v2620_v29, %v2628_v26  ;;  %v2451_v41 = vor.u32 %v2450_v36, %v2447_v16  ;;  %v2737_v30 = vrot.slane %v2735_v1, 4  ;;  %v2678_v61 = vrot.slane %v2646_v13, 4  ;;  %v5834_v26 = vld [vmem:[#allocation9 + $0x210] sm:$0xff]  }
 0x2b1   : > { %4151 = vmatprep.mubr.bf16.mxu0 %v2629_v56  ;;  %v2459_v48 = vor.u32 %v2458_v3, %v2455_v37  ;;  %v2740_v54 = vrot.slane %v2738_v14, 5  ;;  %v2745_v24 = vrot.slane %v2743_v55, 4  ;;  %v2748_v18 = vrot.slane %v2746_v62, 5  ;;  %v2889_v3 = vld [vmem:[#allocation3 + $0x30] sm:$0xf8] }
 0x2b2   : > { %v2679_v4 = vrot.slane %v2647_v33, 4  ;;  %v3087_v43 = vrot.slane %v3055_v52, 4  ;;  %v3088_v10 = vrot.slane %v3056_v11, 4  ;;  %v2904_v15 = vshrl.u32 %v2887_v46, 16  ;;  %v2890_v56 = vld [vmem:[#allocation3 + $0x38] sm:$0xf] }
 0x2b3   : > { %4055 = vmatmul.mubr.bf16.gmra.mrb[108].mxu1 %v2218_v27  ;;  %v2460_v2 = vsel %vm2324_vm15, %v2451_v41, %v2459_v48  ;;  %v2741_v7 = vor.u32 %v2740_v54, %v2737_v30  ;;  %v2749_v20 = vor.u32 %v2748_v18, %v2745_v24  ;;  %v2907_v17 = vshll.u32 %v2887_v46, 16  ;;  %v2722_v58 = vld [vmem:[#allocation3 + $0x30] sm:$0xf0]  ;;  %v2723_v55 = vld [vmem:[#allocation3 + $0x38] sm:$0x1f] }
 0x2b4   : > { %v2680_v12 = vsel %vm2267_vm14, %v2678_v61, %v2679_v4  ;;  %v2912_v34 = vshrl.u32 %v2888_v0, 16  ;;  %v2915_v22 = vshll.u32 %v2888_v0, 16  ;;  %v3089_v6 = vsel %vm2267_vm14, %v3087_v43, %v3088_v10  ;;  %v2650_v61 = vld [vmem:[#allocation3 + $0x30] sm:$0xf0]  ;;  %v5835_v24 = vld [vmem:[#allocation9 + $0x218] sm:$0xff]  }
 0x2b5   : > { %4152 = vmatmul.mubr.bf16.gmra.mrb[128].mxu0 %v2460_v2  ;;  %v2750_v35 = vsel %vm2324_vm15, %v2741_v7, %v2749_v20  ;;  %v2752_v21 = vshrl.u32 %v2720_v38, 16  ;;  %v2755_v39 = vshll.u32 %v2720_v38, 16  ;;  %v2906_v40 = vrot.slane %v2904_v15, 3  ;;  %v2651_v11 = vld [vmem:[#allocation3 + $0x38] sm:$0xf]  ;;  %v5836_v15 = vld [vmem:[#allocation9 + $0x220] sm:$0xff]  }
 0x2b6   : > { %4192 = vmatprep.mubr.bf16.mxu1 %v2750_v35  ;;  %4289 = vmatprep.mubr.bf16.mxu0 %v3089_v6  ;;  %v2909_v63 = vrot.slane %v2907_v17, 4  ;;  %v2914_v9 = vrot.slane %v2912_v34, 3  ;;  %v2917_v42 = vrot.slane %v2915_v22, 4  ;;  %v2760_v25 = vshrl.u32 %v2721_v44, 16  ;;  %v3060_v38 = vld [vmem:[#allocation3 + $0x48] sm:$0xf] }
 0x2b7   : > { %v2754_v28 = vrot.slane %v2752_v21, 4  ;;  %v2757_v45 = vrot.slane %v2755_v39, 5  ;;  %v2763_v47 = vshll.u32 %v2721_v44, 16  ;;  %v2681_v60 = vrot.slane %v2648_v23, 4  ;;  %v2891_v6 = vld [vmem:[#allocation3 + $0x40] sm:$0xf8] }
 0x2b8   : > { %v2910_v5 = vor.u32 %v2909_v63, %v2906_v40  ;;  %v2918_v53 = vor.u32 %v2917_v42, %v2914_v9  ;;  %v2682_v8 = vrot.slane %v2649_v57, 4  ;;  %v2762_v49 = vrot.slane %v2760_v25, 4  ;;  %v2892_v39 = vld [vmem:[#allocation3 + $0x48] sm:$0xf]  ;;  %v2724_v57 = vld [vmem:[#allocation3 + $0x40] sm:$0xf0] }
 0x2b9   : > { %v2758_v29 = vor.u32 %v2757_v45, %v2754_v28  ;;  %v2765_v32 = vrot.slane %v2763_v47, 5  ;;  %v3090_v27 = vrot.slane %v3057_v19, 4  ;;  %v3091_v37 = vrot.slane %v3058_v50, 4  ;;  %v2725_v28 = vld [vmem:[#allocation3 + $0x48] sm:$0x1f] }
 0x2ba   : > { %v2919_v16 = vsel %vm1946_vm4, %v2910_v5, %v2918_v53  ;;  %v2683_v36 = vsel %vm2267_vm14, %v2681_v60, %v2682_v8  ;;  %v2921_v31 = vshrl.u32 %v2889_v3, 16  ;;  %v2924_v41 = vshll.u32 %v2889_v3, 16  ;;  %v2652_v53 = vld [vmem:[#allocation3 + $0x40] sm:$0xf0] }
 0x2bb   : > { %4193 = vmatmul.mubr.bf16.vlgmr.msra.gmra.mrb[112].mxu1 %v2680_v12  ;;  %v2929_v48 = vshrl.u32 %v2890_v56, 16  ;;  %v3092_v1 = vsel %vm2267_vm14, %v3090_v27, %v3091_v37  ;;  %v2932_v14 = vshll.u32 %v2890_v56, 16  ;;  %v2769_v62 = vshrl.u32 %v2722_v58, 16 }
 0x2bc   : > { %5556 = vmatpush3.bf16.msra.mxu1 %v6782_v59  ;;  %v2766_v59 = vor.u32 %v2765_v32, %v2762_v49  ;;  %v2772_v13 = vshll.u32 %v2722_v58, 16  ;;  %v2923_v30 = vrot.slane %v2921_v31, 3  ;;  %v2926_v54 = vrot.slane %v2924_v41, 4  ;;  %v2653_v49 = vld [vmem:[#allocation3 + $0x48] sm:$0xf] }
 0x2bd   : > { %5557 = vmatprep.subr.bf16.mxu1 %v5833_v51  ;;  %4290 = vmatmul.mubr.bf16.vlgmr.msra.gmra.mrb[132].mxu0 %v2919_v16  ;;  %v2931_v33 = vrot.slane %v2929_v48, 3  ;;  %v2934_v18 = vrot.slane %v2932_v14, 4  ;;  %v2771_v4 = vrot.slane %v2769_v62, 4  ;;  %v2777_v52 = vshrl.u32 %v2723_v55, 16  ;;  %v5837_v32 = vld [vmem:[#allocation9 + $0x228] sm:$0xff]  }
 0x2be   : > { %v2767_v2 = vsel %vm2324_vm15, %v2758_v29, %v2766_v59  ;;  %4297 = vmatprep.mubr.bf16.mxu0 %v3092_v1  ;;  %v2774_v7 = vrot.slane %v2772_v13, 5  ;;  %v2927_v20 = vor.u32 %v2926_v54, %v2923_v30  ;;  %v2780_v12 = vshll.u32 %v2723_v55, 16  ;;  %v3061_v41 = vld [vmem:[#allocation3 + $0x50] sm:$0xf0]  ;;  %v3062_v48 = vld [vmem:[#allocation3 + $0x58] sm:$0xf] }
 0x2bf   : > { %4200 = vmatprep.mubr.bf16.mxu1 %v2767_v2  ;;  %v2684_v43 = vrot.slane %v2650_v61, 4  ;;  %v2685_v10 = vrot.slane %v2651_v11, 4  ;;  %v2935_v46 = vor.u32 %v2934_v18, %v2931_v33  ;;  %v2779_v0 = vrot.slane %v2777_v52, 4  ;;  %v2893_v62 = vld [vmem:[#allocation3 + $0x50] sm:$0xf8] }
 0x2c0   : > { %5558 = vmatpush3.bf16.msra.mxu1 %v5833_v51  ;;  %v3059_v51 = vld [vmem:[#allocation3 + $0x40] sm:$0xf0]  ;;  %v2775_v17 = vor.u32 %v2774_v7, %v2771_v4  ;;  %v2782_v34 = vrot.slane %v2780_v12, 5  ;;  %v3094_v21 = vrot.slane %v3060_v38, 4  ;;  %v2938_v23 = vshrl.u32 %v2891_v6, 16 }
 0x2c1   : > { %5559 = vmatprep.subr.bf16.mxu1 %v5834_v26  ;;  %v2686_v22 = vsel %vm2267_vm14, %v2684_v43, %v2685_v10  ;;  %v3093_v35 = vrot.slane %v3059_v51, 4  ;;  %v2936_v44 = vsel %vm1946_vm4, %v2927_v20, %v2935_v46  ;;  %v2941_v40 = vshll.u32 %v2891_v6, 16  ;;  %v2894_v13 = vld [vmem:[#allocation3 + $0x58] sm:$0xf]  ;;  %v2726_v61 = vld [vmem:[#allocation3 + $0x50] sm:$0xf0] }
 0x2c2   : > { %v2783_v63 = vor.u32 %v2782_v34, %v2779_v0  ;;  %v2946_v9 = vshrl.u32 %v2892_v39, 16  ;;  %v2949_v42 = vshll.u32 %v2892_v39, 16  ;;  %v2940_v25 = vrot.slane %v2938_v23, 3  ;;  %v2727_v7 = vld [vmem:[#allocation3 + $0x58] sm:$0x1f] }
 0x2c3   : > { %4201 = vmatmul.mubr.bf16.gmra.mrb[116].mxu1 %v2683_v36  ;;  %v3095_v45 = vsel %vm2267_vm14, %v3093_v35, %v3094_v21  ;;  %v2943_v47 = vrot.slane %v2941_v40, 4  ;;  %v2786_v5 = vshrl.u32 %v2724_v57, 16  ;;  %v2789_v29 = vshll.u32 %v2724_v57, 16  ;;  %v5839_v20 = vld [vmem:[#allocation9 + $0x238] sm:$0xff]   ;;  %v2654_v0 = vld [vmem:[#allocation3 + $0x50] sm:$0xf0] }
 0x2c4   : > { %5560 = vmatpush3.bf16.msra.mxu1 %v5834_v26  ;;  %v2784_v60 = vsel %vm2324_vm15, %v2775_v17, %v2783_v63  ;;  %v2948_v8 = vrot.slane %v2946_v9, 3  ;;  %v2951_v19 = vrot.slane %v2949_v42, 4  ;;  %v2794_v26 = vshrl.u32 %v2725_v28, 16  ;;  %v2655_v51 = vld [vmem:[#allocation3 + $0x58] sm:$0xf] }
 0x2c5   : > { %5561 = vmatprep.subr.bf16.mxu1 %v5835_v24  ;;  %4298 = vmatmul.mubr.bf16.gmra.mrb[136].mxu0 %v2936_v44  ;;  %v2944_v50 = vor.u32 %v2943_v47, %v2940_v25  ;;  %v2788_v27 = vrot.slane %v2786_v5, 4  ;;  %v2797_v16 = vshll.u32 %v2725_v28, 16  ;;  %v2791_v37 = vrot.slane %v2789_v29, 5  ;;  %v3063_v40 = vld [vmem:[#allocation3 + $0x60] sm:$0xf0] }
 0x2c6   : > { %4305 = vmatprep.mubr.bf16.mxu0 %v3095_v45  ;;  %4208 = vmatprep.mubr.bf16.mxu1 %v2784_v60  ;;  %v2952_v36 = vor.u32 %v2951_v19, %v2948_v8  ;;  %v2687_v3 = vrot.slane %v2652_v53, 4  ;;  %v2688_v56 = vrot.slane %v2653_v49, 4  ;;  %v2796_v59 = vrot.slane %v2794_v26, 4  ;;  %v3064_v63 = vld [vmem:[#allocation3 + $0x68] sm:$0xf] }
 0x2c7   : > { %v2799_v31 = vrot.slane %v2797_v16, 5  ;;  %v2792_v1 = vor.u32 %v2791_v37, %v2788_v27  ;;  %v3096_v55 = vrot.slane %v3061_v41, 4  ;;  %v3097_v30 = vrot.slane %v3062_v48, 4  ;;  %v2895_v45 = vld [vmem:[#allocation3 + $0x60] sm:$0xf8] }
 0x2c8   : > { %5562 = vmatpush3.bf16.msra.mxu1 %v5835_v24  ;;  %v2953_v58 = vsel %vm1946_vm4, %v2944_v50, %v2952_v36  ;;  %v2689_v14 = vsel %vm2267_vm14, %v2687_v3, %v2688_v56  ;;  %v2955_v54 = vshrl.u32 %v2893_v62, 16  ;;  %v2958_v33 = vshll.u32 %v2893_v62, 16  ;;  %v5838_v24 = vld [vmem:[#allocation9 + $0x230] sm:$0xff]   ;;  %v2896_v5 = vld [vmem:[#allocation3 + $0x68] sm:$0xf] }
 0x2c9   : > { %5563 = vmatprep.subr.bf16.mxu1 %v5836_v15  ;;  %v2800_v2 = vor.u32 %v2799_v31, %v2796_v59  ;;  %v2963_v18 = vshrl.u32 %v2894_v13, 16  ;;  %v2966_v4 = vshll.u32 %v2894_v13, 16  ;;  %v2803_v52 = vshrl.u32 %v2726_v61, 16  ;;  %v2728_v8 = vld [vmem:[#allocation3 + $0x60] sm:$0xf0] }
 0x2ca   : > { %v2806_v11 = vshll.u32 %v2726_v61, 16  ;;  %v3098_v43 = vsel %vm2267_vm14, %v3096_v55, %v3097_v30  ;;  %v2957_v10 = vrot.slane %v2955_v54, 3  ;;  %v2960_v46 = vrot.slane %v2958_v33, 4  ;;  %v2729_v50 = vld [vmem:[#allocation3 + $0x68] sm:$0x1f] }
 0x2cb   : > { %4209 = vmatmul.mubr.bf16.gmra.mrb[120].mxu1 %v2686_v22  ;;  %v2801_v12 = vsel %vm2324_vm15, %v2792_v1, %v2800_v2  ;;  %v2968_v17 = vrot.slane %v2966_v4, 4  ;;  %v2805_v34 = vrot.slane %v2803_v52, 4  ;;  %v2811_v35 = vshrl.u32 %v2727_v7, 16  ;;  %v2656_v27 = vld [vmem:[#allocation3 + $0x60] sm:$0xf0] }
 0x2cc   : > { %5564 = vmatpush3.bf16.msra.mxu1 %v5836_v15  ;;  %4216 = vmatprep.mubr.bf16.mxu1 %v2801_v12  ;;  %v2965_v15 = vrot.slane %v2963_v18, 3  ;;  %v2808_v22 = vrot.slane %v2806_v11, 5  ;;  %v2961_v38 = vor.u32 %v2960_v46, %v2957_v10  ;;  %v2814_v6 = vshll.u32 %v2727_v7, 16  ;;  %v2657_v3 = vld [vmem:[#allocation3 + $0x68] sm:$0xf] }
 0x2cd   : > { %5565 = vmatprep.subr.bf16.mxu1 %v5837_v32  ;;  %4306 = vmatmul.mubr.bf16.gmra.mrb[140].mxu0 %v2953_v58  ;;  %v2690_v44 = vrot.slane %v2654_v0, 4  ;;  %v2691_v23 = vrot.slane %v2655_v51, 4  ;;  %v2813_v9 = vrot.slane %v2811_v35, 4  ;;  %v3099_v57 = vrot.slane %v3063_v40, 4  ;;  %v3065_v30 = vld [vmem:[#allocation3 + $0x70] sm:$0xf0] }
 0x2ce   : > { %4313 = vmatprep.mubr.bf16.mxu0 %v3098_v43  ;;  %v2969_v21 = vor.u32 %v2968_v17, %v2965_v15  ;;  %v2809_v39 = vor.u32 %v2808_v22, %v2805_v34  ;;  %v2816_v42 = vrot.slane %v2814_v6, 5  ;;  %v3100_v28 = vrot.slane %v3064_v63, 4  ;;  %v3066_v61 = vld [vmem:[#allocation3 + $0x78] sm:$0xf]  ;;  %v2897_v18 = vld [vmem:[#allocation3 + $0x70] sm:$0xf8] }
 0x2cf   : > { %v2692_v47 = vsel %vm2267_vm14, %v2690_v44, %v2691_v23  ;;  %v2972_v53 = vshrl.u32 %v2895_v45, 16  ;;  %v2975_v60 = vshll.u32 %v2895_v45, 16  ;;  %v2980_v49 = vshrl.u32 %v2896_v5, 16  ;;  %v2898_v11 = vld [vmem:[#allocation3 + $0x78] sm:$0xf] }
 0x2d0   : > { %5566 = vmatpush3.bf16.msra.mxu1 %v5837_v32  ;;  %v2970_v25 = vsel %vm1946_vm4, %v2961_v38, %v2969_v21  ;;  %v2817_v19 = vor.u32 %v2816_v42, %v2813_v9  ;;  %v3101_v29 = vsel %vm2267_vm14, %v3099_v57, %v3100_v28  ;;  %v2983_v32 = vshll.u32 %v2896_v5, 16  ;;  %v2730_v12 = vld [vmem:[#allocation3 + $0x70] sm:$0xf0]  ;;  %v2731_v51 = vld [vmem:[#allocation3 + $0x78] sm:$0x1f] }
 0x2d1   : > { %5567 = vmatprep.subr.bf16.mxu1 %v5838_v24  ;;  %v2974_v26 = vrot.slane %v2972_v53, 3  ;;  %v2977_v16 = vrot.slane %v2975_v60, 4  ;;  %v2820_v36 = vshrl.u32 %v2728_v8, 16  ;;  %v2823_v37 = vshll.u32 %v2728_v8, 16  ;;  %v2658_v38 = vld [vmem:[#allocation3 + $0x70] sm:$0xf0] }
 0x2d2   : > { %v2818_v56 = vsel %vm2324_vm15, %v2809_v39, %v2817_v19  ;;  %v2982_v59 = vrot.slane %v2980_v49, 3  ;;  %v2985_v31 = vrot.slane %v2983_v32, 4  ;;  %v2828_v41 = vshrl.u32 %v2729_v50, 16  ;;  %v2659_v39 = vld [vmem:[#allocation3 + $0x78] sm:$0xf] }
 0x2d3   : > { %4217 = vmatmul.mubr.bf16.gmra.mrb[124].mxu1 %v2689_v14  ;;  %v2978_v48 = vor.u32 %v2977_v16, %v2974_v26  ;;  %v2822_v58 = vrot.slane %v2820_v36, 4  ;;  %v2825_v1 = vrot.slane %v2823_v37, 5  ;;  %v2831_v14 = vshll.u32 %v2729_v50, 16  ;;  %v3068_v60 = vld [vmem:[#allocation3 + $0x88] sm:$0xf] }
 0x2d4   : > { %5568 = vmatpush3.bf16.msra.mxu1 %v5838_v24  ;;  %4224 = vmatprep.mubr.bf16.mxu1 %v2818_v56  ;;  %v2986_v55 = vor.u32 %v2985_v31, %v2982_v59  ;;  %v2830_v62 = vrot.slane %v2828_v41, 4  ;;  %v2693_v13 = vrot.slane %v2656_v27, 4  ;;  %v2694_v2 = vrot.slane %v2657_v3, 4  ;;  %v2899_v32 = vld [vmem:[#allocation3 + $0x80] sm:$0xf8] }
 0x2d5   : > { %5569 = vmatprep.subr.bf16.mxu1 %v5839_v20  ;;  %4314 = vmatmul.mubr.bf16.gmra.mrb[144].mxu0 %v2970_v25  ;;  %v2826_v54 = vor.u32 %v2825_v1, %v2822_v58  ;;  %v2833_v33 = vrot.slane %v2831_v14, 5  ;;  %v3102_v24 = vrot.slane %v3065_v30, 4  ;;  %v3103_v52 = vrot.slane %v3066_v61, 4  ;;  %v3067_v25 = vld [vmem:[#allocation3 + $0x80] sm:$0xf0] }
 0x2d6   : > { %4321 = vmatprep.mubr.bf16.mxu0 %v3101_v29  ;;  %v2987_v4 = vsel %vm1946_vm4, %v2978_v48, %v2986_v55  ;;  %v2695_v7 = vsel %vm2267_vm14, %v2693_v13, %v2694_v2  ;;  %v2992_v10 = vshll.u32 %v2897_v18, 16  ;;  %v2997_v46 = vshrl.u32 %v2898_v11, 16  ;;  %v2900_v50 = vld [vmem:[#allocation3 + $0x88] sm:$0xf]  ;;  %v2732_v37 = vld [vmem:[#allocation3 + $0x80] sm:$0xf0] }
 0x2d7   : > { %v2834_v43 = vor.u32 %v2833_v33, %v2830_v62  ;;  %v3000_v0 = vshll.u32 %v2898_v11, 16  ;;  %v3104_v15 = vsel %vm2267_vm14, %v3102_v24, %v3103_v52  ;;  %v2837_v34 = vshrl.u32 %v2730_v12, 16  ;;  %v2733_v59 = vld [vmem:[#allocation3 + $0x88] sm:$0x1f]  ;;  %v2660_v55 = vld [vmem:[#allocation3 + $0x80] sm:$0xf0] }
 0x2d8   : > { %5570 = vmatpush3.bf16.msra.mxu1 %v5839_v20  ;;  %v2989_v20 = vshrl.u32 %v2897_v18, 16  ;;  %v2840_v22 = vshll.u32 %v2730_v12, 16  ;;  %v2994_v6 = vrot.slane %v2992_v10, 4  ;;  %v2999_v44 = vrot.slane %v2997_v46, 3  ;;  %v3069_v52 = vld [vmem:[#allocation3 + $0x90] sm:$0xf0] }
 0x2d9   : > { %v2835_v35 = vsel %vm2324_vm15, %v2826_v54, %v2834_v43  ;;  %v3002_v21 = vrot.slane %v3000_v0, 4  ;;  %v2839_v23 = vrot.slane %v2837_v34, 4  ;;  %v2845_v63 = vshrl.u32 %v2731_v51, 16  ;;  %v2661_v54 = vld [vmem:[#allocation3 + $0x88] sm:$0xf] }
 0x2da   : > { %v2991_v17 = vrot.slane %v2989_v20, 3  ;;  %v2842_v40 = vrot.slane %v2840_v22, 5  ;;  %v2848_v9 = vshll.u32 %v2731_v51, 16  ;;  %v2696_v28 = vrot.slane %v2658_v38, 4  ;;  %v3070_v43 = vld [vmem:[#allocation3 + $0x98] sm:$0xf] }
 0x2db   : > { %4225 = vmatmul.mubr.bf16.gmra.mrb[128].mxu1 %v2692_v47  ;;  %v3003_v57 = vor.u32 %v3002_v21, %v2999_v44  ;;  %v2697_v45 = vrot.slane %v2659_v39, 4  ;;  %v2847_v5 = vrot.slane %v2845_v63, 4  ;;  %v3105_v8 = vrot.slane %v3067_v25, 4  ;;  %v2901_v46 = vld [vmem:[#allocation3 + $0x90] sm:$0xf8] }
 0x2dc   : > { %4232 = vmatprep.mubr.bf16.mxu1 %v2835_v35  ;;  %v2995_v42 = vor.u32 %v2994_v6, %v2991_v17  ;;  %v2843_v47 = vor.u32 %v2842_v40, %v2839_v23  ;;  %v2850_v53 = vrot.slane %v2848_v9, 5  ;;  %v3106_v49 = vrot.slane %v3068_v60, 4  ;;  %v3127_v6 = vld [vmem:[#allocation3 + $0x20] sm:$0xf0]  ;;  %v3128_v44 = vld [vmem:[#allocation3 + $0x28] sm:$0x1f] }
 0x2dd   : > { %4322 = vmatmul.mubr.bf16.gmra.mrb[148].mxu0 %v2987_v4  ;;  %v2698_v29 = vsel %vm2267_vm14, %v2696_v28, %v2697_v45  ;;  %v3006_v26 = vshrl.u32 %v2899_v32, 16  ;;  %v3009_v16 = vshll.u32 %v2899_v32, 16  ;;  %v3014_v36 = vshrl.u32 %v2900_v50, 16  ;;  %v3129_v63 = vld [vmem:[#allocation3 + $0x30] sm:$0xf0] }
 0x2de   : > { %4329 = vmatprep.mubr.bf16.mxu0 %v3104_v15  ;;  %v3004_v19 = vsel %vm1946_vm4, %v2995_v42, %v3003_v57  ;;  %v2851_v27 = vor.u32 %v2850_v53, %v2847_v5  ;;  %v3107_v3 = vsel %vm2267_vm14, %v3105_v8, %v3106_v49  ;;  %v3017_v56 = vshll.u32 %v2900_v50, 16  ;;  %v2902_v15 = vld [vmem:[#allocation3 + $0x98] sm:$0xf]  ;;  %v3131_v49 = vld [vmem:[#allocation3 + $0x40] sm:$0xf0] }
 0x2df   : > { %v2854_v31 = vshrl.u32 %v2732_v37, 16  ;;  %v2857_v41 = vshll.u32 %v2732_v37, 16  ;;  %v3008_v58 = vrot.slane %v3006_v26, 3  ;;  %v3011_v1 = vrot.slane %v3009_v16, 4  ;;  %v3130_v45 = vld [vmem:[#allocation3 + $0x38] sm:$0x1f] }
 0x2e0   : > { %v2852_v48 = vsel %vm2324_vm15, %v2843_v47, %v2851_v27  ;;  %v3016_v14 = vrot.slane %v3014_v36, 3  ;;  %v3019_v62 = vrot.slane %v3017_v56, 4  ;;  %v2862_v30 = vshrl.u32 %v2733_v59, 16  ;;  %v3132_v16 = vld [vmem:[#allocation3 + $0x48] sm:$0x1f] }
 0x2e1   : > { %v2856_v13 = vrot.slane %v2854_v31, 4  ;;  %v2859_v2 = vrot.slane %v2857_v41, 5  ;;  %v3012_v33 = vor.u32 %v3011_v1, %v3008_v58  ;;  %v2865_v61 = vshll.u32 %v2733_v59, 16  ;;  %v3133_v59 = vld [vmem:[#allocation3 + $0x50] sm:$0xf0] }
 0x2e2   : > { %v2699_v24 = vrot.slane %v2660_v55, 4  ;;  %v2700_v18 = vrot.slane %v2661_v54, 4  ;;  %v3020_v4 = vor.u32 %v3019_v62, %v3016_v14  ;;  %v3108_v10 = vrot.slane %v3069_v52, 4  ;;  %v3136_v52 = vld [vmem:[#allocation3 + $0x68] sm:$0x1f] }
 0x2e3   : > { %4233 = vmatmul.mubr.bf16.gmra.mrb[132].mxu1 %v2695_v7  ;;  %v2864_v7 = vrot.slane %v2862_v30, 4  ;;  %v2860_v11 = vor.u32 %v2859_v2, %v2856_v13  ;;  %v2867_v20 = vrot.slane %v2865_v61, 5  ;;  %v3109_v51 = vrot.slane %v3070_v43, 4  ;;  %v3134_v13 = vld [vmem:[#allocation3 + $0x58] sm:$0x1f] }
 0x2e4   : > { %4240 = vmatprep.mubr.bf16.mxu1 %v2852_v48  ;;  %v2701_v12 = vsel %vm2267_vm14, %v2699_v24, %v2700_v18  ;;  %v3021_v0 = vsel %vm1946_vm4, %v3012_v33, %v3020_v4  ;;  %v3023_v17 = vshrl.u32 %v2901_v46, 16  ;;  %v3026_v34 = vshll.u32 %v2901_v46, 16  ;;  %v3135_v61 = vld [vmem:[#allocation3 + $0x60] sm:$0xf0] }
 0x2e5   : > { %4330 = vmatmul.mubr.bf16.gmra.mrb[152].mxu0 %v3004_v19  ;;  %v2868_v22 = vor.u32 %v2867_v20, %v2864_v7  ;;  %v3031_v38 = vshrl.u32 %v2902_v15, 16  ;;  %v3034_v35 = vshll.u32 %v2902_v15, 16  ;;  %v3110_v21 = vsel %vm2267_vm14, %v3108_v10, %v3109_v51  ;;  %v3137_v15 = vld [vmem:[#allocation3 + $0x70] sm:$0xf0] }
 0x2e6   : > { %4337 = vmatprep.mubr.bf16.mxu0 %v3107_v3  ;;  %v3025_v39 = vrot.slane %v3023_v17, 3  ;;  %v3028_v23 = vrot.slane %v3026_v34, 4  ;;  %v3144_v40 = vshrl.u32 %v3127_v6, 16  ;;  %v3147_v28 = vshll.u32 %v3127_v6, 16 }
 0x2e7   : > { %v2869_v9 = vsel %vm2324_vm15, %v2860_v11, %v2868_v22  ;;  %v3033_v42 = vrot.slane %v3031_v38, 3  ;;  %v3036_v57 = vrot.slane %v3034_v35, 4  ;;  %v3152_v5 = vshrl.u32 %v3128_v44, 16  ;;  %v3138_v35 = vld [vmem:[#allocation3 + $0x78] sm:$0x1f] }
 0x2e8   : > { %v3029_v25 = vor.u32 %v3028_v23, %v3025_v39  ;;  %v3146_v47 = vrot.slane %v3144_v40, 4  ;;  %v3155_v53 = vshll.u32 %v3128_v44, 16  ;;  %v3149_v8 = vrot.slane %v3147_v28, 5  ;;  %v3139_v23 = vld [vmem:[#allocation3 + $0x80] sm:$0xf0] }
 0x2e9   : > { %v3037_v60 = vor.u32 %v3036_v57, %v3033_v42  ;;  %v3161_v19 = vshrl.u32 %v3129_v63, 16  ;;  %v3154_v32 = vrot.slane %v3152_v5, 4  ;;  %v3169_v27 = vshrl.u32 %v3130_v45, 16 }
 0x2ea   : > { %v3157_v50 = vrot.slane %v3155_v53, 5  ;;  %v3172_v26 = vshll.u32 %v3130_v45, 16  ;;  %v3150_v37 = vor.u32 %v3149_v8, %v3146_v47  ;;  %v3178_v58 = vshrl.u32 %v3131_v49, 16  ;;  %v3140_v47 = vld [vmem:[#allocation3 + $0x88] sm:$0x1f] }
 0x2eb   : > { %4241 = vmatmul.mubr.bf16.gmra.mrb[136].mxu1 %v2698_v29  ;;  %v3164_v29 = vshll.u32 %v3129_v63, 16  ;;  %v3038_v36 = vsel %vm1946_vm4, %v3029_v25, %v3037_v60  ;;  %v3163_v3 = vrot.slane %v3161_v19, 4  ;;  %v3171_v41 = vrot.slane %v3169_v27, 4  ;;  %v3141_v19 = vld [vmem:[#allocation3 + $0x90] sm:$0xf0] }
 0x2ec   : > { %4248 = vmatprep.mubr.bf16.mxu1 %v2869_v9  ;;  %v3158_v31 = vor.u32 %v3157_v50, %v3154_v32  ;;  %v3174_v48 = vrot.slane %v3172_v26, 5  ;;  %v3181_v14 = vshll.u32 %v3131_v49, 16  ;;  %v3186_v55 = vshrl.u32 %v3132_v16, 16 }
 0x2ed   : > { %4338 = vmatmul.mubr.bf16.gmra.mrb[156].mxu0 %v3021_v0  ;;  %v3166_v56 = vrot.slane %v3164_v29, 5  ;;  %v3189_v62 = vshll.u32 %v3132_v16, 16  ;;  %v3180_v54 = vrot.slane %v3178_v58, 4  ;;  %v3195_v33 = vshrl.u32 %v3133_v59, 16 }
 0x2ee   : > { %4345 = vmatprep.mubr.bf16.mxu0 %v3110_v21  ;;  %v3159_v2 = vsel %vm2324_vm15, %v3150_v37, %v3158_v31  ;;  %v3175_v30 = vor.u32 %v3174_v48, %v3171_v41  ;;  %v3183_v24 = vrot.slane %v3181_v14, 5  ;;  %v3188_v18 = vrot.slane %v3186_v55, 4  ;;  %v3142_v37 = vld [vmem:[#allocation3 + $0x98] sm:$0x1f] }
 0x2ef   : > { %v3167_v1 = vor.u32 %v3166_v56, %v3163_v3  ;;  %v3191_v4 = vrot.slane %v3189_v62, 5  ;;  %v3198_v7 = vshll.u32 %v3133_v59, 16  ;;  %v3197_v20 = vrot.slane %v3195_v33, 4 }
 0x2f0   : > { %v3206_v43 = vshll.u32 %v3134_v13, 16  ;;  %v3184_v10 = vor.u32 %v3183_v24, %v3180_v54  ;;  %v3212_v51 = vshrl.u32 %v3135_v61, 16  ;;  %v3215_v22 = vshll.u32 %v3135_v61, 16 }
 0x2f1   : > { %v3176_v11 = vsel %vm2324_vm15, %v3167_v1, %v3175_v30  ;;  %v3192_v46 = vor.u32 %v3191_v4, %v3188_v18  ;;  %v3200_v0 = vrot.slane %v3198_v7, 5  ;;  %v3220_v38 = vshrl.u32 %v3136_v52, 16 }
 0x2f2   : > { %v3208_v34 = vrot.slane %v3206_v43, 5  ;;  %v3214_v21 = vrot.slane %v3212_v51, 4  ;;  %v3223_v39 = vshll.u32 %v3136_v52, 16  ;;  %v3217_v63 = vrot.slane %v3215_v22, 5  ;;  %v6840_v43 = vld [vmem:[%s7052_s4] ss:$0 sm:$0xff] }
 0x2f3   : > { %4249 = vmatmul.mubr.bf16.gmra.mrb[140].mxu1 %v2701_v12  ;;  %v3203_v12 = vshrl.u32 %v3134_v13, 16  ;;  %v3193_v6 = vsel %vm2324_vm15, %v3184_v10, %v3192_v46  ;;  %v3201_v44 = vor.u32 %v3200_v0, %v3197_v20  ;;  %v3222_v9 = vrot.slane %v3220_v38, 4 }
 0x2f4   : > { %5571 = vmatprep.mubr.bf16.mxu1 %v3159_v2  ;;  %v3229_v42 = vshrl.u32 %v3137_v15, 16  ;;  %v3225_v57 = vrot.slane %v3223_v39, 5  ;;  %v3232_v28 = vshll.u32 %v3137_v15, 16  ;;  %v3237_v45 = vshrl.u32 %v3138_v35, 16 }
 0x2f5   : > { %4346 = vmatmul.mubr.bf16.gmra.mrb[160].mxu0 %v3038_v36  ;;  %v3205_v17 = vrot.slane %v3203_v12, 4  ;;  %v3240_v25 = vshll.u32 %v3138_v35, 16  ;;  %v3218_v53 = vor.u32 %v3217_v63, %v3214_v21  ;;  %v3246_v8 = vshrl.u32 %v3139_v23, 16 }
 0x2f6   : > { %v3231_v60 = vrot.slane %v3229_v42, 4  ;;  %v3226_v29 = vor.u32 %v3225_v57, %v3222_v9  ;;  %v3234_v49 = vrot.slane %v3232_v28, 5  ;;  %v3239_v32 = vrot.slane %v3237_v45, 4 }
 0x2f7   : > { %v3209_v40 = vor.u32 %v3208_v34, %v3205_v17  ;;  %v3242_v50 = vrot.slane %v3240_v25, 5  ;;  %v3248_v27 = vrot.slane %v3246_v8, 4  ;;  %v3249_v26 = vshll.u32 %v3139_v23, 16 }
 0x2f8   : > { %v3254_v16 = vshrl.u32 %v3140_v47, 16  ;;  %v3257_v36 = vshll.u32 %v3140_v47, 16  ;;  %v3227_v3 = vsel %vm2324_vm15, %v3218_v53, %v3226_v29  ;;  %v3235_v56 = vor.u32 %v3234_v49, %v3231_v60 }
 0x2f9   : > { %v3210_v5 = vsel %vm2324_vm15, %v3201_v44, %v3209_v40  ;;  %v3243_v59 = vor.u32 %v3242_v50, %v3239_v32  ;;  %v3263_v31 = vshrl.u32 %v3141_v19, 16  ;;  %v3251_v41 = vrot.slane %v3249_v26, 5 }
 0x2fa   : > { %v3256_v48 = vrot.slane %v3254_v16, 4  ;;  %v3259_v58 = vrot.slane %v3257_v36, 5  ;;  %v3266_v1 = vshll.u32 %v3141_v19, 16  ;;  %v3271_v62 = vshrl.u32 %v3142_v37, 16 }
 0x2fb   : > { %5572 = vmatmul.mubr.bf16.vlgmr.msra.gmra.mrb[144].mxu1 %v3176_v11  ;;  %v3244_v14 = vsel %vm2324_vm15, %v3235_v56, %v3243_v59  ;;  %v3265_v55 = vrot.slane %v3263_v31, 4  ;;  %v3274_v13 = vshll.u32 %v3142_v37, 16  ;;  %v3252_v2 = vor.u32 %v3251_v41, %v3248_v27 }
 0x2fc   : > { %5575 = vmatprep.mubr.bf16.mxu1 %v3193_v6  ;;  %v3260_v30 = vor.u32 %v3259_v58, %v3256_v48  ;;  %v3268_v54 = vrot.slane %v3266_v1, 5  ;;  %v3273_v33 = vrot.slane %v3271_v62, 4 }
 0x2fd   : > { %v3276_v61 = vrot.slane %v3274_v13, 5 }
 0x2fe   : > { %v3261_v24 = vsel %vm2324_vm15, %v3252_v2, %v3260_v30  ;;  %v3269_v18 = vor.u32 %v3268_v54, %v3265_v55 }
 0x2ff   : > { %v3277_v4 = vor.u32 %v3276_v61, %v3273_v33 }
 0x301   : > { %v3278_v7 = vsel %vm2324_vm15, %v3269_v18, %v3277_v4 }
 0x303   : > { %5576 = vmatmul.mubr.bf16.gmra.mrb[148].mxu1 %v3210_v5 }
 0x304   : > { %5579 = vmatprep.mubr.bf16.mxu1 %v3227_v3 }
 0x30b   : > { %5580 = vmatmul.mubr.bf16.gmra.mrb[152].mxu1 %v3244_v14 }
 0x30c   : > { %5583 = vmatprep.mubr.bf16.mxu1 %v3261_v24 }
 0x313   : > { %5584 = vmatmul.mubr.bf16.gmra.mrb[156].mxu1 %v3278_v7 }
 0x34e   : > { %v5263_v52 = vpop.f32.mrb[80].mxu1 }
 0x34f   : > { %v5264_v11 = vpop.f32.mrb[81].mxu1 }
 0x350   : > { %v5265_v20 = vadd.f32 %v5264_v11, %v5263_v52  ;;  %v5266_v12 = vpop.f32.mrb[82].mxu1  ;;  %v5327_v51 = vpop.f32.mrb[100].mxu0 }
 0x351   : > { %v5267_v10 = vpop.f32.mrb[83].mxu1  ;;  %v5328_v15 = vpop.f32.mrb[101].mxu0 }
 0x352   : > { %v5268_v46 = vadd.f32 %v5267_v10, %v5266_v12  ;;  %v4001_v0 = vadd.f32 %v5265_v20, %v6840_v43  ;;  %v5329_v34 = vadd.f32 %v5328_v15, %v5327_v51  ;;  %v5330_v22 = vpop.f32.mrb[102].mxu0 }
 0x353   : > { %v5331_v38 = vpop.f32.mrb[103].mxu0 }
 0x354   : > { %v4004_v17 = vadd.f32 %v5268_v46, %v6840_v43  ;;  %v6844_v6 = vadd.f32 %v5329_v34, %v4001_v0  ;;  %v5332_v44 = vadd.f32 %v5331_v38, %v5330_v22 }
 0x356   : > { %v5269_v35 = vpop.f32.mrb[84].mxu1  ;;  %v6846_v40 = vadd.f32 %v5332_v44, %v4004_v17 }
 0x357   : > { %v5270_v21 = vpop.f32.mrb[85].mxu1 }
 0x358   : > { %v5271_v39 = vadd.f32 %v5270_v21, %v5269_v35  ;;  %v5272_v23 = vpop.f32.mrb[86].mxu1  ;;  %v5333_v57 = vpop.f32.mrb[104].mxu0 }
 0x359   : > { %v5273_v63 = vpop.f32.mrb[87].mxu1  ;;  %v5334_v28 = vpop.f32.mrb[105].mxu0 }
 0x35a   : > { %v5274_v9 = vadd.f32 %v5273_v63, %v5272_v23  ;;  %v4009_v42 = vadd.f32 %v5271_v39, %v6840_v43  ;;  %v5335_v25 = vadd.f32 %v5334_v28, %v5333_v57  ;;  %v5336_v47 = vpop.f32.mrb[106].mxu0 }
 0x35b   : > { %v5337_v5 = vpop.f32.mrb[107].mxu0 }
 0x35c   : > { %v4012_v45 = vadd.f32 %v5274_v9, %v6840_v43  ;;  %v6850_v53 = vadd.f32 %v5335_v25, %v4009_v42  ;;  %v5338_v60 = vadd.f32 %v5337_v5, %v5336_v47 }
 0x35e   : > { %v5275_v8 = vpop.f32.mrb[88].mxu1  ;;  %v6852_v29 = vadd.f32 %v5338_v60, %v4012_v45 }
 0x35f   : > { %v5276_v19 = vpop.f32.mrb[89].mxu1 }
 0x360   : > { %v5277_v49 = vadd.f32 %v5276_v19, %v5275_v8  ;;  %v5278_v32 = vpop.f32.mrb[90].mxu1  ;;  %v5339_v16 = vpop.f32.mrb[108].mxu0 }
 0x361   : > { %v5279_v50 = vpop.f32.mrb[91].mxu1  ;;  %v5340_v36 = vpop.f32.mrb[109].mxu0 }
 0x362   : > { %v5280_v27 = vadd.f32 %v5279_v50, %v5278_v32  ;;  %v4017_v26 = vadd.f32 %v5277_v49, %v6840_v43  ;;  %v5341_v3 = vadd.f32 %v5340_v36, %v5339_v16  ;;  %v5342_v56 = vpop.f32.mrb[110].mxu0 }
 0x363   : > { %v5343_v59 = vpop.f32.mrb[111].mxu0 }
 0x364   : > { %v4020_v37 = vadd.f32 %v5280_v27, %v6840_v43  ;;  %v6856_v31 = vadd.f32 %v5341_v3, %v4017_v26  ;;  %v5344_v41 = vadd.f32 %v5343_v59, %v5342_v56 }
 0x366   : > { %v5281_v48 = vpop.f32.mrb[92].mxu1  ;;  %v6858_v1 = vadd.f32 %v5344_v41, %v4020_v37 }
 0x367   : > { %v5282_v58 = vpop.f32.mrb[93].mxu1 }
 0x368   : > { %v5283_v14 = vadd.f32 %v5282_v58, %v5281_v48  ;;  %v5284_v55 = vpop.f32.mrb[94].mxu1  ;;  %v5345_v30 = vpop.f32.mrb[112].mxu0 }
 0x369   : > { %v5285_v62 = vpop.f32.mrb[95].mxu1  ;;  %v5346_v54 = vpop.f32.mrb[113].mxu0 }
 0x36a   : > { %v5286_v13 = vadd.f32 %v5285_v62, %v5284_v55  ;;  %v4025_v2 = vadd.f32 %v5283_v14, %v6840_v43  ;;  %v5347_v61 = vadd.f32 %v5346_v54, %v5345_v30  ;;  %v5348_v24 = vpop.f32.mrb[114].mxu0 }
 0x36b   : > { %v5349_v18 = vpop.f32.mrb[115].mxu0 }
 0x36c   : > { %v4028_v33 = vadd.f32 %v5286_v13, %v6840_v43  ;;  %v6862_v4 = vadd.f32 %v5347_v61, %v4025_v2  ;;  %v5350_v7 = vadd.f32 %v5349_v18, %v5348_v24 }
 0x36e   : > { %v5287_v52 = vpop.f32.mrb[96].mxu1  ;;  %v6864_v20 = vadd.f32 %v5350_v7, %v4028_v33 }
 0x36f   : > { %v5288_v11 = vpop.f32.mrb[97].mxu1 }
 0x370   : > { %v5289_v12 = vadd.f32 %v5288_v11, %v5287_v52  ;;  %v5290_v10 = vpop.f32.mrb[98].mxu1  ;;  %v5351_v15 = vpop.f32.mrb[116].mxu0 }
 0x371   : > { %v5291_v46 = vpop.f32.mrb[99].mxu1  ;;  %v5352_v17 = vpop.f32.mrb[117].mxu0 }
 0x372   : > { %v5292_v0 = vadd.f32 %v5291_v46, %v5290_v10  ;;  %v4033_v51 = vadd.f32 %v5289_v12, %v6840_v43  ;;  %v5353_v22 = vadd.f32 %v5352_v17, %v5351_v15  ;;  %v5354_v38 = vpop.f32.mrb[118].mxu0 }
 0x373   : > { %v5355_v35 = vpop.f32.mrb[119].mxu0 }
 0x374   : > { %v4036_v34 = vadd.f32 %v5292_v0, %v6840_v43  ;;  %v6868_v44 = vadd.f32 %v5353_v22, %v4033_v51  ;;  %v5356_v21 = vadd.f32 %v5355_v35, %v5354_v38 }
 0x376   : > { %v5293_v39 = vpop.f32.mrb[100].mxu1  ;;  %v6870_v23 = vadd.f32 %v5356_v21, %v4036_v34 }
 0x377   : > { %v5294_v63 = vpop.f32.mrb[101].mxu1 }
 0x378   : > { %v5295_v9 = vadd.f32 %v5294_v63, %v5293_v39  ;;  %v5296_v42 = vpop.f32.mrb[102].mxu1  ;;  %v5357_v25 = vpop.f32.mrb[120].mxu0 }
 0x379   : > { %v5297_v57 = vpop.f32.mrb[103].mxu1  ;;  %v5358_v47 = vpop.f32.mrb[121].mxu0 }
 0x37a   : > { %v5298_v28 = vadd.f32 %v5297_v57, %v5296_v42  ;;  %v4041_v45 = vadd.f32 %v5295_v9, %v6840_v43  ;;  %v5359_v60 = vadd.f32 %v5358_v47, %v5357_v25  ;;  %v5360_v8 = vpop.f32.mrb[122].mxu0 }
 0x37b   : > { %v5361_v19 = vpop.f32.mrb[123].mxu0 }
 0x37c   : > { %v4044_v5 = vadd.f32 %v5298_v28, %v6840_v43  ;;  %v6874_v49 = vadd.f32 %v5359_v60, %v4041_v45  ;;  %v5362_v32 = vadd.f32 %v5361_v19, %v5360_v8 }
 0x37e   : > { %v6876_v50 = vadd.f32 %v5362_v32, %v4044_v5  ;;  %v5299_v27 = vpop.f32.mrb[104].mxu1 }
 0x37f   : > { %v5300_v26 = vpop.f32.mrb[105].mxu1 }
 0x380   : > { %v5301_v16 = vadd.f32 %v5300_v26, %v5299_v27  ;;  %v5302_v36 = vpop.f32.mrb[106].mxu1  ;;  %v5363_v59 = vpop.f32.mrb[124].mxu0 }
 0x381   : > { %v5303_v37 = vpop.f32.mrb[107].mxu1  ;;  %v5364_v41 = vpop.f32.mrb[125].mxu0 }
 0x382   : > { %v5304_v3 = vadd.f32 %v5303_v37, %v5302_v36  ;;  %v4049_v56 = vadd.f32 %v5301_v16, %v6840_v43  ;;  %v5365_v58 = vadd.f32 %v5364_v41, %v5363_v59  ;;  %v5366_v14 = vpop.f32.mrb[126].mxu0 }
 0x383   : > { %v5367_v55 = vpop.f32.mrb[127].mxu0 }
 0x384   : > { %v4052_v48 = vadd.f32 %v5304_v3, %v6840_v43  ;;  %v6880_v62 = vadd.f32 %v5365_v58, %v4049_v56  ;;  %v5368_v13 = vadd.f32 %v5367_v55, %v5366_v14 }
 0x386   : > { %v6882_v2 = vadd.f32 %v5368_v13, %v4052_v48  ;;  %v5305_v30 = vpop.f32.mrb[108].mxu1 }
 0x387   : > { %v5306_v54 = vpop.f32.mrb[109].mxu1 }
 0x388   : > { %v5307_v33 = vadd.f32 %v5306_v54, %v5305_v30  ;;  %v5308_v61 = vpop.f32.mrb[110].mxu1  ;;  %v5369_v52 = vpop.f32.mrb[128].mxu0 }
 0x389   : > { %v5309_v24 = vpop.f32.mrb[111].mxu1  ;;  %v5370_v11 = vpop.f32.mrb[129].mxu0 }
 0x38a   : > { %v5310_v18 = vadd.f32 %v5309_v24, %v5308_v61  ;;  %v4057_v7 = vadd.f32 %v5307_v33, %v6840_v43  ;;  %v5371_v10 = vadd.f32 %v5370_v11, %v5369_v52  ;;  %v5372_v46 = vpop.f32.mrb[130].mxu0 }
 0x38b   : > { %v5373_v0 = vpop.f32.mrb[131].mxu0 }
 0x38c   : > { %v4060_v12 = vadd.f32 %v5310_v18, %v6840_v43  ;;  %v6886_v51 = vadd.f32 %v5371_v10, %v4057_v7  ;;  %v5374_v15 = vadd.f32 %v5373_v0, %v5372_v46 }
 0x38e   : > { %v6888_v17 = vadd.f32 %v5374_v15, %v4060_v12  ;;  %v5391_v34 = vpop.f32.mrb[112].mxu1 }
 0x38f   : > { %v5392_v22 = vpop.f32.mrb[113].mxu1 }
 0x390   : > { %v5393_v38 = vadd.f32 %v5392_v22, %v5391_v34  ;;  %v5394_v35 = vpop.f32.mrb[114].mxu1  ;;  %v5455_v63 = vpop.f32.mrb[132].mxu0 }
 0x391   : > { %v5395_v21 = vpop.f32.mrb[115].mxu1  ;;  %v5456_v42 = vpop.f32.mrb[133].mxu0 }
 0x392   : > { %v4195_v39 = vadd.f32 %v5393_v38, %v6844_v6  ;;  %v5396_v9 = vadd.f32 %v5395_v21, %v5394_v35  ;;  %v5457_v57 = vadd.f32 %v5456_v42, %v5455_v63  ;;  %v5458_v28 = vpop.f32.mrb[134].mxu0 }
 0x393   : > { %v5459_v45 = vpop.f32.mrb[135].mxu0 }
 0x394   : > { %v4198_v43 = vadd.f32 %v5396_v9, %v6846_v40  ;;  %v5460_v25 = vadd.f32 %v5459_v45, %v5458_v28  ;;  %v6892_v5 = vadd.f32 %v5457_v57, %v4195_v39 }
 0x396   : > { %v5397_v47 = vpop.f32.mrb[116].mxu1  ;;  %v6894_v32 = vadd.f32 %v5460_v25, %v4198_v43 }
 0x397   : > { %v5398_v60 = vpop.f32.mrb[117].mxu1 }
 0x398   : > { %v5399_v8 = vadd.f32 %v5398_v60, %v5397_v47  ;;  %v5400_v19 = vpop.f32.mrb[118].mxu1  ;;  %v5461_v26 = vpop.f32.mrb[136].mxu0 }
 0x399   : > { %v5401_v27 = vpop.f32.mrb[119].mxu1  ;;  %v5462_v36 = vpop.f32.mrb[137].mxu0 }
 0x39a   : > { %v4203_v6 = vadd.f32 %v5399_v8, %v6850_v53  ;;  %v5402_v16 = vadd.f32 %v5401_v27, %v5400_v19  ;;  %v5463_v37 = vadd.f32 %v5462_v36, %v5461_v26  ;;  %v5464_v3 = vpop.f32.mrb[138].mxu0 }
 0x39b   : > { %v5465_v56 = vpop.f32.mrb[139].mxu0 }
 0x39c   : > { %v4206_v40 = vadd.f32 %v5402_v16, %v6852_v29  ;;  %v5466_v59 = vadd.f32 %v5465_v56, %v5464_v3  ;;  %v6898_v48 = vadd.f32 %v5463_v37, %v4203_v6 }
 0x39e   : > { %v5403_v41 = vpop.f32.mrb[120].mxu1  ;;  %v6900_v13 = vadd.f32 %v5466_v59, %v4206_v40 }
 0x39f   : > { %v5404_v58 = vpop.f32.mrb[121].mxu1 }
 0x3a0   : > { %v5405_v14 = vadd.f32 %v5404_v58, %v5403_v41  ;;  %v5406_v55 = vpop.f32.mrb[122].mxu1  ;;  %v5467_v54 = vpop.f32.mrb[140].mxu0 }
 0x3a1   : > { %v5407_v30 = vpop.f32.mrb[123].mxu1  ;;  %v5468_v61 = vpop.f32.mrb[141].mxu0 }
 0x3a2   : > { %v4211_v53 = vadd.f32 %v5405_v14, %v6856_v31  ;;  %v5408_v33 = vadd.f32 %v5407_v30, %v5406_v55  ;;  %v5469_v24 = vadd.f32 %v5468_v61, %v5467_v54  ;;  %v5470_v18 = vpop.f32.mrb[142].mxu0 }
 0x3a3   : > { %v5471_v7 = vpop.f32.mrb[143].mxu0 }
 0x3a4   : > { %v4214_v29 = vadd.f32 %v5408_v33, %v6858_v1  ;;  %v5472_v52 = vadd.f32 %v5471_v7, %v5470_v18  ;;  %v6904_v12 = vadd.f32 %v5469_v24, %v4211_v53 }
 0x3a6   : > { %v5409_v11 = vpop.f32.mrb[124].mxu1  ;;  %v6906_v15 = vadd.f32 %v5472_v52, %v4214_v29 }
 0x3a7   : > { %v5410_v10 = vpop.f32.mrb[125].mxu1 }
 0x3a8   : > { %v5411_v46 = vadd.f32 %v5410_v10, %v5409_v11  ;;  %v5412_v0 = vpop.f32.mrb[126].mxu1  ;;  %v5473_v22 = vpop.f32.mrb[144].mxu0 }
 0x3a9   : > { %v5413_v34 = vpop.f32.mrb[127].mxu1  ;;  %v5474_v35 = vpop.f32.mrb[145].mxu0 }
 0x3aa   : > { %v4219_v31 = vadd.f32 %v5411_v46, %v6862_v4  ;;  %v5414_v38 = vadd.f32 %v5413_v34, %v5412_v0  ;;  %v5475_v21 = vadd.f32 %v5474_v35, %v5473_v22  ;;  %v5476_v39 = vpop.f32.mrb[146].mxu0 }
 0x3ab   : > { %v5477_v63 = vpop.f32.mrb[147].mxu0 }
 0x3ac   : > { %v4222_v1 = vadd.f32 %v5414_v38, %v6864_v20  ;;  %v5478_v9 = vadd.f32 %v5477_v63, %v5476_v39  ;;  %v6910_v43 = vadd.f32 %v5475_v21, %v4219_v31 }
 0x3ae   : > { %v5415_v42 = vpop.f32.mrb[128].mxu1  ;;  %v6912_v25 = vadd.f32 %v5478_v9, %v4222_v1 }
 0x3af   : > { %v5416_v57 = vpop.f32.mrb[129].mxu1 }
 0x3b0   : > { %v5417_v28 = vadd.f32 %v5416_v57, %v5415_v42  ;;  %v5418_v45 = vpop.f32.mrb[130].mxu1  ;;  %v5479_v60 = vpop.f32.mrb[148].mxu0 }
 0x3b1   : > { %v5419_v47 = vpop.f32.mrb[131].mxu1  ;;  %v5480_v19 = vpop.f32.mrb[149].mxu0 }
 0x3b2   : > { %v4227_v4 = vadd.f32 %v5417_v28, %v6868_v44  ;;  %v5420_v8 = vadd.f32 %v5419_v47, %v5418_v45  ;;  %v5481_v27 = vadd.f32 %v5480_v19, %v5479_v60  ;;  %v5482_v6 = vpop.f32.mrb[150].mxu0  ;;  %v4832_v19 = vld [vmem:[%s6275_s23 + $0x68] sm:$0xff] }
 0x3b3   : > { %v5483_v26 = vpop.f32.mrb[151].mxu0 }
 0x3b4   : > { %v4230_v20 = vadd.f32 %v5420_v8, %v6870_v23  ;;  %v5484_v16 = vadd.f32 %v5483_v26, %v5482_v6  ;;  %v6916_v40 = vadd.f32 %v5481_v27, %v4227_v4  ;;  %v4830_v26 = vld [vmem:[%s6275_s23 + $0x48] sm:$0xff] }
 0x3b6   : > { %v5421_v36 = vpop.f32.mrb[132].mxu1  ;;  %v6918_v59 = vadd.f32 %v5484_v16, %v4230_v20 }
 0x3b7   : > { %v5422_v37 = vpop.f32.mrb[133].mxu1 }
 0x3b8   : > { %v5423_v3 = vadd.f32 %v5422_v37, %v5421_v36  ;;  %v5424_v56 = vpop.f32.mrb[134].mxu1  ;;  %v5485_v58 = vpop.f32.mrb[152].mxu0  ;;  %v4833_v36 = vld [vmem:[%s6275_s23 + $0x70] sm:$0xff] }
 0x3b9   : > { %v5425_v41 = vpop.f32.mrb[135].mxu1  ;;  %v5486_v55 = vpop.f32.mrb[153].mxu0 }
 0x3ba   : > { %v4235_v44 = vadd.f32 %v5423_v3, %v6874_v49  ;;  %v5426_v14 = vadd.f32 %v5425_v41, %v5424_v56  ;;  %v5487_v30 = vadd.f32 %v5486_v55, %v5485_v58  ;;  %v5488_v53 = vpop.f32.mrb[154].mxu0  ;;  %v4831_v41 = vld [vmem:[%s6275_s23 + $0x50] sm:$0xff] }
 0x3bb   : > { %v5489_v54 = vpop.f32.mrb[155].mxu0 }
 0x3bc   : > { %v4238_v23 = vadd.f32 %v5426_v14, %v6876_v50  ;;  %v5490_v33 = vadd.f32 %v5489_v54, %v5488_v53  ;;  %v6922_v29 = vadd.f32 %v5487_v30, %v4235_v44  ;;  %v4836_v54 = vld [vmem:[%s6275_s23 + $0xa8] sm:$0xff] }
 0x3be   : > { %v5427_v61 = vpop.f32.mrb[136].mxu1  ;;  %v6924_v52 = vadd.f32 %v5490_v33, %v4238_v23 }
 0x3bf   : > { %v5428_v24 = vpop.f32.mrb[137].mxu1 }
 0x3c0   : > { %v5429_v18 = vadd.f32 %v5428_v24, %v5427_v61  ;;  %v5430_v7 = vpop.f32.mrb[138].mxu1  ;;  %v5491_v10 = vpop.f32.mrb[156].mxu0  ;;  %v4834_v61 = vld [vmem:[%s6275_s23 + $0x88] sm:$0xff] }
 0x3c1   : > { %v5431_v11 = vpop.f32.mrb[139].mxu1  ;;  %v5492_v0 = vpop.f32.mrb[157].mxu0 }
 0x3c2   : > { %v4243_v49 = vadd.f32 %v5429_v18, %v6880_v62  ;;  %v5432_v46 = vadd.f32 %v5431_v11, %v5430_v7  ;;  %v5493_v34 = vadd.f32 %v5492_v0, %v5491_v10  ;;  %v5494_v31 = vpop.f32.mrb[158].mxu0  ;;  %v4837_v18 = vld [vmem:[%s6275_s23 + $0xb0] sm:$0xff] }
 0x3c3   : > { %v5495_v22 = vpop.f32.mrb[159].mxu0  ;;  %v4835_v10 = vld [vmem:[%s6275_s23 + $0x90] sm:$0xff] }
 0x3c4   : > { %v4246_v50 = vadd.f32 %v5432_v46, %v6882_v2  ;;  %v5496_v38 = vadd.f32 %v5495_v22, %v5494_v31  ;;  %v6928_v1 = vadd.f32 %v5493_v34, %v4243_v49 }
 0x3c6   : > { %v5433_v35 = vpop.f32.mrb[140].mxu1  ;;  %v6930_v9 = vadd.f32 %v5496_v38, %v4246_v50 }
 0x3c7   : > { %v5434_v21 = vpop.f32.mrb[141].mxu1 }
 0x3c8   : > { %v5435_v39 = vadd.f32 %v5434_v21, %v5433_v35  ;;  %v5436_v63 = vpop.f32.mrb[142].mxu1  ;;  %v5497_v57 = vpop.f32.mrb[160].mxu0  ;;  %v4840_v35 = vld [vmem:[%s6275_s23 + $0xe8] sm:$0xff] }
 0x3c9   : > { %v5437_v62 = vpop.f32.mrb[143].mxu1  ;;  %v5498_v28 = vpop.f32.mrb[161].mxu0 }
 0x3ca   : > { %v4251_v42 = vadd.f32 %v5435_v39, %v6886_v51  ;;  %v5438_v2 = vadd.f32 %v5437_v62, %v5436_v63  ;;  %v5499_v47 = vadd.f32 %v5498_v28, %v5497_v57  ;;  %v5500_v4 = vpop.f32.mrb[162].mxu0  ;;  %v4838_v39 = vld [vmem:[%s6275_s23 + $0xc8] sm:$0xff]  ;;  %v4841_v62 = vld [vmem:[%s6275_s23 + $0xf0] sm:$0xff] }
 0x3cb   : > { %v5501_v60 = vpop.f32.mrb[163].mxu0  ;;  %v4839_v28 = vld [vmem:[%s6275_s23 + $0xd0] sm:$0xff] }
 0x3cc   : > { %v4254_v45 = vadd.f32 %v5438_v2, %v6888_v17  ;;  %v5502_v8 = vadd.f32 %v5501_v60, %v5500_v4  ;;  %v6935_v27 = vadd.f32 %v5499_v47, %v4251_v42 }
 0x3ce   : > { %v5573_v20 = vpop.f32.mrb[144].mxu1  ;;  %v6941_v17 = vadd.f32 %v5502_v8, %v4254_v45 }
 0x3cf   : > { %v4397_v6 = vadd.f32 %v5573_v20, %v6898_v48  ;;  %v4388_v51 = vpop.f32.mrb[145].mxu1  ;;  %v4844_v20 = vld [vmem:[%s6275_s23 + $0x128] sm:$0xff] }
 0x3d0   : > { %v4389_v16 = vadd.f32 %v4388_v51, %v6892_v5  ;;  %v5574_v37 = vpop.f32.mrb[146].mxu1 }
 0x3d1   : > { %v4453_v3 = vadd.f32 %v4832_v19, %v4397_v6  ;;  %v4400_v56 = vadd.f32 %v5574_v37, %v6900_v13  ;;  %v4391_v44 = vpop.f32.mrb[147].mxu1 }
 0x3d2   : > { %v4451_v58 = vadd.f32 %v4830_v26, %v4389_v16  ;;  %v4392_v48 = vadd.f32 %v4391_v44, %v6894_v32 }
 0x3d3   : > { %v4469_v14 = vmax.f32 %v4453_v3, 0.0  ;;  %v4454_v5 = vadd.f32 %v4833_v36, %v4400_v56  ;;  %v4845_v36 = vld [vmem:[%s6275_s23 + $0x130] sm:$0xff] }
 0x3d4   : > { %v4467_v55 = vmax.f32 %v4451_v58, 0.0  ;;  %v4452_v23 = vadd.f32 %v4831_v41, %v4392_v48  ;;  %v4843_v41 = vld [vmem:[%s6275_s23 + $0x110] sm:$0xff] }
 0x3d5   : > { %4485 = vst [vmem:[%s6753_s6 + $0x10] sm:$0xff] %v4469_v14  ;;  %v4470_v30 = vmax.f32 %v4454_v5, 0.0 }
 0x3d6   : > { %4483 = vst [vmem:[%s6753_s6] sm:$0xff] %v4467_v55  ;;  %v4468_v53 = vmax.f32 %v4452_v23, 0.0  ;;  %v5577_v33 = vpop.f32.mrb[148].mxu1 }
 0x3d7   : > { %4486 = vst [vmem:[%s6753_s6 + $0x18] sm:$0xff] %v4470_v30  ;;  %v4413_v13 = vadd.f32 %v5577_v33, %v6910_v43  ;;  %v4404_v24 = vpop.f32.mrb[149].mxu1 }
 0x3d8   : > { %4484 = vst [vmem:[%s6753_s6 + $0x8] sm:$0xff] %v4468_v53  ;;  %v4405_v32 = vadd.f32 %v4404_v24, %v6904_v12  ;;  %v5578_v7 = vpop.f32.mrb[150].mxu1 }
 0x3d9   : > { %v4457_v11 = vadd.f32 %v4836_v54, %v4413_v13  ;;  %v4416_v49 = vadd.f32 %v5578_v7, %v6912_v25  ;;  %v4407_v46 = vpop.f32.mrb[151].mxu1 }
 0x3da   : > { %v4455_v0 = vadd.f32 %v4834_v61, %v4405_v32  ;;  %v4408_v43 = vadd.f32 %v4407_v46, %v6906_v15 }
 0x3db   : > { %v4473_v50 = vmax.f32 %v4457_v11, 0.0  ;;  %v4458_v34 = vadd.f32 %v4837_v18, %v4416_v49 }
 0x3dc   : > { %v4471_v31 = vmax.f32 %v4455_v0, 0.0  ;;  %v4456_v22 = vadd.f32 %v4835_v10, %v4408_v43 }
 0x3dd   : > { %4489 = vst [vmem:[%s6753_s6 + $0x30] sm:$0xff] %v4473_v50  ;;  %v4474_v12 = vmax.f32 %v4458_v34, 0.0 }
 0x3de   : > { %4487 = vst [vmem:[%s6753_s6 + $0x20] sm:$0xff] %v4471_v31  ;;  %v4472_v38 = vmax.f32 %v4456_v22, 0.0  ;;  %v5581_v21 = vpop.f32.mrb[152].mxu1 }
 0x3df   : > { %4490 = vst [vmem:[%s6753_s6 + $0x38] sm:$0xff] %v4474_v12  ;;  %v4429_v25 = vadd.f32 %v5581_v21, %v6922_v29  ;;  %v4420_v63 = vpop.f32.mrb[153].mxu1 }
 0x3e0   : > { %4488 = vst [vmem:[%s6753_s6 + $0x28] sm:$0xff] %v4472_v38  ;;  %v4421_v15 = vadd.f32 %v4420_v63, %v6916_v40  ;;  %v5582_v42 = vpop.f32.mrb[154].mxu1 }
 0x3e1   : > { %v4461_v57 = vadd.f32 %v4840_v35, %v4429_v25  ;;  %v4432_v2 = vadd.f32 %v5582_v42, %v6924_v52  ;;  %v4423_v45 = vpop.f32.mrb[155].mxu1 }
 0x3e2   : > { %v4459_v47 = vadd.f32 %v4838_v39, %v4421_v15  ;;  %v4424_v29 = vadd.f32 %v4423_v45, %v6918_v59  ;;  %v4842_v59 = vld [vmem:[%s6275_s23 + $0x108] sm:$0xff] }
 0x3e3   : > { %v4477_v4 = vmax.f32 %v4461_v57, 0.0  ;;  %v4462_v60 = vadd.f32 %v4841_v62, %v4432_v2 }
 0x3e4   : > { %v4475_v8 = vmax.f32 %v4459_v47, 0.0  ;;  %v4460_v19 = vadd.f32 %v4839_v28, %v4424_v29 }
 0x3e5   : > { %4493 = vst [vmem:[%s6753_s6 + $0x50] sm:$0xff] %v4477_v4  ;;  %v4478_v40 = vmax.f32 %v4462_v60, 0.0 }
 0x3e6   : > { %4491 = vst [vmem:[%s6753_s6 + $0x40] sm:$0xff] %v4475_v8  ;;  %v4476_v52 = vmax.f32 %v4460_v19, 0.0  ;;  %v5585_v6 = vpop.f32.mrb[156].mxu1 }
 0x3e7   : > { %4494 = vst [vmem:[%s6753_s6 + $0x58] sm:$0xff] %v4478_v40  ;;  %v4445_v26 = vadd.f32 %v5585_v6, %v6935_v27  ;;  %v4436_v51 = vpop.f32.mrb[157].mxu1 }
 0x3e8   : > { %4492 = vst [vmem:[%s6753_s6 + $0x48] sm:$0xff] %v4476_v52  ;;  %v4437_v16 = vadd.f32 %v4436_v51, %v6928_v1  ;;  %v5586_v37 = vpop.f32.mrb[158].mxu1 }
 0x3e9   : > { %v4465_v3 = vadd.f32 %v4844_v20, %v4445_v26  ;;  %v4448_v56 = vadd.f32 %v5586_v37, %v6941_v17  ;;  %v4439_v44 = vpop.f32.mrb[159].mxu1 }
 0x3ea   : > { %v4463_v58 = vadd.f32 %v4842_v59, %v4437_v16  ;;  %v4440_v27 = vadd.f32 %v4439_v44, %v6930_v9 }
 0x3eb   : > { %v4481_v48 = vmax.f32 %v4465_v3, 0.0  ;;  %v4466_v14 = vadd.f32 %v4845_v36, %v4448_v56 }
 0x3ec   : > { %v4479_v1 = vmax.f32 %v4463_v58, 0.0  ;;  %v4464_v5 = vadd.f32 %v4843_v41, %v4440_v27 }
 0x3ed   : > { %4497 = vst [vmem:[%s6753_s6 + $0x70] sm:$0xff] %v4481_v48  ;;  %v4482_v55 = vmax.f32 %v4466_v14, 0.0 }
 0x3ee   : > { %4495 = vst [vmem:[%s6753_s6 + $0x60] sm:$0xff] %v4479_v1  ;;  %v4480_v9 = vmax.f32 %v4464_v5, 0.0 }
 0x3ef   : > { %4498 = vst [vmem:[%s6753_s6 + $0x78] sm:$0xff] %v4482_v55 }
 0x3f0   : > { %4496 = vst [vmem:[%s6753_s6 + $0x68] sm:$0xff] %v4480_v9 }
 0x3f1   : > { %5939 = shalt.err (!%p5936_p11)
}
 0x3f2   : > { %s5940_s23 = scalar_lea.hbm %s6989_s27, 2048  ;;  %s5944_s30 = scalar_lea.hbm %s7053_s5, 8192 }
 0x3f3   : > { %p5941_p1 = scmp.ne.s32.totalorder %s6989_s27, %s5940_s23  ;;  %p5945_p0 = scmp.lt.u32.totalorder %s6989_s27, %s7053_s5 }
 0x3f4   : > { %p5946_p2 = scmp.lt.u32.totalorder %s5944_s30, %s5940_s23  ;;  %p5948_p4 = scmp.lt.u32.totalorder %s5940_s23, %s6989_s27 }
 0x3f5   : > { %p5942_p5 = pnand %p5941_p1, %p6212_p6 }
 0x3f6   : > { %p5947_p10 = por %p5946_p2, %p5945_p0 }
 0x3f7   : > { %p5943_p9 = pneg %p5942_p5 }
 0x3f8   : > { %p5949_p8 = por %p5948_p4, %p5947_p10 }
 0x3fa   : > { %p5950_p13 = pnand %p5949_p8, %p5943_p9 }
 0x3fc   : > { %5953 = shalt.err (!%p5950_p13)
}
 0x3fd   : > { %s6038_s16 = smov 128   ;;  %s6039_s17 = smov 8  }
 0x3fe   : > { %5601 = dma.vmem_to_hbm [thread:$0]  (%p6212_p6), %s6991_s22, 2048, %s6989_s27, %s4500_s8, %s6038_s16, %s6038_s16, %s6039_s17  }
 0x3ff PF: > { %s7089_s14 = sld [smem:[#allocation14_spill]]  ;;  %s7090_s15 = sld [smem:[#allocation16_spill]] }
 0x400   : > { %p5623_p3 = scmp.ge.s32.totalorder %s6028_s25, 2 }
 0x405   : > { %s4530_s21 = sand.u32 1, %s7089_s14   ;;  %p7091_p7 = scmp.ne.s32.totalorder %s7090_s15, 0 }
 0x406   : > { %s4531_s11 = scalar_lea.sflag [#allocation6], %s4530_s21 }
 0x407   : > { %p5615_p12 = pnand %p5623_p3, %p7091_p7 }
 0x409   : > { %5995 = dma.done.wait (!%p5615_p12), %s4531_s11, 2048  }
 0x40a   : > { %5997 = vsyncadd (!%p5615_p12), %s4531_s11, 4294965248  ;;  %s22_s25 = sadd.s32 1, %s6028_s25   ;;  %s7092_s21 = sld [smem:[#allocation15_spill]] }
 0x40b   : > { %p19_p11 = scmp.ge.s32.totalorder %s22_s25, 6   ;;  %s7093_s23 = sld [smem:[#allocation17_spill]] }
 0x40c   : > { %s7094_s12 = sld [smem:[#allocation18_spill]]  ;;  %s7095_s18 = smov %s6004_s19 }
 0x40d   : > { %s7096_s19 = smov %s6008_s20  ;;  %s7097_s20 = smov %s6231_s1 }
 0x40e   : > { %s7098_s22 = smov %s6024_s24  ;;  %21 = sbr.rel (!%p19_p11) target bundleno = 11 (0xb), region = 106 }
 0x412   : > { %s7099_s24 = smov %s7094_s12 }
 0x415   :  { %4536 = vsyncpa [#allocation5], 1 }
 0x416   :  { %4538 = vsyncpa [#allocation5 + $0x1], 1 }
 0x417   :  { %4539 = vsyncpa [#allocation8], 1 }
 0x418   :  { %4540 = vsyncpa [#allocation6], 1 }
 0x419   :  { %4542 = vsyncpa [#allocation6 + $0x1], 1 }

</bundles_post_ra>
